<compile_context>
chip_gen: v6e
topology: v6e:2x2x1
jax: 0.10.0
libtpu: 0.0.40
codegen_flags: <defaults>
</compile_context>

<pallas_src>
import functools

import jax
import jax.numpy as jnp
from jax.experimental import pallas as pl
from jax.experimental.pallas import tpu as pltpu

NEG_BIG = -3.0e38  # plain Python float (NOT a jnp scalar -> not captured as a kernel const)


# ------------------------------ fused Pallas kernel ------------------------------


def _graphsage_fused_kernel(
        # scalar-prefetch operands (SMEM)
        starts_ref, counts_ref,
        # array operands (VMEM)
        a_ref, x_ref, msum_ref, invcnt_ref,
        w1_ref, w2_ref, wl1_ref, wl2_ref, b_ref,
        # output
        o_ref,
        # scratch
        projl_ref, projr_ref, h1_ref, sum_ref, max_ref,
        *, hp, cp, tn, num_classes, num_graphs_pad):
    """Grid = (layer phase p, node-row block i).

    p==0: h1 rows = relu(A_blk @ (X@W1l) + (X@W1r)_blk + b1)         -> h1 scratch
    p==1: h2 rows = A_blk @ (h1@W2l) + (h1@W2r)_blk + b2
          pooling accumulators (sum via MXU, segment max via iota range masks);
          last block: [mean|max|sum] -> lin1 -> relu -> lin2 -> log_softmax.
    """
    p = pl.program_id(0)
    i = pl.program_id(1)
    nb = pl.num_programs(1)
    row0 = pl.multiple_of(i * tn, tn)

    # ---- once per layer: cache dense projection proj = H_in @ [W_l | W_r] ----
    @pl.when((p == 0) & (i == 0))
    def _():
        proj = jnp.dot(x_ref[...], w1_ref[...], preferred_element_type=jnp.float32)
        projl_ref[...] = proj[:, :hp].astype(jnp.bfloat16)   # neighbor term (bf16 MXU feed)
        projr_ref[...] = proj[:, hp:]                        # self/root term

    @pl.when((p == 1) & (i == 0))
    def _():
        proj = jnp.dot(h1_ref[...], w2_ref[...], preferred_element_type=jnp.float32)
        projl_ref[...] = proj[:, :hp].astype(jnp.bfloat16)
        projr_ref[...] = proj[:, hp:]
        sum_ref[...] = jnp.zeros(sum_ref.shape, jnp.float32)
        max_ref[...] = jnp.full(max_ref.shape, NEG_BIG, jnp.float32)

    # ---- SAGEConv for this node-row block: aggregate (bf16 MXU, f32 acc) + self + bias ----
    agg = jnp.dot(a_ref[...], projl_ref[...], preferred_element_type=jnp.float32)   # (tn, hp)
    self_blk = projr_ref[pl.ds(row0, tn), :]                                         # (tn, hp)
    brows = b_ref[...]                                                               # (8, Pmax)
    bias = jnp.where(p == 0, brows[0:1, :hp], brows[1:2, :hp])
    hblk = agg + self_blk + bias

    @pl.when(p == 0)
    def _():
        # ReLU; F.dropout(p=0.5, training=False) is identity in the eval forward.
        # TODO(synk): training-mode stochastic dropout not implemented.
        h1_ref[pl.ds(row0, tn), :] = jnp.maximum(hblk, 0.0)

    @pl.when(p == 1)
    def _():
        h2 = hblk
        # sum-pool contribution of this block (MXU); mean pool derived from it at finalize.
        sum_ref[...] += jnp.dot(msum_ref[...], h2, preferred_element_type=jnp.float32)

        # segment max: nodes sorted by graph in glue, so graph g owns the contiguous
        # global row range [starts[g], starts[g] + counts[g]).
        gidx = jax.lax.broadcasted_iota(jnp.int32, (tn, 1), 0) + row0
        rows = []
        for g in range(num_graphs_pad):                         # small, unrolled
            lo = starts_ref[g]
            hi = lo + counts_ref[g]
            in_g = (gidx >= lo) & (gidx < hi)
            rows.append(jnp.max(jnp.where(in_g, h2, NEG_BIG), axis=0, keepdims=True))
        max_ref[...] = jnp.maximum(max_ref[...], jnp.concatenate(rows, axis=0))

        @pl.when(i == nb - 1)
        def _():
            inv_cnt = invcnt_ref[...]                           # (Gp, hp): 1/|V_g| on all lanes
            s = sum_ref[...]
            mean = s * inv_cnt                                  # mean pool = sum * 1/|V_g|
            mx = jnp.where(inv_cnt > 0.0, max_ref[...], 0.0)    # empty/padded graphs -> 0
            pooled = jnp.concatenate([mean, mx, s], axis=1)     # (Gp, 3*hp), 128-lane aligned

            hd = jnp.dot(pooled, wl1_ref[...],
                         preferred_element_type=jnp.float32) + brows[2:3, :hp]
            hd = jnp.maximum(hd, 0.0)
            logits = jnp.dot(hd, wl2_ref[...],
                             preferred_element_type=jnp.float32) + brows[3:4, :cp]

            valid = jax.lax.broadcasted_iota(jnp.int32, logits.shape, 1) < num_classes
            logits = jnp.where(valid, logits, NEG_BIG)
            m = jnp.max(logits, axis=1, keepdims=True)
            sh = logits - m
            lse = jnp.log(jnp.sum(jnp.where(valid, jnp.exp(sh), 0.0), axis=1, keepdims=True))
            o_ref[...] = jnp.where(valid, sh - lse, 0.0)


# --------------------------------- JAX glue -----------------------------------


def _round_up(v, m):
    return ((v + m - 1) // m) * m


def _pad2(a, rows, cols):
    return jnp.zeros((rows, cols), jnp.float32).at[:a.shape[0], :a.shape[1]].set(a)


def init_params(key, num_node_features, num_classes, hidden_channels=16):
    ks = jax.random.split(key, 6)

    def lin(k, fan_in, fan_out, with_bias=True):
        bound = 1.0 / jnp.sqrt(jnp.float32(fan_in))
        kw, kb = jax.random.split(k)
        w = jax.random.uniform(kw, (fan_in, fan_out), jnp.float32, -bound, bound)
        b = jax.random.uniform(kb, (1, fan_out), jnp.float32, -bound, bound) if with_bias else None
        return w, b

    wl1, b1 = lin(ks[0], num_node_features, hidden_channels)            # conv1.lin_l (bias)
    wr1, _ = lin(ks[1], num_node_features, hidden_channels, False)      # conv1.lin_r
    wl2, b2 = lin(ks[2], hidden_channels, hidden_channels)              # conv2.lin_l (bias)
    wr2, _ = lin(ks[3], hidden_channels, hidden_channels, False)        # conv2.lin_r
    w_lin1, b_lin1 = lin(ks[4], hidden_channels * 3, hidden_channels)   # lin1
    w_lin2, b_lin2 = lin(ks[5], hidden_channels, num_classes)           # lin2
    return dict(wl1=wl1, wr1=wr1, b1=b1, wl2=wl2, wr2=wr2, b2=b2,
                w_lin1=w_lin1, b_lin1=b_lin1, w_lin2=w_lin2, b_lin2=b_lin2)


def graphsage_forward(params, x, edge_index, batch, num_graphs):
    n, f = x.shape
    h = params["wl1"].shape[1]
    c = params["w_lin2"].shape[1]

    # lane-dense padded sizes
    n_p = _round_up(n, 128)
    f_p = _round_up(f, 128)
    h_p = _round_up(h, 128)
    c_p = _round_up(c, 128)
    g_p = _round_up(num_graphs, 8)
    p_max = max(h_p, c_p)
    tn = 128                       # node-row block size (A streamed as (tn, n_p) bf16 blocks)
    nb = n_p // tn

    # ---- sort nodes by graph so per-graph node ranges are contiguous (segment max) ----
    perm = jnp.argsort(batch)
    inv_perm = jnp.zeros((n,), jnp.int32).at[perm].set(jnp.arange(n, dtype=jnp.int32))
    x_s = x[perm]
    batch_s = batch[perm]
    src = inv_perm[edge_index[0]]
    dst = inv_perm[edge_index[1]]

    # row-normalized dense adjacency: A[i, j] = (#edges j->i) / in_degree(i)
    # TODO(synk): for large graphs replace the dense NxN adjacency with a sparse/gather
    #             (segment_sum) aggregation instead of materializing A.
    adj = jnp.zeros((n, n), jnp.float32).at[dst, src].add(1.0)
    deg = adj.sum(axis=1, keepdims=True)
    a_mean = adj / jnp.maximum(deg, 1.0)

    counts = jnp.zeros((num_graphs,), jnp.int32).at[batch].add(1)
    starts = jnp.concatenate(
        [jnp.zeros((1,), jnp.int32), jnp.cumsum(counts)[:-1].astype(jnp.int32)])
    member = jnp.zeros((num_graphs, n), jnp.float32).at[batch_s, jnp.arange(n)].set(1.0)
    inv_cnt = jnp.where(counts > 0, 1.0 / jnp.maximum(counts, 1).astype(jnp.float32), 0.0)

    # ---- padded operands ----
    starts_p = jnp.zeros((g_p,), jnp.int32).at[:num_graphs].set(starts)
    counts_p = jnp.zeros((g_p,), jnp.int32).at[:num_graphs].set(counts)
    x_p = _pad2(x_s, n_p, f_p)
    a_p = _pad2(a_mean, n_p, n_p).astype(jnp.bfloat16)          # bf16 MXU feed, f32 accumulate
    m_sum_p = _pad2(member, g_p, n_p)
    inv_cnt_p = jnp.zeros((g_p, h_p), jnp.float32).at[:num_graphs, :].set(inv_cnt[:, None])

    # project-then-aggregate weights: proj = X @ [W_l | W_r]  (one wide 2*h_p-lane matmul)
    w1 = (jnp.zeros((f_p, 2 * h_p), jnp.float32)
          .at[:f, :h].set(params["wl1"])
          .at[:f, h_p:h_p + h].set(params["wr1"]))
    w2 = (jnp.zeros((h_p, 2 * h_p), jnp.float32)
          .at[:h, :h].set(params["wl2"])
          .at[:h, h_p:h_p + h].set(params["wr2"]))
    wl1 = (jnp.zeros((3 * h_p, h_p), jnp.float32)
           .at[:h, :h].set(params["w_lin1"][:h])                     # mean block
           .at[h_p:h_p + h, :h].set(params["w_lin1"][h:2 * h])       # max block
           .at[2 * h_p:2 * h_p + h, :h].set(params["w_lin1"][2 * h:]))  # sum block
    wl2 = _pad2(params["w_lin2"], h_p, c_p)
    bpack = (jnp.zeros((8, p_max), jnp.float32)                      # packed biases
             .at[0, :h].set(params["b1"][0])
             .at[1, :h].set(params["b2"][0])
             .at[2, :h].set(params["b_lin1"][0])
             .at[3, :c].set(params["b_lin2"][0]))

    # explicit VMEM budget: double-buffered inputs + scratch + headroom, capped for v7x
    bytes_in = (2 * (tn * n_p * 2 + g_p * tn * 4)
                + 2 * (n_p * f_p * 4 + g_p * h_p * 4 + f_p * 2 * h_p * 4
                       + h_p * 2 * h_p * 4 + 3 * h_p * h_p * 4 + h_p * c_p * 4
                       + 8 * p_max * 4 + g_p * c_p * 4))
    bytes_scratch = n_p * h_p * (2 + 4 + 4) + 2 * g_p * h_p * 4
    vmem_limit = int(min(56 * 2**20,
                         max(32 * 2**20, 2 * (bytes_in + bytes_scratch) + (8 << 20))))

    kern = functools.partial(_graphsage_fused_kernel, hp=h_p, cp=c_p, tn=tn,
                             num_classes=c, num_graphs_pad=g_p)
    grid_spec = pltpu.PrefetchScalarGridSpec(
        num_scalar_prefetch=2,
        grid=(2, nb),                                     # (layer phase, node-row block)
        in_specs=[
            pl.BlockSpec((tn, n_p), lambda p, i, *_: (i, 0)),        # A row block (streamed)
            pl.BlockSpec((n_p, f_p), lambda p, i, *_: (0, 0)),       # x (resident)
            pl.BlockSpec((g_p, tn), lambda p, i, *_: (0, i)),        # membership col block
            pl.BlockSpec((g_p, h_p), lambda p, i, *_: (0, 0)),       # 1/|V_g| (resident)
            pl.BlockSpec((f_p, 2 * h_p), lambda p, i, *_: (0, 0)),   # [W1l | W1r]
            pl.BlockSpec((h_p, 2 * h_p), lambda p, i, *_: (0, 0)),   # [W2l | W2r]
            pl.BlockSpec((3 * h_p, h_p), lambda p, i, *_: (0, 0)),   # lin1 W
            pl.BlockSpec((h_p, c_p), lambda p, i, *_: (0, 0)),       # lin2 W
            pl.BlockSpec((8, p_max), lambda p, i, *_: (0, 0)),       # packed biases
        ],
        out_specs=pl.BlockSpec((g_p, c_p), lambda p, i, *_: (0, 0)),
        scratch_shapes=[
            pltpu.VMEM((n_p, h_p), jnp.bfloat16),   # cached neighbor projection (per layer)
            pltpu.VMEM((n_p, h_p), jnp.float32),    # cached self projection (per layer)
            pltpu.VMEM((n_p, h_p), jnp.float32),    # h1 (layer-1 activations)
            pltpu.VMEM((g_p, h_p), jnp.float32),    # sum-pool accumulator
            pltpu.VMEM((g_p, h_p), jnp.float32),    # max-pool accumulator
        ])

    out_p = pl.pallas_call(
        kern,
        out_shape=jax.ShapeDtypeStruct((g_p, c_p), jnp.float32),
        grid_spec=grid_spec,
        # Both grid axes carry cross-iteration deps (h1 scratch / pooling accumulators),
        # so they must be "arbitrary".
        # TODO(synk): for v7x, split the row axis into a parallel outer axis with per-core
        #             partial pools + a tiny combine step to use both TensorCores.
        compiler_params=pltpu.CompilerParams(
            dimension_semantics=("arbitrary", "arbitrary"),
            vmem_limit_bytes=vmem_limit),
    )(starts_p, counts_p, a_p, x_p, m_sum_p, inv_cnt_p, w1, w2, wl1, wl2, bpack)

    return out_p[:num_graphs, :c]                    # (G, C) log-probs


# ----------------------------------- main --------------------------------------


if __name__ == "__main__":
    key = jax.random.PRNGKey(0)
    N_NODES, N_EDGES, N_GRAPHS = 16, 32, 2
    N_FEATURES, HIDDEN, N_CLASSES = 8, 16, 4

    k_x, k_src, k_dst, k_p = jax.random.split(key, 4)
    x = jax.random.normal(k_x, (N_NODES, N_FEATURES), jnp.float32)
    src = jax.random.randint(k_src, (N_EDGES,), 0, N_NODES)
    dst = jax.random.randint(k_dst, (N_EDGES,), 0, N_NODES)
    edge_index = jnp.stack([src, dst]).astype(jnp.int32)                # (2, E)
    batch = jnp.concatenate([jnp.zeros(N_NODES // 2, jnp.int32),
                             jnp.ones(N_NODES // 2, jnp.int32)])        # (N,)

    params = init_params(k_p, N_FEATURES, N_CLASSES, HIDDEN)

    out = graphsage_forward(params, x, edge_index, batch, N_GRAPHS)
    out = jax.block_until_ready(out)
    assert out.shape == (N_GRAPHS, N_CLASSES)
    # rows of log_softmax must (approximately) sum to 1 in prob space
    assert jnp.allclose(jnp.exp(out).sum(axis=1), 1.0, atol=1e-5)
    print("KERNEL_OK")
</pallas_src>

<mosaic_0001>
module attributes {stable_mosaic.version = 11 : i64} {
  func.func @_graphsage_fused_kernel(%arg0: i32, %arg1: i32, %arg2: memref<8xi32, #tpu.memory_space<smem>>, %arg3: memref<8xi32, #tpu.memory_space<smem>>, %arg4: memref<128x128xbf16, #tpu.memory_space<vmem>>, %arg5: memref<128x128xf32, #tpu.memory_space<vmem>>, %arg6: memref<8x128xf32, #tpu.memory_space<vmem>>, %arg7: memref<8x128xf32, #tpu.memory_space<vmem>>, %arg8: memref<128x256xf32, #tpu.memory_space<vmem>>, %arg9: memref<128x256xf32, #tpu.memory_space<vmem>>, %arg10: memref<384x128xf32, #tpu.memory_space<vmem>>, %arg11: memref<128x128xf32, #tpu.memory_space<vmem>>, %arg12: memref<8x128xf32, #tpu.memory_space<vmem>>, %arg13: memref<8x128xf32, #tpu.memory_space<vmem>>, %arg14: memref<128x128xbf16, #tpu.memory_space<vmem>>, %arg15: memref<128x128xf32, #tpu.memory_space<vmem>>, %arg16: memref<128x128xf32, #tpu.memory_space<vmem>>, %arg17: memref<8x128xf32, #tpu.memory_space<vmem>>, %arg18: memref<8x128xf32, #tpu.memory_space<vmem>>) attributes {dimension_semantics = [#tpu.dimension_semantics<arbitrary>, #tpu.dimension_semantics<arbitrary>], iteration_bounds = array<i64: 2, 1>, scalar_prefetch = 2 : i64, scratch_operands = 5 : i64, tpu.core_type = #tpu.core_type<tc>, window_params = [{transform_indices = @transform_0, window_bounds = array<i64: 128, 128>}, {pipeline_mode = #tpu.pipeline_mode<synchronous>, transform_indices = @transform_1, window_bounds = array<i64: 128, 128>}, {transform_indices = @transform_2, window_bounds = array<i64: 8, 128>}, {pipeline_mode = #tpu.pipeline_mode<synchronous>, transform_indices = @transform_3, window_bounds = array<i64: 8, 128>}, {pipeline_mode = #tpu.pipeline_mode<synchronous>, transform_indices = @transform_4, window_bounds = array<i64: 128, 256>}, {pipeline_mode = #tpu.pipeline_mode<synchronous>, transform_indices = @transform_5, window_bounds = array<i64: 128, 256>}, {pipeline_mode = #tpu.pipeline_mode<synchronous>, transform_indices = @transform_6, window_bounds = array<i64: 384, 128>}, {pipeline_mode = #tpu.pipeline_mode<synchronous>, transform_indices = @transform_7, window_bounds = array<i64: 128, 128>}, {pipeline_mode = #tpu.pipeline_mode<synchronous>, transform_indices = @transform_8, window_bounds = array<i64: 8, 128>}, {pipeline_mode = #tpu.pipeline_mode<synchronous>, transform_indices = @transform_9, window_bounds = array<i64: 8, 128>}]} {
    %c128_i32 = arith.constant 128 : i32
    %0 = arith.muli %arg1, %c128_i32 : i32
    %1 = tpu.assume_multiple %0, 128 : i32
    %c0_i32 = arith.constant 0 : i32
    %2 = arith.cmpi eq, %arg0, %c0_i32 : i32
    %c0_i32_0 = arith.constant 0 : i32
    %3 = arith.cmpi eq, %arg1, %c0_i32_0 : i32
    %4 = arith.andi %2, %3 : i1
    %5 = arith.extui %4 : i1 to i32
    %c0_i32_1 = arith.constant 0 : i32
    %6 = arith.cmpi ne, %5, %c0_i32_1 : i32
    scf.if %6 {
      %c0_15 = arith.constant 0 : index
      %c0_16 = arith.constant 0 : index
      %31 = vector.load %arg5[%c0_15, %c0_16] : memref<128x128xf32, #tpu.memory_space<vmem>>, vector<128x128xf32>
      %c0_17 = arith.constant 0 : index
      %c0_18 = arith.constant 0 : index
      %32 = vector.load %arg8[%c0_17, %c0_18] : memref<128x256xf32, #tpu.memory_space<vmem>>, vector<128x256xf32>
      %cst_19 = arith.constant dense<0.000000e+00> : vector<128x256xf32>
      %33 = tpu.matmul %31, %32, %cst_19 {dimension_numbers = #tpu.dot_dimension_numbers<[1], [0], [0], [1], [0, 0, 1, 1], [], []>} : vector<128x128xf32>, vector<128x256xf32>, vector<128x256xf32> -> vector<128x256xf32>
      %34 = vector.extract_strided_slice %33 {offsets = [0, 0], sizes = [128, 128], strides = [1, 1]} : vector<128x256xf32> to vector<128x128xf32>
      %35 = arith.truncf %34 : vector<128x128xf32> to vector<128x128xbf16>
      %c0_20 = arith.constant 0 : index
      %c0_21 = arith.constant 0 : index
      %36 = vector.load %arg14[%c0_20, %c0_21] : memref<128x128xbf16, #tpu.memory_space<vmem>>, vector<128x128xbf16>
      tpu.vector_store %arg14[%c0_20, %c0_21], %35 {strides = array<i32>} : memref<128x128xbf16, #tpu.memory_space<vmem>>, vector<128x128xbf16>,
      %37 = vector.extract_strided_slice %33 {offsets = [0, 128], sizes = [128, 128], strides = [1, 1]} : vector<128x256xf32> to vector<128x128xf32>
      %c0_22 = arith.constant 0 : index
      %c0_23 = arith.constant 0 : index
      %38 = vector.load %arg15[%c0_22, %c0_23] : memref<128x128xf32, #tpu.memory_space<vmem>>, vector<128x128xf32>
      tpu.vector_store %arg15[%c0_22, %c0_23], %37 {strides = array<i32>} : memref<128x128xf32, #tpu.memory_space<vmem>>, vector<128x128xf32>,
    } else {
    }
    %c1_i32 = arith.constant 1 : i32
    %7 = arith.cmpi eq, %arg0, %c1_i32 : i32
    %c0_i32_2 = arith.constant 0 : i32
    %8 = arith.cmpi eq, %arg1, %c0_i32_2 : i32
    %9 = arith.andi %7, %8 : i1
    %10 = arith.extui %9 : i1 to i32
    %c0_i32_3 = arith.constant 0 : i32
    %11 = arith.cmpi ne, %10, %c0_i32_3 : i32
    scf.if %11 {
      %c0_15 = arith.constant 0 : index
      %c0_16 = arith.constant 0 : index
      %31 = vector.load %arg16[%c0_15, %c0_16] : memref<128x128xf32, #tpu.memory_space<vmem>>, vector<128x128xf32>
      %c0_17 = arith.constant 0 : index
      %c0_18 = arith.constant 0 : index
      %32 = vector.load %arg9[%c0_17, %c0_18] : memref<128x256xf32, #tpu.memory_space<vmem>>, vector<128x256xf32>
      %cst_19 = arith.constant dense<0.000000e+00> : vector<128x256xf32>
      %33 = tpu.matmul %31, %32, %cst_19 {dimension_numbers = #tpu.dot_dimension_numbers<[1], [0], [0], [1], [0, 0, 1, 1], [], []>} : vector<128x128xf32>, vector<128x256xf32>, vector<128x256xf32> -> vector<128x256xf32>
      %34 = vector.extract_strided_slice %33 {offsets = [0, 0], sizes = [128, 128], strides = [1, 1]} : vector<128x256xf32> to vector<128x128xf32>
      %35 = arith.truncf %34 : vector<128x128xf32> to vector<128x128xbf16>
      %c0_20 = arith.constant 0 : index
      %c0_21 = arith.constant 0 : index
      %36 = vector.load %arg14[%c0_20, %c0_21] : memref<128x128xbf16, #tpu.memory_space<vmem>>, vector<128x128xbf16>
      tpu.vector_store %arg14[%c0_20, %c0_21], %35 {strides = array<i32>} : memref<128x128xbf16, #tpu.memory_space<vmem>>, vector<128x128xbf16>,
      %37 = vector.extract_strided_slice %33 {offsets = [0, 128], sizes = [128, 128], strides = [1, 1]} : vector<128x256xf32> to vector<128x128xf32>
      %c0_22 = arith.constant 0 : index
      %c0_23 = arith.constant 0 : index
      %38 = vector.load %arg15[%c0_22, %c0_23] : memref<128x128xf32, #tpu.memory_space<vmem>>, vector<128x128xf32>
      tpu.vector_store %arg15[%c0_22, %c0_23], %37 {strides = array<i32>} : memref<128x128xf32, #tpu.memory_space<vmem>>, vector<128x128xf32>,
      %cst_24 = arith.constant 0.000000e+00 : f32
      %39 = vector.broadcast %cst_24 : f32 to vector<8x128xf32>
      %c0_25 = arith.constant 0 : index
      %c0_26 = arith.constant 0 : index
      %40 = vector.load %arg17[%c0_25, %c0_26] : memref<8x128xf32, #tpu.memory_space<vmem>>, vector<8x128xf32>
      tpu.vector_store %arg17[%c0_25, %c0_26], %39 {strides = array<i32>} : memref<8x128xf32, #tpu.memory_space<vmem>>, vector<8x128xf32>,
      %cst_27 = arith.constant -3.000000e+38 : f32
      %41 = vector.broadcast %cst_27 : f32 to vector<8x128xf32>
      %c0_28 = arith.constant 0 : index
      %c0_29 = arith.constant 0 : index
      %42 = vector.load %arg18[%c0_28, %c0_29] : memref<8x128xf32, #tpu.memory_space<vmem>>, vector<8x128xf32>
      tpu.vector_store %arg18[%c0_28, %c0_29], %41 {strides = array<i32>} : memref<8x128xf32, #tpu.memory_space<vmem>>, vector<8x128xf32>,
    } else {
    }
    %c0 = arith.constant 0 : index
    %c0_4 = arith.constant 0 : index
    %12 = vector.load %arg4[%c0, %c0_4] : memref<128x128xbf16, #tpu.memory_space<vmem>>, vector<128x128xbf16>
    %c0_5 = arith.constant 0 : index
    %c0_6 = arith.constant 0 : index
    %13 = vector.load %arg14[%c0_5, %c0_6] : memref<128x128xbf16, #tpu.memory_space<vmem>>, vector<128x128xbf16>
    %cst = arith.constant dense<0.000000e+00> : vector<128x128xf32>
    %14 = tpu.matmul %12, %13, %cst {dimension_numbers = #tpu.dot_dimension_numbers<[1], [0], [0], [1], [0, 0, 1, 1], [], []>} : vector<128x128xbf16>, vector<128x128xbf16>, vector<128x128xf32> -> vector<128x128xf32>
    %15 = arith.index_cast %1 : i32 to index
    %c0_7 = arith.constant 0 : index
    %16 = vector.load %arg15[%15, %c0_7] : memref<128x128xf32, #tpu.memory_space<vmem>>, vector<128x128xf32>
    %c0_8 = arith.constant 0 : index
    %c0_9 = arith.constant 0 : index
    %17 = vector.load %arg12[%c0_8, %c0_9] : memref<8x128xf32, #tpu.memory_space<vmem>>, vector<8x128xf32>
    %c0_i32_10 = arith.constant 0 : i32
    %18 = arith.cmpi eq, %arg0, %c0_i32_10 : i32
    %19 = vector.extract_strided_slice %17 {offsets = [0, 0], sizes = [1, 128], strides = [1, 1]} : vector<8x128xf32> to vector<1x128xf32>
    %20 = vector.extract_strided_slice %17 {offsets = [1, 0], sizes = [1, 128], strides = [1, 1]} : vector<8x128xf32> to vector<1x128xf32>
    %21 = arith.select %18, %19, %20 : vector<1x128xf32>
    %22 = arith.addf %14, %16 : vector<128x128xf32>
    %23 = vector.broadcast %21 : vector<1x128xf32> to vector<128x128xf32>
    %24 = arith.addf %22, %23 : vector<128x128xf32>
    %c0_i32_11 = arith.constant 0 : i32
    %25 = arith.cmpi eq, %arg0, %c0_i32_11 : i32
    %26 = arith.extui %25 : i1 to i32
    %c0_i32_12 = arith.constant 0 : i32
    %27 = arith.cmpi ne, %26, %c0_i32_12 : i32
    scf.if %27 {
      %cst_15 = arith.constant 0.000000e+00 : f32
      %31 = vector.broadcast %cst_15 : f32 to vector<128x128xf32>
      %32 = arith.maximumf %24, %31 : vector<128x128xf32>
      %33 = arith.index_cast %1 : i32 to index
      %c0_16 = arith.constant 0 : index
      %34 = vector.load %arg16[%33, %c0_16] : memref<128x128xf32, #tpu.memory_space<vmem>>, vector<128x128xf32>
      tpu.vector_store %arg16[%33, %c0_16], %32 {strides = array<i32>} : memref<128x128xf32, #tpu.memory_space<vmem>>, vector<128x128xf32>,
    } else {
    }
    %c1_i32_13 = arith.constant 1 : i32
    %28 = arith.cmpi eq, %arg0, %c1_i32_13 : i32
    %29 = arith.extui %28 : i1 to i32
    %c0_i32_14 = arith.constant 0 : i32
    %30 = arith.cmpi ne, %29, %c0_i32_14 : i32
    scf.if %30 {
      %c0_15 = arith.constant 0 : index
      %c0_16 = arith.constant 0 : index
      %31 = vector.load %arg17[%c0_15, %c0_16] : memref<8x128xf32, #tpu.memory_space<vmem>>, vector<8x128xf32>
      %c0_17 = arith.constant 0 : index
      %c0_18 = arith.constant 0 : index
      %32 = vector.load %arg6[%c0_17, %c0_18] : memref<8x128xf32, #tpu.memory_space<vmem>>, vector<8x128xf32>
      %cst_19 = arith.constant dense<0.000000e+00> : vector<8x128xf32>
      %33 = tpu.matmul %32, %24, %cst_19 {dimension_numbers = #tpu.dot_dimension_numbers<[1], [0], [0], [1], [0, 0, 1, 1], [], []>} : vector<8x128xf32>, vector<128x128xf32>, vector<8x128xf32> -> vector<8x128xf32>
      %34 = arith.addf %31, %33 : vector<8x128xf32>
      %c0_20 = arith.constant 0 : index
      %c0_21 = arith.constant 0 : index
      %35 = vector.load %arg17[%c0_20, %c0_21] : memref<8x128xf32, #tpu.memory_space<vmem>>, vector<8x128xf32>
      tpu.vector_store %arg17[%c0_20, %c0_21], %34 {strides = array<i32>} : memref<8x128xf32, #tpu.memory_space<vmem>>, vector<8x128xf32>,
      %36 = tpu.iota {dimensions = array<i32: 0>} : vector<128x1xi32>
      %37 = vector.broadcast %1 : i32 to vector<128x1xi32>
      %38 = arith.addi %36, %37 : vector<128x1xi32>
      %c0_22 = arith.constant 0 : index
      %39 = memref.load %arg2[%c0_22] : memref<8xi32, #tpu.memory_space<smem>>
      %c0_23 = arith.constant 0 : index
      %40 = memref.load %arg3[%c0_23] : memref<8xi32, #tpu.memory_space<smem>>
      %41 = arith.addi %39, %40 : i32
      %42 = vector.broadcast %39 : i32 to vector<128x1xi32>
      %43 = arith.cmpi sge, %38, %42 : vector<128x1xi32>
      %44 = vector.broadcast %41 : i32 to vector<128x1xi32>
      %45 = arith.cmpi slt, %38, %44 : vector<128x1xi32>
      %46 = arith.andi %43, %45 : vector<128x1xi1>
      %cst_24 = arith.constant -3.000000e+38 : f32
      %47 = vector.shape_cast %46 : vector<128x1xi1> to vector<128x1xi1>
      %48 = vector.broadcast %47 : vector<128x1xi1> to vector<128x128xi1>
      %49 = vector.broadcast %cst_24 : f32 to vector<128x128xf32>
      %50 = arith.select %48, %24, %49 : vector<128x128xi1>, vector<128x128xf32>
      %cst_25 = arith.constant dense<0xFF800000> : vector<128xf32>
      %51 = vector.multi_reduction <maximumf>, %50, %cst_25 [0] : vector<128x128xf32> to vector<128xf32>
      %52 = vector.shape_cast %51 : vector<128xf32> to vector<1x128xf32>
      %c1 = arith.constant 1 : index
      %53 = memref.load %arg2[%c1] : memref<8xi32, #tpu.memory_space<smem>>
      %c1_26 = arith.constant 1 : index
      %54 = memref.load %arg3[%c1_26] : memref<8xi32, #tpu.memory_space<smem>>
      %55 = arith.addi %53, %54 : i32
      %56 = vector.broadcast %53 : i32 to vector<128x1xi32>
      %57 = arith.cmpi sge, %38, %56 : vector<128x1xi32>
      %58 = vector.broadcast %55 : i32 to vector<128x1xi32>
      %59 = arith.cmpi slt, %38, %58 : vector<128x1xi32>
      %60 = arith.andi %57, %59 : vector<128x1xi1>
      %cst_27 = arith.constant -3.000000e+38 : f32
      %61 = vector.shape_cast %60 : vector<128x1xi1> to vector<128x1xi1>
      %62 = vector.broadcast %61 : vector<128x1xi1> to vector<128x128xi1>
      %63 = vector.broadcast %cst_27 : f32 to vector<128x128xf32>
      %64 = arith.select %62, %24, %63 : vector<128x128xi1>, vector<128x128xf32>
      %cst_28 = arith.constant dense<0xFF800000> : vector<128xf32>
      %65 = vector.multi_reduction <maximumf>, %64, %cst_28 [0] : vector<128x128xf32> to vector<128xf32>
      %66 = vector.shape_cast %65 : vector<128xf32> to vector<1x128xf32>
      %c2 = arith.constant 2 : index
      %67 = memref.load %arg2[%c2] : memref<8xi32, #tpu.memory_space<smem>>
      %c2_29 = arith.constant 2 : index
      %68 = memref.load %arg3[%c2_29] : memref<8xi32, #tpu.memory_space<smem>>
      %69 = arith.addi %67, %68 : i32
      %70 = vector.broadcast %67 : i32 to vector<128x1xi32>
      %71 = arith.cmpi sge, %38, %70 : vector<128x1xi32>
      %72 = vector.broadcast %69 : i32 to vector<128x1xi32>
      %73 = arith.cmpi slt, %38, %72 : vector<128x1xi32>
      %74 = arith.andi %71, %73 : vector<128x1xi1>
      %cst_30 = arith.constant -3.000000e+38 : f32
      %75 = vector.shape_cast %74 : vector<128x1xi1> to vector<128x1xi1>
      %76 = vector.broadcast %75 : vector<128x1xi1> to vector<128x128xi1>
      %77 = vector.broadcast %cst_30 : f32 to vector<128x128xf32>
      %78 = arith.select %76, %24, %77 : vector<128x128xi1>, vector<128x128xf32>
      %cst_31 = arith.constant dense<0xFF800000> : vector<128xf32>
      %79 = vector.multi_reduction <maximumf>, %78, %cst_31 [0] : vector<128x128xf32> to vector<128xf32>
      %80 = vector.shape_cast %79 : vector<128xf32> to vector<1x128xf32>
      %c3 = arith.constant 3 : index
      %81 = memref.load %arg2[%c3] : memref<8xi32, #tpu.memory_space<smem>>
      %c3_32 = arith.constant 3 : index
      %82 = memref.load %arg3[%c3_32] : memref<8xi32, #tpu.memory_space<smem>>
      %83 = arith.addi %81, %82 : i32
      %84 = vector.broadcast %81 : i32 to vector<128x1xi32>
      %85 = arith.cmpi sge, %38, %84 : vector<128x1xi32>
      %86 = vector.broadcast %83 : i32 to vector<128x1xi32>
      %87 = arith.cmpi slt, %38, %86 : vector<128x1xi32>
      %88 = arith.andi %85, %87 : vector<128x1xi1>
      %cst_33 = arith.constant -3.000000e+38 : f32
      %89 = vector.shape_cast %88 : vector<128x1xi1> to vector<128x1xi1>
      %90 = vector.broadcast %89 : vector<128x1xi1> to vector<128x128xi1>
      %91 = vector.broadcast %cst_33 : f32 to vector<128x128xf32>
      %92 = arith.select %90, %24, %91 : vector<128x128xi1>, vector<128x128xf32>
      %cst_34 = arith.constant dense<0xFF800000> : vector<128xf32>
      %93 = vector.multi_reduction <maximumf>, %92, %cst_34 [0] : vector<128x128xf32> to vector<128xf32>
      %94 = vector.shape_cast %93 : vector<128xf32> to vector<1x128xf32>
      %c4 = arith.constant 4 : index
      %95 = memref.load %arg2[%c4] : memref<8xi32, #tpu.memory_space<smem>>
      %c4_35 = arith.constant 4 : index
      %96 = memref.load %arg3[%c4_35] : memref<8xi32, #tpu.memory_space<smem>>
      %97 = arith.addi %95, %96 : i32
      %98 = vector.broadcast %95 : i32 to vector<128x1xi32>
      %99 = arith.cmpi sge, %38, %98 : vector<128x1xi32>
      %100 = vector.broadcast %97 : i32 to vector<128x1xi32>
      %101 = arith.cmpi slt, %38, %100 : vector<128x1xi32>
      %102 = arith.andi %99, %101 : vector<128x1xi1>
      %cst_36 = arith.constant -3.000000e+38 : f32
      %103 = vector.shape_cast %102 : vector<128x1xi1> to vector<128x1xi1>
      %104 = vector.broadcast %103 : vector<128x1xi1> to vector<128x128xi1>
      %105 = vector.broadcast %cst_36 : f32 to vector<128x128xf32>
      %106 = arith.select %104, %24, %105 : vector<128x128xi1>, vector<128x128xf32>
      %cst_37 = arith.constant dense<0xFF800000> : vector<128xf32>
      %107 = vector.multi_reduction <maximumf>, %106, %cst_37 [0] : vector<128x128xf32> to vector<128xf32>
      %108 = vector.shape_cast %107 : vector<128xf32> to vector<1x128xf32>
      %c5 = arith.constant 5 : index
      %109 = memref.load %arg2[%c5] : memref<8xi32, #tpu.memory_space<smem>>
      %c5_38 = arith.constant 5 : index
      %110 = memref.load %arg3[%c5_38] : memref<8xi32, #tpu.memory_space<smem>>
      %111 = arith.addi %109, %110 : i32
      %112 = vector.broadcast %109 : i32 to vector<128x1xi32>
      %113 = arith.cmpi sge, %38, %112 : vector<128x1xi32>
      %114 = vector.broadcast %111 : i32 to vector<128x1xi32>
      %115 = arith.cmpi slt, %38, %114 : vector<128x1xi32>
      %116 = arith.andi %113, %115 : vector<128x1xi1>
      %cst_39 = arith.constant -3.000000e+38 : f32
      %117 = vector.shape_cast %116 : vector<128x1xi1> to vector<128x1xi1>
      %118 = vector.broadcast %117 : vector<128x1xi1> to vector<128x128xi1>
      %119 = vector.broadcast %cst_39 : f32 to vector<128x128xf32>
      %120 = arith.select %118, %24, %119 : vector<128x128xi1>, vector<128x128xf32>
      %cst_40 = arith.constant dense<0xFF800000> : vector<128xf32>
      %121 = vector.multi_reduction <maximumf>, %120, %cst_40 [0] : vector<128x128xf32> to vector<128xf32>
      %122 = vector.shape_cast %121 : vector<128xf32> to vector<1x128xf32>
      %c6 = arith.constant 6 : index
      %123 = memref.load %arg2[%c6] : memref<8xi32, #tpu.memory_space<smem>>
      %c6_41 = arith.constant 6 : index
      %124 = memref.load %arg3[%c6_41] : memref<8xi32, #tpu.memory_space<smem>>
      %125 = arith.addi %123, %124 : i32
      %126 = vector.broadcast %123 : i32 to vector<128x1xi32>
      %127 = arith.cmpi sge, %38, %126 : vector<128x1xi32>
      %128 = vector.broadcast %125 : i32 to vector<128x1xi32>
      %129 = arith.cmpi slt, %38, %128 : vector<128x1xi32>
      %130 = arith.andi %127, %129 : vector<128x1xi1>
      %cst_42 = arith.constant -3.000000e+38 : f32
      %131 = vector.shape_cast %130 : vector<128x1xi1> to vector<128x1xi1>
      %132 = vector.broadcast %131 : vector<128x1xi1> to vector<128x128xi1>
      %133 = vector.broadcast %cst_42 : f32 to vector<128x128xf32>
      %134 = arith.select %132, %24, %133 : vector<128x128xi1>, vector<128x128xf32>
      %cst_43 = arith.constant dense<0xFF800000> : vector<128xf32>
      %135 = vector.multi_reduction <maximumf>, %134, %cst_43 [0] : vector<128x128xf32> to vector<128xf32>
      %136 = vector.shape_cast %135 : vector<128xf32> to vector<1x128xf32>
      %c7 = arith.constant 7 : index
      %137 = memref.load %arg2[%c7] : memref<8xi32, #tpu.memory_space<smem>>
      %c7_44 = arith.constant 7 : index
      %138 = memref.load %arg3[%c7_44] : memref<8xi32, #tpu.memory_space<smem>>
      %139 = arith.addi %137, %138 : i32
      %140 = vector.broadcast %137 : i32 to vector<128x1xi32>
      %141 = arith.cmpi sge, %38, %140 : vector<128x1xi32>
      %142 = vector.broadcast %139 : i32 to vector<128x1xi32>
      %143 = arith.cmpi slt, %38, %142 : vector<128x1xi32>
      %144 = arith.andi %141, %143 : vector<128x1xi1>
      %cst_45 = arith.constant -3.000000e+38 : f32
      %145 = vector.shape_cast %144 : vector<128x1xi1> to vector<128x1xi1>
      %146 = vector.broadcast %145 : vector<128x1xi1> to vector<128x128xi1>
      %147 = vector.broadcast %cst_45 : f32 to vector<128x128xf32>
      %148 = arith.select %146, %24, %147 : vector<128x128xi1>, vector<128x128xf32>
      %cst_46 = arith.constant dense<0xFF800000> : vector<128xf32>
      %149 = vector.multi_reduction <maximumf>, %148, %cst_46 [0] : vector<128x128xf32> to vector<128xf32>
      %150 = vector.shape_cast %149 : vector<128xf32> to vector<1x128xf32>
      %c0_47 = arith.constant 0 : index
      %c0_48 = arith.constant 0 : index
      %151 = vector.load %arg18[%c0_47, %c0_48] : memref<8x128xf32, #tpu.memory_space<vmem>>, vector<8x128xf32>
      %152 = tpu.concatenate %52, %66, %80, %94, %108, %122, %136, %150 in 0 : vector<1x128xf32>, vector<1x128xf32>, vector<1x128xf32>, vector<1x128xf32>, vector<1x128xf32>, vector<1x128xf32>, vector<1x128xf32>, vector<1x128xf32> -> vector<8x128xf32>
      %153 = arith.maximumf %151, %152 : vector<8x128xf32>
      %c0_49 = arith.constant 0 : index
      %c0_50 = arith.constant 0 : index
      %154 = vector.load %arg18[%c0_49, %c0_50] : memref<8x128xf32, #tpu.memory_space<vmem>>, vector<8x128xf32>
      tpu.vector_store %arg18[%c0_49, %c0_50], %153 {strides = array<i32>} : memref<8x128xf32, #tpu.memory_space<vmem>>, vector<8x128xf32>,
      %c0_i32_51 = arith.constant 0 : i32
      %155 = arith.cmpi eq, %arg1, %c0_i32_51 : i32
      %156 = arith.extui %155 : i1 to i32
      %c0_i32_52 = arith.constant 0 : i32
      %157 = arith.cmpi ne, %156, %c0_i32_52 : i32
      scf.if %157 {
        %c0_53 = arith.constant 0 : index
        %c0_54 = arith.constant 0 : index
        %158 = vector.load %arg7[%c0_53, %c0_54] : memref<8x128xf32, #tpu.memory_space<vmem>>, vector<8x128xf32>
        %c0_55 = arith.constant 0 : index
        %c0_56 = arith.constant 0 : index
        %159 = vector.load %arg17[%c0_55, %c0_56] : memref<8x128xf32, #tpu.memory_space<vmem>>, vector<8x128xf32>
        %160 = arith.mulf %159, %158 : vector<8x128xf32>
        %cst_57 = arith.constant 0.000000e+00 : f32
        %161 = vector.broadcast %cst_57 : f32 to vector<8x128xf32>
        %162 = arith.cmpf ogt, %158, %161 : vector<8x128xf32>
        %c0_58 = arith.constant 0 : index
        %c0_59 = arith.constant 0 : index
        %163 = vector.load %arg18[%c0_58, %c0_59] : memref<8x128xf32, #tpu.memory_space<vmem>>, vector<8x128xf32>
        %cst_60 = arith.constant 0.000000e+00 : f32
        %164 = vector.broadcast %cst_60 : f32 to vector<8x128xf32>
        %165 = arith.select %162, %163, %164 : vector<8x128xi1>, vector<8x128xf32>
        %166 = tpu.concatenate %160, %165, %159 in 1 : vector<8x128xf32>, vector<8x128xf32>, vector<8x128xf32> -> vector<8x384xf32>
        %c0_61 = arith.constant 0 : index
        %c0_62 = arith.constant 0 : index
        %167 = vector.load %arg10[%c0_61, %c0_62] : memref<384x128xf32, #tpu.memory_space<vmem>>, vector<384x128xf32>
        %cst_63 = arith.constant dense<0.000000e+00> : vector<8x128xf32>
        %168 = tpu.matmul %166, %167, %cst_63 {dimension_numbers = #tpu.dot_dimension_numbers<[1], [0], [0], [1], [0, 0, 1, 1], [], []>} : vector<8x384xf32>, vector<384x128xf32>, vector<8x128xf32> -> vector<8x128xf32>
        %169 = vector.extract_strided_slice %17 {offsets = [2, 0], sizes = [1, 128], strides = [1, 1]} : vector<8x128xf32> to vector<1x128xf32>
        %170 = vector.broadcast %169 : vector<1x128xf32> to vector<8x128xf32>
        %171 = arith.addf %168, %170 : vector<8x128xf32>
        %cst_64 = arith.constant 0.000000e+00 : f32
        %172 = vector.broadcast %cst_64 : f32 to vector<8x128xf32>
        %173 = arith.maximumf %171, %172 : vector<8x128xf32>
        %c0_65 = arith.constant 0 : index
        %c0_66 = arith.constant 0 : index
        %174 = vector.load %arg11[%c0_65, %c0_66] : memref<128x128xf32, #tpu.memory_space<vmem>>, vector<128x128xf32>
        %cst_67 = arith.constant dense<0.000000e+00> : vector<8x128xf32>
        %175 = tpu.matmul %173, %174, %cst_67 {dimension_numbers = #tpu.dot_dimension_numbers<[1], [0], [0], [1], [0, 0, 1, 1], [], []>} : vector<8x128xf32>, vector<128x128xf32>, vector<8x128xf32> -> vector<8x128xf32>
        %176 = vector.extract_strided_slice %17 {offsets = [3, 0], sizes = [1, 128], strides = [1, 1]} : vector<8x128xf32> to vector<1x128xf32>
        %177 = vector.broadcast %176 : vector<1x128xf32> to vector<8x128xf32>
        %178 = arith.addf %175, %177 : vector<8x128xf32>
        %179 = tpu.iota {dimensions = array<i32: 1>} : vector<8x128xi32>
        %c4_i32 = arith.constant 4 : i32
        %180 = vector.broadcast %c4_i32 : i32 to vector<8x128xi32>
        %181 = arith.cmpi slt, %179, %180 : vector<8x128xi32>
        %cst_68 = arith.constant -3.000000e+38 : f32
        %182 = vector.broadcast %cst_68 : f32 to vector<8x128xf32>
        %183 = arith.select %181, %178, %182 : vector<8x128xi1>, vector<8x128xf32>
        %cst_69 = arith.constant dense<0xFF800000> : vector<8xf32>
        %184 = vector.multi_reduction <maximumf>, %183, %cst_69 [1] : vector<8x128xf32> to vector<8xf32>
        %185 = vector.shape_cast %184 : vector<8xf32> to vector<8x1xf32>
        %186 = vector.broadcast %185 : vector<8x1xf32> to vector<8x128xf32>
        %187 = arith.subf %183, %186 : vector<8x128xf32>
        %188 = math.exp %187 : vector<8x128xf32>
        %cst_70 = arith.constant 0.000000e+00 : f32
        %189 = vector.broadcast %cst_70 : f32 to vector<8x128xf32>
        %190 = arith.select %181, %188, %189 : vector<8x128xi1>, vector<8x128xf32>
        %cst_71 = arith.constant dense<0.000000e+00> : vector<8xf32>
        %191 = vector.multi_reduction <add>, %190, %cst_71 [1] : vector<8x128xf32> to vector<8xf32>
        %192 = vector.shape_cast %191 : vector<8xf32> to vector<8x1xf32>
        %193 = math.log %192 : vector<8x1xf32>
        %194 = vector.broadcast %193 : vector<8x1xf32> to vector<8x128xf32>
        %195 = arith.subf %187, %194 : vector<8x128xf32>
        %cst_72 = arith.constant 0.000000e+00 : f32
        %196 = vector.broadcast %cst_72 : f32 to vector<8x128xf32>
        %197 = arith.select %181, %195, %196 : vector<8x128xi1>, vector<8x128xf32>
        %c0_73 = arith.constant 0 : index
        %c0_74 = arith.constant 0 : index
        %198 = vector.load %arg13[%c0_73, %c0_74] : memref<8x128xf32, #tpu.memory_space<vmem>>, vector<8x128xf32>
        tpu.vector_store %arg13[%c0_73, %c0_74], %197 {strides = array<i32>} : memref<8x128xf32, #tpu.memory_space<vmem>>, vector<8x128xf32>,
      } else {
      }
    } else {
    }
    return
  }
  func.func @transform_0(%arg0: i32, %arg1: i32, %arg2: memref<8xi32, #tpu.memory_space<smem>>, %arg3: memref<8xi32, #tpu.memory_space<smem>>) -> (i32, i32) {
    %c0_i32 = arith.constant 0 : i32
    %c0_i32_0 = arith.constant 0 : i32
    return %arg1, %c0_i32 : i32, i32
  }
  func.func @transform_1(%arg0: i32, %arg1: i32, %arg2: memref<8xi32, #tpu.memory_space<smem>>, %arg3: memref<8xi32, #tpu.memory_space<smem>>) -> (i32, i32) {
    %c0_i32 = arith.constant 0 : i32
    %c0_i32_0 = arith.constant 0 : i32
    %c0_i32_1 = arith.constant 0 : i32
    return %c0_i32, %c0_i32_0 : i32, i32
  }
  func.func @transform_2(%arg0: i32, %arg1: i32, %arg2: memref<8xi32, #tpu.memory_space<smem>>, %arg3: memref<8xi32, #tpu.memory_space<smem>>) -> (i32, i32) {
    %c0_i32 = arith.constant 0 : i32
    %c0_i32_0 = arith.constant 0 : i32
    return %c0_i32, %arg1 : i32, i32
  }
  func.func @transform_3(%arg0: i32, %arg1: i32, %arg2: memref<8xi32, #tpu.memory_space<smem>>, %arg3: memref<8xi32, #tpu.memory_space<smem>>) -> (i32, i32) {
    %c0_i32 = arith.constant 0 : i32
    %c0_i32_0 = arith.constant 0 : i32
    %c0_i32_1 = arith.constant 0 : i32
    return %c0_i32, %c0_i32_0 : i32, i32
  }
  func.func @transform_4(%arg0: i32, %arg1: i32, %arg2: memref<8xi32, #tpu.memory_space<smem>>, %arg3: memref<8xi32, #tpu.memory_space<smem>>) -> (i32, i32) {
    %c0_i32 = arith.constant 0 : i32
    %c0_i32_0 = arith.constant 0 : i32
    %c0_i32_1 = arith.constant 0 : i32
    return %c0_i32, %c0_i32_0 : i32, i32
  }
  func.func @transform_5(%arg0: i32, %arg1: i32, %arg2: memref<8xi32, #tpu.memory_space<smem>>, %arg3: memref<8xi32, #tpu.memory_space<smem>>) -> (i32, i32) {
    %c0_i32 = arith.constant 0 : i32
    %c0_i32_0 = arith.constant 0 : i32
    %c0_i32_1 = arith.constant 0 : i32
    return %c0_i32, %c0_i32_0 : i32, i32
  }
  func.func @transform_6(%arg0: i32, %arg1: i32, %arg2: memref<8xi32, #tpu.memory_space<smem>>, %arg3: memref<8xi32, #tpu.memory_space<smem>>) -> (i32, i32) {
    %c0_i32 = arith.constant 0 : i32
    %c0_i32_0 = arith.constant 0 : i32
    %c0_i32_1 = arith.constant 0 : i32
    return %c0_i32, %c0_i32_0 : i32, i32
  }
  func.func @transform_7(%arg0: i32, %arg1: i32, %arg2: memref<8xi32, #tpu.memory_space<smem>>, %arg3: memref<8xi32, #tpu.memory_space<smem>>) -> (i32, i32) {
    %c0_i32 = arith.constant 0 : i32
    %c0_i32_0 = arith.constant 0 : i32
    %c0_i32_1 = arith.constant 0 : i32
    return %c0_i32, %c0_i32_0 : i32, i32
  }
  func.func @transform_8(%arg0: i32, %arg1: i32, %arg2: memref<8xi32, #tpu.memory_space<smem>>, %arg3: memref<8xi32, #tpu.memory_space<smem>>) -> (i32, i32) {
    %c0_i32 = arith.constant 0 : i32
    %c0_i32_0 = arith.constant 0 : i32
    %c0_i32_1 = arith.constant 0 : i32
    return %c0_i32, %c0_i32_0 : i32, i32
  }
  func.func @transform_9(%arg0: i32, %arg1: i32, %arg2: memref<8xi32, #tpu.memory_space<smem>>, %arg3: memref<8xi32, #tpu.memory_space<smem>>) -> (i32, i32) {
    %c0_i32 = arith.constant 0 : i32
    %c0_i32_0 = arith.constant 0 : i32
    %c0_i32_1 = arith.constant 0 : i32
    return %c0_i32, %c0_i32_0 : i32, i32
  }
}

</mosaic_0001>

<bundles_post_ra>
// kernel: tpu_custom_call.1
= control target key start
LH: loop header
LB: loop body
LE: loop exit
PB: predicated region body
PF: predicated region fallthrough
CT: control target
= control target key end

     0   :  { %s3837_s17 = smov [#allocation8]   ;;  %s3838_s20 = smov [#allocation9]   ;;  %s6163_s0 = inlined_call_operand.hbm [shape: s32[8], index: 0, kind: input, shape index: {}]   ;;  %s6164_s2 = inlined_call_operand.hbm [shape: bf16[128,128], index: 2, kind: input, shape index: {}]   ;;  %s6165_s3 = inlined_call_operand.hbm [shape: f32[128,128], index: 3, kind: input, shape index: {}]   ;;  %s6166_s4 = inlined_call_operand.hbm [shape: f32[8,128], index: 4, kind: input, shape index: {}]   ;;  %s6167_s5 = inlined_call_operand.vmem [shape: f32[8,128], index: 5, kind: input, shape index: {}]   ;;  %s6168_s6 = inlined_call_operand.hbm [shape: f32[128,256], index: 6, kind: input, shape index: {}]   ;;  %s6169_s7 = inlined_call_operand.hbm [shape: f32[128,256], index: 7, kind: input, shape index: {}]   ;;  %s6170_s8 = inlined_call_operand.hbm [shape: f32[384,128], index: 8, kind: input, shape index: {}]   ;;  %s6171_s9 = inlined_call_operand.hbm [shape: f32[128,128], index: 9, kind: input, shape index: {}]   ;;  %s6172_s10 = inlined_call_operand.vmem [shape: f32[8,128], index: 10, kind: input, shape index: {}]   ;;  %s6173_s11 = inlined_call_operand.hbm [shape: f32[8,128], index: 11, kind: output, shape index: {}]   ;;  %s6174_s1 = inlined_call_operand.hbm [shape: s32[8], index: 1, kind: input, shape index: {}]  }
   0x1   :  { %17 = dma.hbm_to_smem %s6163_s0, 16, %s3837_s17, [#allocation7] }
   0x2   :  { %19 = dma.hbm_to_smem %s6174_s1, 16, %s3838_s20, [#allocation7] }
   0x3   :  { %3803 = dma.done.wait [#allocation7], 32 }
   0x4   :  { %3804 = vsyncadd [#allocation7], 4294967264 }
   0x5   :  { %21 = sfence }
   0x6   :  { %22 = vsyncpa [#allocation11], 0 }
   0x7   :  { %23 = vsyncpa [#allocation14], 0 }
   0x8   :  { %24 = vsyncpa [#allocation17], 0 }
   0x9   :  { %25 = vsyncpa [#allocation20], 0 }
   0xa   :  { %26 = vsyncpa [#allocation12], 0  ;;  %s3924_s23 = smov 0   ;;  %s3926_s24 = smov 0  }
   0xb   :  { %s3928_s25 = smov 0  }
   0xc LB: > { %s3839_s0 = smov [#allocation13]   ;;  %s6175_s26 = sadd.s32 4294967295, %s3835_s25   ;;  %s3835_s25 = sphi %s3928_s25, %s32_s25   ;;  %s3831_s24 = sphi %s3926_s24, %s6374_s24   ;;  %s3827_s23 = sphi %s3924_s23, %s6373_s23  }
   0xd   : > { %s297_s1 = sshll.u32 %s3839_s0, 4  ;;  %p2900_p0 = scmp.ge.s32.totalorder %s3835_s25, 1  ;;  %s298_s1 = int_to_ptr.vmem [resolvable:$true] %s297_s1 }
   0xe   : > { %p269_p1 = scmp.lt.s32.totalorder %s3835_s25, 3  ;;  %p3944_p2 = scmp.eq.s32.totalorder %s6175_s26, 0 }
   0xf   : > { %s3840_s29 = smov [#allocation16]   ;;  %s3841_s13 = smov [#allocation19]  }
  0x10   : > { %s6182_s27 = scalar_select %p3944_p2, 1, 0 }
  0x11   : > { %p3948_p3 = pnand %p2900_p0, %p269_p1  ;;  %s326_s30 = sshll.u32 %s3840_s29, 4  ;;  %s3954_s30 = int_to_ptr.vmem [resolvable:$true] %s326_s30 }
  0x12   : > { %s3962_s14 = sshll.u32 %s3841_s13, 4  ;;  %s3596_s16 = scalar_lea.vmem %s298_s1, 2048  ;;  %s353_s14 = int_to_ptr.vmem [resolvable:$true] %s3962_s14 }
  0x13   : > { %s6183_s28 = scalar_select %p3948_p3, 1, 0 }
  0x14   : > { %p3466_p4 = pneg %p3948_p3  ;;  %p3597_p7 = scmp.ne.s32.totalorder %s298_s1, %s3596_s16 }
  0x15   : > { %p3604_p10 = scmp.lt.s32.totalorder %s298_s1, %s298_s1  ;;  %p3605_p11 = scmp.lt.s32.totalorder %s3596_s16, %s3596_s16 }
  0x16   : > { %p3958_p5 = pnand %p3944_p2, %p3466_p4 }
  0x17   : > { %p3606_p12 = por %p3605_p11, %p3604_p10 }
  0x18   : > { %p3966_p6 = pneg %p3958_p5 }
  0x1a   : > { %p3599_p8 = pnand %p3597_p7, %p3966_p6 }
  0x1c   : > { %p3600_p9 = pneg %p3599_p8 }
  0x1e   : > { %p3607_p13 = pnand %p3606_p12, %p3600_p9 }
  0x20   : > { %3610 = shalt.err (!%p3607_p13)
}
  0x21   : > { %s6176_s17 = smov 128   ;;  %s6177_s18 = smov 8  }
  0x22   : > { %3472 = dma.hbm_to_vmem [thread:$0]  (!%p3958_p5), %s6165_s3, 2048, %s298_s1, [#allocation14], %s6176_s17, %s6176_s17, %s6177_s18  }
  0x23   : > { %s3622_s21 = scalar_lea.vmem %s3954_s30, 4096  ;;  %p3630_p7 = scmp.lt.s32.totalorder %s3954_s30, %s3954_s30 }
  0x24   : > { %p3623_p0 = scmp.ne.s32.totalorder %s3954_s30, %s3622_s21  ;;  %p3631_p8 = scmp.lt.s32.totalorder %s3622_s21, %s3622_s21 }
  0x26   : > { %p3625_p1 = pnand %p3623_p0, %p3966_p6  ;;  %p3632_p9 = por %p3631_p8, %p3630_p7 }
  0x28   : > { %p3626_p4 = pneg %p3625_p1 }
  0x2a   : > { %p3633_p10 = pnand %p3632_p9, %p3626_p4 }
  0x2c   : > { %3636 = shalt.err (!%p3633_p10)
}
  0x2d   : > { %s3844_s22 = smov 256   ;;  %s3845_s0 = smov 16  }
  0x2e   : > { %3478 = dma.hbm_to_vmem [thread:$0]  (!%p3958_p5), %s6168_s6, 4096, %s3954_s30, [#allocation17], %s3844_s22, %s3844_s22, %s3845_s0  }
  0x2f   : > { %s3648_s13 = scalar_lea.vmem %s353_s14, 6144  ;;  %p3656_p0 = scmp.lt.s32.totalorder %s353_s14, %s353_s14 }
  0x30   : > { %p3649_p11 = scmp.ne.s32.totalorder %s353_s14, %s3648_s13  ;;  %p3657_p1 = scmp.lt.s32.totalorder %s3648_s13, %s3648_s13 }
  0x32   : > { %p3651_p12 = pnand %p3649_p11, %p3966_p6  ;;  %p3658_p4 = por %p3657_p1, %p3656_p0 }
  0x34   : > { %p3652_p13 = pneg %p3651_p12 }
  0x36   : > { %p3659_p7 = pnand %p3658_p4, %p3652_p13 }
  0x38   : > { %3662 = shalt.err (!%p3659_p7)
}
  0x39   : > { %3484 = dma.hbm_to_vmem [thread:$0]  (!%p3958_p5), %s6170_s8, 6144, %s353_s14, [#allocation20], %s6176_s17, %s6176_s17, %s6177_s18  }
  0x3a   : > { %s44_s30 = sadd.s32 1, %s3831_s24  ;;  %s3846_s20 = smov [#allocation10]  }
  0x3b   : > { %p46_p8 = scmp.ge.s32.totalorder %s44_s30, 2  ;;  %s284_s21 = sshll.u32 %s3846_s20, 4  ;;  %s285_s21 = int_to_ptr.vmem [resolvable:$true] %s284_s21 }
  0x3c   : > { %s3674_s1 = scalar_lea.vmem %s285_s21, 1024  ;;  %p3682_p12 = scmp.lt.s32.totalorder %s285_s21, %s285_s21 }
  0x3d   : > { %s6376_s30 = smov (%p46_p8, %s44_s30), 0  ;;  %p3675_p9 = scmp.ne.s32.totalorder %s285_s21, %s3674_s1 }
  0x3e   : > { %p3683_p13 = scmp.lt.s32.totalorder %s3674_s1, %s3674_s1 }
  0x3f   : > { %p3677_p10 = pnand %p3675_p9, %p3966_p6 }
  0x40   : > { %p3684_p0 = por %p3683_p13, %p3682_p12 }
  0x41   : > { %p3678_p11 = pneg %p3677_p10 }
  0x43   : > { %p3685_p1 = pnand %p3684_p0, %p3678_p11 }
  0x45   : > { %3688 = shalt.err (!%p3685_p1)
}
  0x46   : > { %s3847_s29 = smov 64   ;;  %s3848_s14 = smov 4  }
  0x47   : > { %3469 = dma.hbm_to_vmem [thread:$0]  (!%p3958_p5), %s6164_s2, 1024, %s285_s21, [#allocation11], %s3847_s29, %s3847_s29, %s3848_s14  }
  0x48   : > { %s3849_s19 = smov [#allocation15]   ;;  %s3850_s26 = smov [#allocation18]  }
  0x49   : > { %s313_s20 = sshll.u32 %s3849_s19, 4  ;;  %s339_s17 = sshll.u32 %s3850_s26, 4  ;;  %s314_s20 = int_to_ptr.vmem [resolvable:$true] %s313_s20  ;;  %s340_s17 = int_to_ptr.vmem [resolvable:$true] %s339_s17 }
  0x4a   : > { %s3700_s18 = scalar_lea.vmem %s314_s20, 128  ;;  %p3708_p9 = scmp.lt.s32.totalorder %s314_s20, %s314_s20 }
  0x4b   : > { %p3701_p4 = scmp.ne.s32.totalorder %s314_s20, %s3700_s18  ;;  %p3709_p10 = scmp.lt.s32.totalorder %s3700_s18, %s3700_s18 }
  0x4d   : > { %p3703_p7 = pnand %p3701_p4, %p3966_p6  ;;  %p3710_p11 = por %p3709_p10, %p3708_p9 }
  0x4f   : > { %p3704_p8 = pneg %p3703_p7 }
  0x51   : > { %p3711_p12 = pnand %p3710_p11, %p3704_p8 }
  0x53   : > { %3714 = shalt.err (!%p3711_p12)
}
  0x54   : > { %3475 = dma.hbm_to_vmem [thread:$0]  (!%p3958_p5), %s6166_s4, 128, %s314_s20, [#allocation14]  }
  0x55   : > { %s3726_s21 = scalar_lea.vmem %s340_s17, 4096  ;;  %p3734_p4 = scmp.lt.s32.totalorder %s340_s17, %s340_s17 }
  0x56   : > { %p3727_p13 = scmp.ne.s32.totalorder %s340_s17, %s3726_s21  ;;  %p3735_p7 = scmp.lt.s32.totalorder %s3726_s21, %s3726_s21 }
  0x58   : > { %p3729_p0 = pnand %p3727_p13, %p3966_p6  ;;  %p3736_p2 = por %p3735_p7, %p3734_p4 }
  0x5a   : > { %p3730_p1 = pneg %p3729_p0 }
  0x5c   : > { %p3737_p3 = pnand %p3736_p2, %p3730_p1 }
  0x5e   : > { %3740 = shalt.err (!%p3737_p3)
}
  0x5f   : > { %3481 = dma.hbm_to_vmem [thread:$0]  (!%p3958_p5), %s6169_s7, 4096, %s340_s17, [#allocation17], %s3844_s22, %s3844_s22, %s3845_s0  }
  0x60   : > { %s3851_s29 = smov [#allocation21]  }
  0x61   : > { %s365_s14 = sshll.u32 %s3851_s29, 4  ;;  %s366_s14 = int_to_ptr.vmem [resolvable:$true] %s365_s14 }
  0x62   : > { %s3752_s16 = scalar_lea.vmem %s366_s14, 2048  ;;  %p3760_p2 = scmp.lt.s32.totalorder %s366_s14, %s366_s14 }
  0x63   : > { %p3753_p8 = scmp.ne.s32.totalorder %s366_s14, %s3752_s16  ;;  %p3761_p3 = scmp.lt.s32.totalorder %s3752_s16, %s3752_s16 }
  0x65   : > { %p3755_p9 = pnand %p3753_p8, %p3966_p6  ;;  %p3762_p11 = por %p3761_p3, %p3760_p2 }
  0x67   : > { %p3756_p10 = pneg %p3755_p9 }
  0x69   : > { %p3763_p12 = pnand %p3762_p11, %p3756_p10 }
  0x6b   : > { %3766 = shalt.err (!%p3763_p12)
}
  0x6c   : > { %s6186_s19 = smov 8   ;;  %s6187_s20 = smov 128  }
  0x6d   : > { %3487 = dma.hbm_to_vmem [thread:$0]  (!%p3958_p5), %s6171_s9, 2048, %s366_s14, [#allocation20], %s6187_s20, %s6187_s20, %s6186_s19  }
  0x6e   : > { %p6188_p13 = scmp.ne.s32.totalorder %s6183_s28, 0 }
  0x6f   : > { %p6189_p6 = scmp.ne.s32.totalorder (!%p6188_p13), %s6182_s27, 0 }
  0x70   : > { %384 = sbr.rel (%p6188_p13) target bundleno = 1868 (0x74c), region = 56 }
  0x75   : > { %3806 = dma.done.wait (%p6189_p6), [#allocation11], 1024  }
  0x76   : > { %3808 = vsyncadd (%p6189_p6), [#allocation11], 4294966272 }
  0x77   : > { %3810 = dma.done.wait (%p6189_p6), [#allocation14], 2176  }
  0x78   : > { %3812 = vsyncadd (%p6189_p6), [#allocation14], 4294965120 }
  0x79   : > { %3814 = dma.done.wait (%p6189_p6), [#allocation17], 8192  }
  0x7a   : > { %3816 = vsyncadd (%p6189_p6), [#allocation17], 4294959104 }
  0x7b   : > { %3818 = dma.done.wait (%p6189_p6), [#allocation20], 8192  }
  0x7c   : > { %3820 = vsyncadd (%p6189_p6), [#allocation20], 4294959104  ;;  %p437_p5 = scmp.eq.s32.totalorder %s3827_s23, 0 }
  0x7d   : > { %v490_v0 = vld [vmem:[#allocation16 + $0xf8] sm:$0xff] (%p437_p5)  ;;  %v489_v1 = vld [vmem:[#allocation16 + $0xf0] sm:$0xff] (%p437_p5)  ;;  %v488_v2 = vld [vmem:[#allocation16 + $0xe8] sm:$0xff] (%p437_p5)  ;;  %v3852_v34 = vmov (%p437_p5), 0.0  }
  0x7e   : > { %442 = sbr.rel (!%p437_p5) target bundleno = 384 (0x180), region = 88  ;;  %491 = vmatprep.subr.mxu0 (%p437_p5), %v490_v0  ;;  %3354 = vmatprep.subr.mxu1 (%p437_p5), %v490_v0  ;;  %v487_v3 = vld [vmem:[#allocation16 + $0xe0] sm:$0xff] (%p437_p5)  ;;  %v486_v4 = vld [vmem:[#allocation16 + $0xd8] sm:$0xff] (%p437_p5)  ;;  %v485_v5 = vld [vmem:[#allocation16 + $0xd0] sm:$0xff] (%p437_p5) }
  0x7f   : > { %492 = vmatpush1.msra.mxu0 (%p437_p5), %v489_v1  ;;  %3370 = vmatpush1.msra.mxu1 (%p437_p5), %v489_v1  ;;  %v484_v6 = vld [vmem:[#allocation16 + $0xc8] sm:$0xff] (%p437_p5)  ;;  %v483_v7 = vld [vmem:[#allocation16 + $0xc0] sm:$0xff] (%p437_p5)  ;;  %v482_v8 = vld [vmem:[#allocation16 + $0xb8] sm:$0xff] (%p437_p5) }
  0x80   : > { %493 = vmatprep.subr.mxu0 (%p437_p5), %v488_v2  ;;  %3355 = vmatprep.subr.mxu1 (%p437_p5), %v488_v2  ;;  %v481_v9 = vld [vmem:[#allocation16 + $0xb0] sm:$0xff] (%p437_p5)  ;;  %v480_v10 = vld [vmem:[#allocation16 + $0xa8] sm:$0xff] (%p437_p5)  ;;  %v479_v11 = vld [vmem:[#allocation16 + $0xa0] sm:$0xff] (%p437_p5) }
  0x81   : > { %494 = vmatpush1.msra.mxu0 (%p437_p5), %v487_v3  ;;  %3371 = vmatpush1.msra.mxu1 (%p437_p5), %v487_v3  ;;  %v478_v12 = vld [vmem:[#allocation16 + $0x98] sm:$0xff] (%p437_p5)  ;;  %v477_v13 = vld [vmem:[#allocation16 + $0x90] sm:$0xff] (%p437_p5)  ;;  %v476_v14 = vld [vmem:[#allocation16 + $0x88] sm:$0xff] (%p437_p5) }
  0x82   : > { %495 = vmatprep.subr.mxu0 (%p437_p5), %v486_v4  ;;  %3356 = vmatprep.subr.mxu1 (%p437_p5), %v486_v4  ;;  %v475_v15 = vld [vmem:[#allocation16 + $0x80] sm:$0xff] (%p437_p5)  ;;  %v474_v16 = vld [vmem:[#allocation16 + $0x78] sm:$0xff] (%p437_p5)  ;;  %v473_v17 = vld [vmem:[#allocation16 + $0x70] sm:$0xff] (%p437_p5) }
  0x83   : > { %496 = vmatpush1.msra.mxu0 %v485_v5  ;;  %3372 = vmatpush1.msra.mxu1 %v485_v5  ;;  %v472_v18 = vld [vmem:[#allocation16 + $0x68] sm:$0xff]  ;;  %v471_v19 = vld [vmem:[#allocation16 + $0x60] sm:$0xff]  ;;  %v470_v20 = vld [vmem:[#allocation16 + $0x58] sm:$0xff] }
  0x84   : > { %497 = vmatprep.subr.mxu0 %v484_v6  ;;  %3357 = vmatprep.subr.mxu1 %v484_v6  ;;  %v469_v21 = vld [vmem:[#allocation16 + $0x50] sm:$0xff]  ;;  %v468_v22 = vld [vmem:[#allocation16 + $0x48] sm:$0xff]  ;;  %v467_v23 = vld [vmem:[#allocation16 + $0x40] sm:$0xff] }
  0x85   : > { %498 = vmatpush1.msra.mxu0 %v483_v7  ;;  %3373 = vmatpush1.msra.mxu1 %v483_v7  ;;  %v466_v24 = vld [vmem:[#allocation16 + $0x38] sm:$0xff]  ;;  %v465_v25 = vld [vmem:[#allocation16 + $0x30] sm:$0xff]  ;;  %v464_v26 = vld [vmem:[#allocation16 + $0x28] sm:$0xff] }
  0x86   : > { %499 = vmatprep.subr.mxu0 %v482_v8  ;;  %3358 = vmatprep.subr.mxu1 %v482_v8  ;;  %v463_v27 = vld [vmem:[#allocation16 + $0x20] sm:$0xff]  ;;  %v462_v28 = vld [vmem:[#allocation16 + $0x18] sm:$0xff]  ;;  %v461_v29 = vld [vmem:[#allocation16 + $0x10] sm:$0xff] }
  0x87   : > { %500 = vmatpush1.msra.mxu0 %v481_v9  ;;  %3374 = vmatpush1.msra.mxu1 %v481_v9  ;;  %v460_v30 = vld [vmem:[#allocation16 + $0x8] sm:$0xff]  ;;  %v459_v31 = vld [vmem:[#allocation16] sm:$0xff]  ;;  %v443_v32 = vld [vmem:[#allocation13] sm:$0xff] }
  0x88   : > { %501 = vmatprep.subr.mxu0 %v480_v10  ;;  %3359 = vmatprep.subr.mxu1 %v480_v10  ;;  %v451_v33 = vld [vmem:[#allocation13 + $0x40] sm:$0xff]  ;;  %v444_v35 = vld [vmem:[#allocation13 + $0x8] sm:$0xff]  ;;  %v445_v37 = vld [vmem:[#allocation13 + $0x10] sm:$0xff] }
  0x89   : > { %502 = vmatpush1.msra.mxu0 %v479_v11  ;;  %3375 = vmatpush1.msra.mxu1 %v479_v11  ;;  %v452_v36 = vld [vmem:[#allocation13 + $0x48] sm:$0xff]  ;;  %v453_v38 = vld [vmem:[#allocation13 + $0x50] sm:$0xff]  ;;  %v446_v39 = vld [vmem:[#allocation13 + $0x18] sm:$0xff] }
  0x8a   : > { %503 = vmatprep.subr.mxu0 %v478_v12  ;;  %3360 = vmatprep.subr.mxu1 %v478_v12  ;;  %v454_v40 = vld [vmem:[#allocation13 + $0x58] sm:$0xff]  ;;  %v447_v41 = vld [vmem:[#allocation13 + $0x20] sm:$0xff]  ;;  %v448_v43 = vld [vmem:[#allocation13 + $0x28] sm:$0xff] }
  0x8b   : > { %504 = vmatpush1.msra.mxu0 %v477_v13  ;;  %3376 = vmatpush1.msra.mxu1 %v477_v13  ;;  %v455_v42 = vld [vmem:[#allocation13 + $0x60] sm:$0xff]  ;;  %v456_v44 = vld [vmem:[#allocation13 + $0x68] sm:$0xff]  ;;  %v449_v45 = vld [vmem:[#allocation13 + $0x30] sm:$0xff] }
  0x8c   : > { %505 = vmatprep.subr.mxu0 %v476_v14  ;;  %3361 = vmatprep.subr.mxu1 %v476_v14  ;;  %v457_v46 = vld [vmem:[#allocation13 + $0x70] sm:$0xff]  ;;  %v450_v47 = vld [vmem:[#allocation13 + $0x38] sm:$0xff] }
  0x8d   : > { %506 = vmatpush1.msra.mxu0 %v475_v15  ;;  %3377 = vmatpush1.msra.mxu1 %v475_v15  ;;  %v458_v48 = vld [vmem:[#allocation13 + $0x78] sm:$0xff] }
  0x8e   : > { %507 = vmatprep.subr.mxu0 %v474_v16  ;;  %3362 = vmatprep.subr.mxu1 %v474_v16 }
  0x8f   : > { %508 = vmatpush1.msra.mxu0 %v473_v17  ;;  %3378 = vmatpush1.msra.mxu1 %v473_v17 }
  0x90   : > { %509 = vmatprep.subr.mxu0 %v472_v18  ;;  %3363 = vmatprep.subr.mxu1 %v472_v18 }
  0x91   : > { %510 = vmatpush1.msra.mxu0 %v471_v19  ;;  %3379 = vmatpush1.msra.mxu1 %v471_v19 }
  0x92   : > { %511 = vmatprep.subr.mxu0 %v470_v20  ;;  %3364 = vmatprep.subr.mxu1 %v470_v20 }
  0x93   : > { %512 = vmatpush1.msra.mxu0 %v469_v21  ;;  %3380 = vmatpush1.msra.mxu1 %v469_v21 }
  0x94   : > { %513 = vmatprep.subr.mxu0 %v468_v22  ;;  %3365 = vmatprep.subr.mxu1 %v468_v22 }
  0x95   : > { %514 = vmatpush1.msra.mxu0 %v467_v23  ;;  %3381 = vmatpush1.msra.mxu1 %v467_v23 }
  0x96   : > { %515 = vmatprep.subr.mxu0 %v466_v24  ;;  %3366 = vmatprep.subr.mxu1 %v466_v24 }
  0x97   : > { %516 = vmatpush1.msra.mxu0 %v465_v25  ;;  %3382 = vmatpush1.msra.mxu1 %v465_v25 }
  0x98   : > { %517 = vmatprep.subr.mxu0 %v464_v26  ;;  %3367 = vmatprep.subr.mxu1 %v464_v26 }
  0x99   : > { %518 = vmatpush1.msra.mxu0 %v463_v27  ;;  %3383 = vmatpush1.msra.mxu1 %v463_v27 }
  0x9a   : > { %519 = vmatprep.subr.mxu0 %v462_v28  ;;  %3368 = vmatprep.subr.mxu1 %v462_v28 }
  0x9b   : > { %520 = vmatpush1.msra.mxu0 %v461_v29  ;;  %3384 = vmatpush1.msra.mxu1 %v461_v29 }
  0x9c   : > { %521 = vmatprep.subr.mxu0 %v460_v30  ;;  %3369 = vmatprep.subr.mxu1 %v460_v30 }
  0x9d   : > { %522 = vmatpush1.msra.mxu0 %v459_v31  ;;  %3385 = vmatpush1.msra.mxu1 %v459_v31 }
  0x9e   : > { %555 = vmatprep.mubr.f32.mxu0 %v3852_v34  ;;  %603 = vmatprep.mubr.f32.mxu1 %v3852_v34 }
  0x9f   : > { %556 = vmatmul.mubr.f32.vlgmr.msra.gmra.mxu0 %v443_v32  ;;  %604 = vmatmul.mubr.f32.vlgmr.msra.gmra.mxu1 %v451_v33 }
  0xa0   : > { %561 = vmatprep.mubr.f32.mxu0 %v3852_v34  ;;  %609 = vmatprep.mubr.f32.mxu1 %v3852_v34 }
  0xa3   : > { %562 = vmatmul.mubr.f32.gmra.mxu0 %v444_v35  ;;  %610 = vmatmul.mubr.f32.gmra.mxu1 %v452_v36 }
  0xa4   : > { %567 = vmatprep.mubr.f32.mxu0 %v3852_v34  ;;  %615 = vmatprep.mubr.f32.mxu1 %v3852_v34 }
  0xa7   : > { %568 = vmatmul.mubr.f32.gmra.mxu0 %v445_v37  ;;  %616 = vmatmul.mubr.f32.gmra.mxu1 %v453_v38 }
  0xa8   : > { %573 = vmatprep.mubr.f32.mxu0 %v3852_v34  ;;  %621 = vmatprep.mubr.f32.mxu1 %v3852_v34 }
  0xab   : > { %574 = vmatmul.mubr.f32.gmra.mxu0 %v446_v39  ;;  %622 = vmatmul.mubr.f32.gmra.mxu1 %v454_v40 }
  0xac   : > { %579 = vmatprep.mubr.f32.mxu0 %v3852_v34  ;;  %627 = vmatprep.mubr.f32.mxu1 %v3852_v34 }
  0xaf   : > { %580 = vmatmul.mubr.f32.gmra.mxu0 %v447_v41  ;;  %628 = vmatmul.mubr.f32.gmra.mxu1 %v455_v42 }
  0xb0   : > { %585 = vmatprep.mubr.f32.mxu0 %v3852_v34  ;;  %633 = vmatprep.mubr.f32.mxu1 %v3852_v34 }
  0xb3   : > { %586 = vmatmul.mubr.f32.gmra.mxu0 %v448_v43  ;;  %634 = vmatmul.mubr.f32.gmra.mxu1 %v456_v44 }
  0xb4   : > { %591 = vmatprep.mubr.f32.mxu0 %v3852_v34  ;;  %639 = vmatprep.mubr.f32.mxu1 %v3852_v34 }
  0xb7   : > { %592 = vmatmul.mubr.f32.gmra.mxu0 %v449_v45  ;;  %640 = vmatmul.mubr.f32.gmra.mxu1 %v457_v46 }
  0xb8   : > { %597 = vmatprep.mubr.f32.mxu0 %v3852_v34  ;;  %645 = vmatprep.mubr.f32.mxu1 %v3852_v34 }
  0xbb   : > { %598 = vmatmul.mubr.f32.gmra.mxu0 %v450_v47  ;;  %646 = vmatmul.mubr.f32.gmra.mxu1 %v458_v48 }
 0x15f   : > { %v557_v49 = vpop.f32.mrf.mxu0  ;;  %v605_v50 = vpop.f32.mrf.mxu1 }
 0x161   : > { %v559_v51 = vpop.f32.mrf.mxu0  ;;  %v607_v52 = vpop.f32.mrf.mxu1 }
 0x162   : > { %732 = vst [vmem:[#allocation3 + $0x30] sm:$0xff] %v559_v51  ;;  %740 = vst [vmem:[#allocation3 + $0x40] sm:$0xff] %v607_v52 }
 0x163   : > { %v563_v53 = vpop.f32.mrf.mxu0  ;;  %v611_v54 = vpop.f32.mrf.mxu1 }
 0x164   : > { %v3024_v55 = vpack.c.bf16 %v563_v53, %v557_v49  ;;  %v3044_v56 = vpack.c.bf16 %v611_v54, %v605_v50 }
 0x165   : > { %v565_v57 = vpop.f32.mrf.mxu0  ;;  %v613_v58 = vpop.f32.mrf.mxu1 }
 0x166   : > { %3025 = vst [vmem:[#allocation2] sm:$0xff] %v3024_v55   ;;  %3104 = vst [vmem:[#allocation2 + $0x20] sm:$0xff] %v3044_v56  }
 0x167   : > { %733 = vst [vmem:[#allocation3] sm:$0xff] %v565_v57  ;;  %741 = vst [vmem:[#allocation3 + $0x20] sm:$0xff] %v613_v58  ;;  %v569_v59 = vpop.f32.mrf.mxu0  ;;  %v617_v60 = vpop.f32.mrf.mxu1 }
 0x169   : > { %v571_v61 = vpop.f32.mrf.mxu0  ;;  %v619_v62 = vpop.f32.mrf.mxu1 }
 0x16a   : > { %734 = vst [vmem:[#allocation3 + $0x58] sm:$0xff] %v571_v61  ;;  %742 = vst [vmem:[#allocation3 + $0x10] sm:$0xff] %v619_v62 }
 0x16b   : > { %v575_v63 = vpop.f32.mrf.mxu0  ;;  %v623_v0 = vpop.f32.mrf.mxu1 }
 0x16c   : > { %v3029_v1 = vpack.c.bf16 %v575_v63, %v569_v59  ;;  %v3049_v2 = vpack.c.bf16 %v623_v0, %v617_v60 }
 0x16d   : > { %v577_v3 = vpop.f32.mrf.mxu0  ;;  %v625_v4 = vpop.f32.mrf.mxu1 }
 0x16e   : > { %3101 = vst [vmem:[#allocation2 + $0x8] sm:$0xff] %v3029_v1   ;;  %3105 = vst [vmem:[#allocation2 + $0x28] sm:$0xff] %v3049_v2  }
 0x16f   : > { %735 = vst [vmem:[#allocation3 + $0x18] sm:$0xff] %v577_v3  ;;  %743 = vst [vmem:[#allocation3 + $0x38] sm:$0xff] %v625_v4  ;;  %v581_v5 = vpop.f32.mrf.mxu0  ;;  %v629_v6 = vpop.f32.mrf.mxu1 }
 0x171   : > { %v583_v7 = vpop.f32.mrf.mxu0  ;;  %v631_v8 = vpop.f32.mrf.mxu1 }
 0x172   : > { %736 = vst [vmem:[#allocation3 + $0x50] sm:$0xff] %v583_v7  ;;  %744 = vst [vmem:[#allocation3 + $0x60] sm:$0xff] %v631_v8 }
 0x173   : > { %v587_v9 = vpop.f32.mrf.mxu0  ;;  %v635_v10 = vpop.f32.mrf.mxu1 }
 0x174   : > { %v3034_v11 = vpack.c.bf16 %v587_v9, %v581_v5  ;;  %v3054_v12 = vpack.c.bf16 %v635_v10, %v629_v6 }
 0x175   : > { %v589_v13 = vpop.f32.mrf.mxu0  ;;  %v637_v14 = vpop.f32.mrf.mxu1 }
 0x176   : > { %3102 = vst [vmem:[#allocation2 + $0x10] sm:$0xff] %v3034_v11   ;;  %3106 = vst [vmem:[#allocation2 + $0x30] sm:$0xff] %v3054_v12  }
 0x177   : > { %737 = vst [vmem:[#allocation3 + $0x68] sm:$0xff] %v589_v13  ;;  %745 = vst [vmem:[#allocation3 + $0x70] sm:$0xff] %v637_v14  ;;  %v593_v15 = vpop.f32.mrf.mxu0  ;;  %v641_v16 = vpop.f32.mrf.mxu1 }
 0x179   : > { %v595_v17 = vpop.f32.mrf.mxu0  ;;  %v643_v18 = vpop.f32.mrf.mxu1 }
 0x17a   : > { %738 = vst [vmem:[#allocation3 + $0x8] sm:$0xff] %v595_v17  ;;  %746 = vst [vmem:[#allocation3 + $0x78] sm:$0xff] %v643_v18 }
 0x17b   : > { %v599_v19 = vpop.f32.mrf.mxu0  ;;  %v647_v20 = vpop.f32.mrf.mxu1 }
 0x17c   : > { %v3039_v21 = vpack.c.bf16 %v599_v19, %v593_v15  ;;  %v3059_v22 = vpack.c.bf16 %v647_v20, %v641_v16 }
 0x17d   : > { %v601_v23 = vpop.f32.mrf.mxu0  ;;  %v649_v24 = vpop.f32.mrf.mxu1 }
 0x17e   : > { %3103 = vst [vmem:[#allocation2 + $0x18] sm:$0xff] %v3039_v21   ;;  %3107 = vst [vmem:[#allocation2 + $0x38] sm:$0xff] %v3059_v22  }
 0x17f   : > { %739 = vst [vmem:[#allocation3 + $0x48] sm:$0xff] %v601_v23  ;;  %747 = vst [vmem:[#allocation3 + $0x28] sm:$0xff] %v649_v24 }
 0x180 PF: > { %p748_p0 = scmp.eq.s32.totalorder %s3827_s23, 1 }
 0x181   : > { %v800_v25 = vld [vmem:[#allocation18 + $0xf8] sm:$0xff] (%p748_p0)  ;;  %v799_v26 = vld [vmem:[#allocation18 + $0xf0] sm:$0xff] (%p748_p0)  ;;  %v798_v27 = vld [vmem:[#allocation18 + $0xe8] sm:$0xff] (%p748_p0)  ;;  %v3853_v29 = vmov (%p748_p0), 0.0   ;;  %v3854_v10 = vmov (%p748_p0), -3e+38  }
 0x182   : > { %752 = sbr.rel (!%p748_p0) target bundleno = 644 (0x284), region = 92  ;;  %801 = vmatprep.subr.mxu0 (%p748_p0), %v800_v25  ;;  %3386 = vmatprep.subr.mxu1 (%p748_p0), %v800_v25  ;;  %v797_v28 = vld [vmem:[#allocation18 + $0xe0] sm:$0xff] (%p748_p0)  ;;  %1058 = vst [vmem:[#allocation5] sm:$0xff] (%p748_p0), %v3853_v29  ;;  %v796_v30 = vld [vmem:[#allocation18 + $0xd8] sm:$0xff] (%p748_p0)  ;;  %v795_v31 = vld [vmem:[#allocation18 + $0xd0] sm:$0xff] (%p748_p0) }
 0x183   : > { %802 = vmatpush1.msra.mxu0 (%p748_p0), %v799_v26  ;;  %3402 = vmatpush1.msra.mxu1 (%p748_p0), %v799_v26  ;;  %v794_v32 = vld [vmem:[#allocation18 + $0xc8] sm:$0xff] (%p748_p0)  ;;  %v793_v33 = vld [vmem:[#allocation18 + $0xc0] sm:$0xff] (%p748_p0)  ;;  %v792_v34 = vld [vmem:[#allocation18 + $0xb8] sm:$0xff] (%p748_p0)  ;;  %1059 = vst [vmem:[#allocation6] sm:$0xff] (%p748_p0), %v3854_v10 }
 0x184   : > { %803 = vmatprep.subr.mxu0 (%p748_p0), %v798_v27  ;;  %3387 = vmatprep.subr.mxu1 (%p748_p0), %v798_v27  ;;  %v791_v35 = vld [vmem:[#allocation18 + $0xb0] sm:$0xff] (%p748_p0)  ;;  %v790_v36 = vld [vmem:[#allocation18 + $0xa8] sm:$0xff] (%p748_p0)  ;;  %v789_v37 = vld [vmem:[#allocation18 + $0xa0] sm:$0xff] (%p748_p0) }
 0x185   : > { %804 = vmatpush1.msra.mxu0 (%p748_p0), %v797_v28  ;;  %3403 = vmatpush1.msra.mxu1 (%p748_p0), %v797_v28  ;;  %v788_v38 = vld [vmem:[#allocation18 + $0x98] sm:$0xff] (%p748_p0)  ;;  %v787_v39 = vld [vmem:[#allocation18 + $0x90] sm:$0xff] (%p748_p0)  ;;  %v786_v40 = vld [vmem:[#allocation18 + $0x88] sm:$0xff] (%p748_p0) }
 0x186   : > { %805 = vmatprep.subr.mxu0 (%p748_p0), %v796_v30  ;;  %3388 = vmatprep.subr.mxu1 (%p748_p0), %v796_v30  ;;  %v785_v41 = vld [vmem:[#allocation18 + $0x80] sm:$0xff] (%p748_p0)  ;;  %v784_v42 = vld [vmem:[#allocation18 + $0x78] sm:$0xff] (%p748_p0)  ;;  %v783_v43 = vld [vmem:[#allocation18 + $0x70] sm:$0xff] (%p748_p0) }
 0x187   : > { %806 = vmatpush1.msra.mxu0 %v795_v31  ;;  %3404 = vmatpush1.msra.mxu1 %v795_v31  ;;  %v782_v44 = vld [vmem:[#allocation18 + $0x68] sm:$0xff]  ;;  %v781_v45 = vld [vmem:[#allocation18 + $0x60] sm:$0xff]  ;;  %v780_v46 = vld [vmem:[#allocation18 + $0x58] sm:$0xff] }
 0x188   : > { %807 = vmatprep.subr.mxu0 %v794_v32  ;;  %3389 = vmatprep.subr.mxu1 %v794_v32  ;;  %v779_v47 = vld [vmem:[#allocation18 + $0x50] sm:$0xff]  ;;  %v778_v48 = vld [vmem:[#allocation18 + $0x48] sm:$0xff]  ;;  %v777_v49 = vld [vmem:[#allocation18 + $0x40] sm:$0xff] }
 0x189   : > { %808 = vmatpush1.msra.mxu0 %v793_v33  ;;  %3405 = vmatpush1.msra.mxu1 %v793_v33  ;;  %v776_v50 = vld [vmem:[#allocation18 + $0x38] sm:$0xff]  ;;  %v775_v51 = vld [vmem:[#allocation18 + $0x30] sm:$0xff]  ;;  %v774_v52 = vld [vmem:[#allocation18 + $0x28] sm:$0xff] }
 0x18a   : > { %809 = vmatprep.subr.mxu0 %v792_v34  ;;  %3390 = vmatprep.subr.mxu1 %v792_v34  ;;  %v773_v53 = vld [vmem:[#allocation18 + $0x20] sm:$0xff]  ;;  %v772_v54 = vld [vmem:[#allocation18 + $0x18] sm:$0xff]  ;;  %v771_v55 = vld [vmem:[#allocation18 + $0x10] sm:$0xff] }
 0x18b   : > { %810 = vmatpush1.msra.mxu0 %v791_v35  ;;  %3406 = vmatpush1.msra.mxu1 %v791_v35  ;;  %v770_v56 = vld [vmem:[#allocation18 + $0x8] sm:$0xff]  ;;  %v769_v57 = vld [vmem:[#allocation18] sm:$0xff]  ;;  %v753_v58 = vld [vmem:[#allocation4 + $0x28] sm:$0xff] }
 0x18c   : > { %811 = vmatprep.subr.mxu0 %v790_v36  ;;  %3391 = vmatprep.subr.mxu1 %v790_v36  ;;  %v761_v59 = vld [vmem:[#allocation4 + $0x20] sm:$0xff]  ;;  %v754_v60 = vld [vmem:[#allocation4 + $0x68] sm:$0xff]  ;;  %v762_v61 = vld [vmem:[#allocation4 + $0x78] sm:$0xff] }
 0x18d   : > { %812 = vmatpush1.msra.mxu0 %v789_v37  ;;  %3407 = vmatpush1.msra.mxu1 %v789_v37  ;;  %v755_v62 = vld [vmem:[#allocation4 + $0x10] sm:$0xff]  ;;  %v763_v63 = vld [vmem:[#allocation4 + $0x18] sm:$0xff]  ;;  %v756_v0 = vld [vmem:[#allocation4 + $0x40] sm:$0xff] }
 0x18e   : > { %813 = vmatprep.subr.mxu0 %v788_v38  ;;  %3392 = vmatprep.subr.mxu1 %v788_v38  ;;  %v764_v1 = vld [vmem:[#allocation4 + $0x58] sm:$0xff]  ;;  %v757_v2 = vld [vmem:[#allocation4 + $0x48] sm:$0xff]  ;;  %v765_v3 = vld [vmem:[#allocation4] sm:$0xff] }
 0x18f   : > { %814 = vmatpush1.msra.mxu0 %v787_v39  ;;  %3408 = vmatpush1.msra.mxu1 %v787_v39  ;;  %v758_v4 = vld [vmem:[#allocation4 + $0x30] sm:$0xff]  ;;  %v766_v5 = vld [vmem:[#allocation4 + $0x8] sm:$0xff]  ;;  %v767_v7 = vld [vmem:[#allocation4 + $0x60] sm:$0xff] }
 0x190   : > { %815 = vmatprep.subr.mxu0 %v786_v40  ;;  %3393 = vmatprep.subr.mxu1 %v786_v40  ;;  %v759_v6 = vld [vmem:[#allocation4 + $0x70] sm:$0xff]  ;;  %v760_v8 = vld [vmem:[#allocation4 + $0x38] sm:$0xff] }
 0x191   : > { %816 = vmatpush1.msra.mxu0 %v785_v41  ;;  %3409 = vmatpush1.msra.mxu1 %v785_v41  ;;  %v768_v9 = vld [vmem:[#allocation4 + $0x50] sm:$0xff] }
 0x192   : > { %817 = vmatprep.subr.mxu0 %v784_v42  ;;  %3394 = vmatprep.subr.mxu1 %v784_v42 }
 0x193   : > { %818 = vmatpush1.msra.mxu0 %v783_v43  ;;  %3410 = vmatpush1.msra.mxu1 %v783_v43 }
 0x194   : > { %819 = vmatprep.subr.mxu0 %v782_v44  ;;  %3395 = vmatprep.subr.mxu1 %v782_v44 }
 0x195   : > { %820 = vmatpush1.msra.mxu0 %v781_v45  ;;  %3411 = vmatpush1.msra.mxu1 %v781_v45 }
 0x196   : > { %821 = vmatprep.subr.mxu0 %v780_v46  ;;  %3396 = vmatprep.subr.mxu1 %v780_v46 }
 0x197   : > { %822 = vmatpush1.msra.mxu0 %v779_v47  ;;  %3412 = vmatpush1.msra.mxu1 %v779_v47 }
 0x198   : > { %823 = vmatprep.subr.mxu0 %v778_v48  ;;  %3397 = vmatprep.subr.mxu1 %v778_v48 }
 0x199   : > { %824 = vmatpush1.msra.mxu0 %v777_v49  ;;  %3413 = vmatpush1.msra.mxu1 %v777_v49 }
 0x19a   : > { %825 = vmatprep.subr.mxu0 %v776_v50  ;;  %3398 = vmatprep.subr.mxu1 %v776_v50 }
 0x19b   : > { %826 = vmatpush1.msra.mxu0 %v775_v51  ;;  %3414 = vmatpush1.msra.mxu1 %v775_v51 }
 0x19c   : > { %827 = vmatprep.subr.mxu0 %v774_v52  ;;  %3399 = vmatprep.subr.mxu1 %v774_v52 }
 0x19d   : > { %828 = vmatpush1.msra.mxu0 %v773_v53  ;;  %3415 = vmatpush1.msra.mxu1 %v773_v53 }
 0x19e   : > { %829 = vmatprep.subr.mxu0 %v772_v54  ;;  %3400 = vmatprep.subr.mxu1 %v772_v54 }
 0x19f   : > { %830 = vmatpush1.msra.mxu0 %v771_v55  ;;  %3416 = vmatpush1.msra.mxu1 %v771_v55 }
 0x1a0   : > { %831 = vmatprep.subr.mxu0 %v770_v56  ;;  %3401 = vmatprep.subr.mxu1 %v770_v56 }
 0x1a1   : > { %832 = vmatpush1.msra.mxu0 %v769_v57  ;;  %3417 = vmatpush1.msra.mxu1 %v769_v57 }
 0x1a2   : > { %865 = vmatprep.mubr.f32.mxu0 %v3853_v29  ;;  %913 = vmatprep.mubr.f32.mxu1 %v3853_v29 }
 0x1a3   : > { %866 = vmatmul.mubr.f32.vlgmr.msra.gmra.mxu0 %v753_v58  ;;  %914 = vmatmul.mubr.f32.vlgmr.msra.gmra.mxu1 %v761_v59 }
 0x1a4   : > { %871 = vmatprep.mubr.f32.mxu0 %v3853_v29  ;;  %919 = vmatprep.mubr.f32.mxu1 %v3853_v29 }
 0x1a7   : > { %872 = vmatmul.mubr.f32.gmra.mxu0 %v754_v60  ;;  %920 = vmatmul.mubr.f32.gmra.mxu1 %v762_v61 }
 0x1a8   : > { %877 = vmatprep.mubr.f32.mxu0 %v3853_v29  ;;  %925 = vmatprep.mubr.f32.mxu1 %v3853_v29 }
 0x1ab   : > { %878 = vmatmul.mubr.f32.gmra.mxu0 %v755_v62  ;;  %926 = vmatmul.mubr.f32.gmra.mxu1 %v763_v63 }
 0x1ac   : > { %883 = vmatprep.mubr.f32.mxu0 %v3853_v29  ;;  %931 = vmatprep.mubr.f32.mxu1 %v3853_v29 }
 0x1af   : > { %884 = vmatmul.mubr.f32.gmra.mxu0 %v756_v0  ;;  %932 = vmatmul.mubr.f32.gmra.mxu1 %v764_v1 }
 0x1b0   : > { %889 = vmatprep.mubr.f32.mxu0 %v3853_v29  ;;  %937 = vmatprep.mubr.f32.mxu1 %v3853_v29 }
 0x1b3   : > { %890 = vmatmul.mubr.f32.gmra.mxu0 %v757_v2  ;;  %938 = vmatmul.mubr.f32.gmra.mxu1 %v765_v3 }
 0x1b4   : > { %895 = vmatprep.mubr.f32.mxu0 %v3853_v29  ;;  %943 = vmatprep.mubr.f32.mxu1 %v3853_v29 }
 0x1b7   : > { %896 = vmatmul.mubr.f32.gmra.mxu0 %v758_v4  ;;  %944 = vmatmul.mubr.f32.gmra.mxu1 %v766_v5 }
 0x1b8   : > { %901 = vmatprep.mubr.f32.mxu0 %v3853_v29  ;;  %949 = vmatprep.mubr.f32.mxu1 %v3853_v29 }
 0x1bb   : > { %902 = vmatmul.mubr.f32.gmra.mxu0 %v759_v6  ;;  %950 = vmatmul.mubr.f32.gmra.mxu1 %v767_v7 }
 0x1bc   : > { %907 = vmatprep.mubr.f32.mxu0 %v3853_v29  ;;  %955 = vmatprep.mubr.f32.mxu1 %v3853_v29 }
 0x1bf   : > { %908 = vmatmul.mubr.f32.gmra.mxu0 %v760_v8  ;;  %956 = vmatmul.mubr.f32.gmra.mxu1 %v768_v9 }
 0x263   : > { %v867_v11 = vpop.f32.mrf.mxu0  ;;  %v915_v12 = vpop.f32.mrf.mxu1 }
 0x265   : > { %v869_v13 = vpop.f32.mrf.mxu0  ;;  %v917_v14 = vpop.f32.mrf.mxu1 }
 0x266   : > { %1042 = vst [vmem:[#allocation3 + $0x30] sm:$0xff] %v869_v13  ;;  %1050 = vst [vmem:[#allocation3 + $0x40] sm:$0xff] %v917_v14 }
 0x267   : > { %v873_v15 = vpop.f32.mrf.mxu0  ;;  %v921_v16 = vpop.f32.mrf.mxu1 }
 0x268   : > { %v3064_v17 = vpack.c.bf16 %v873_v15, %v867_v11  ;;  %v3084_v18 = vpack.c.bf16 %v921_v16, %v915_v12 }
 0x269   : > { %v875_v19 = vpop.f32.mrf.mxu0  ;;  %v923_v20 = vpop.f32.mrf.mxu1 }
 0x26a   : > { %3065 = vst [vmem:[#allocation2] sm:$0xff] %v3064_v17   ;;  %3111 = vst [vmem:[#allocation2 + $0x20] sm:$0xff] %v3084_v18  }
 0x26b   : > { %1043 = vst [vmem:[#allocation3] sm:$0xff] %v875_v19  ;;  %1051 = vst [vmem:[#allocation3 + $0x20] sm:$0xff] %v923_v20  ;;  %v879_v21 = vpop.f32.mrf.mxu0  ;;  %v927_v22 = vpop.f32.mrf.mxu1 }
 0x26d   : > { %v881_v23 = vpop.f32.mrf.mxu0  ;;  %v929_v24 = vpop.f32.mrf.mxu1 }
 0x26e   : > { %1044 = vst [vmem:[#allocation3 + $0x58] sm:$0xff] %v881_v23  ;;  %1052 = vst [vmem:[#allocation3 + $0x10] sm:$0xff] %v929_v24 }
 0x26f   : > { %v885_v25 = vpop.f32.mrf.mxu0  ;;  %v933_v26 = vpop.f32.mrf.mxu1 }
 0x270   : > { %v3069_v27 = vpack.c.bf16 %v885_v25, %v879_v21  ;;  %v3089_v28 = vpack.c.bf16 %v933_v26, %v927_v22 }
 0x271   : > { %v887_v29 = vpop.f32.mrf.mxu0  ;;  %v935_v30 = vpop.f32.mrf.mxu1 }
 0x272   : > { %3108 = vst [vmem:[#allocation2 + $0x8] sm:$0xff] %v3069_v27   ;;  %3112 = vst [vmem:[#allocation2 + $0x28] sm:$0xff] %v3089_v28  }
 0x273   : > { %1045 = vst [vmem:[#allocation3 + $0x18] sm:$0xff] %v887_v29  ;;  %1053 = vst [vmem:[#allocation3 + $0x38] sm:$0xff] %v935_v30  ;;  %v891_v31 = vpop.f32.mrf.mxu0  ;;  %v939_v32 = vpop.f32.mrf.mxu1 }
 0x275   : > { %v893_v33 = vpop.f32.mrf.mxu0  ;;  %v941_v34 = vpop.f32.mrf.mxu1 }
 0x276   : > { %1046 = vst [vmem:[#allocation3 + $0x50] sm:$0xff] %v893_v33  ;;  %1054 = vst [vmem:[#allocation3 + $0x60] sm:$0xff] %v941_v34 }
 0x277   : > { %v897_v35 = vpop.f32.mrf.mxu0  ;;  %v945_v36 = vpop.f32.mrf.mxu1 }
 0x278   : > { %v3074_v37 = vpack.c.bf16 %v897_v35, %v891_v31  ;;  %v3094_v38 = vpack.c.bf16 %v945_v36, %v939_v32 }
 0x279   : > { %v899_v39 = vpop.f32.mrf.mxu0  ;;  %v947_v40 = vpop.f32.mrf.mxu1 }
 0x27a   : > { %3109 = vst [vmem:[#allocation2 + $0x10] sm:$0xff] %v3074_v37   ;;  %3113 = vst [vmem:[#allocation2 + $0x30] sm:$0xff] %v3094_v38  }
 0x27b   : > { %1047 = vst [vmem:[#allocation3 + $0x68] sm:$0xff] %v899_v39  ;;  %1055 = vst [vmem:[#allocation3 + $0x70] sm:$0xff] %v947_v40  ;;  %v903_v41 = vpop.f32.mrf.mxu0  ;;  %v951_v42 = vpop.f32.mrf.mxu1 }
 0x27d   : > { %v905_v43 = vpop.f32.mrf.mxu0  ;;  %v953_v44 = vpop.f32.mrf.mxu1 }
 0x27e   : > { %1048 = vst [vmem:[#allocation3 + $0x8] sm:$0xff] %v905_v43  ;;  %1056 = vst [vmem:[#allocation3 + $0x78] sm:$0xff] %v953_v44 }
 0x27f   : > { %v909_v45 = vpop.f32.mrf.mxu0  ;;  %v957_v46 = vpop.f32.mrf.mxu1 }
 0x280   : > { %v3079_v47 = vpack.c.bf16 %v909_v45, %v903_v41  ;;  %v3099_v48 = vpack.c.bf16 %v957_v46, %v951_v42 }
 0x281   : > { %v911_v49 = vpop.f32.mrf.mxu0  ;;  %v959_v50 = vpop.f32.mrf.mxu1 }
 0x282   : > { %3110 = vst [vmem:[#allocation2 + $0x18] sm:$0xff] %v3079_v47   ;;  %3114 = vst [vmem:[#allocation2 + $0x38] sm:$0xff] %v3099_v48  }
 0x283   : > { %1049 = vst [vmem:[#allocation3 + $0x48] sm:$0xff] %v911_v49  ;;  %1057 = vst [vmem:[#allocation3 + $0x28] sm:$0xff] %v959_v50 }
 0x284 PF: > { %v3550_v52 = vld [vmem:[#allocation2 + $0x30] sm:$0xff]   ;;  %v3551_v53 = vld [vmem:[#allocation2 + $0x28] sm:$0xff]   ;;  %v3552_v54 = vld [vmem:[#allocation2 + $0x20] sm:$0xff]   ;;  %s1110_s27 = scalar_select %p437_p5, 1, 0  ;;  %v1310_v3 = vlaneseq }
 0x285   : > { %v3557_v55 = vld [vmem:[#allocation10] sm:$0xff]   ;;  %v3555_v59 = vld [vmem:[#allocation2 + $0x8] sm:$0xff]   ;;  %v3556_v60 = vld [vmem:[#allocation2] sm:$0xff]   ;;  %p2966_p1 = scmp.ne.s32.totalorder %s3827_s23, 0 }
 0x286   : > { %v3558_v56 = vld [vmem:[#allocation10 + $0x20] sm:$0xff]   ;;  %3233 = vmatprep.mubr.bf16.mxu0 %v3557_v55  ;;  %v3559_v61 = vld [vmem:[#allocation10 + $0x8] sm:$0xff]   ;;  %v3561_v63 = vld [vmem:[#allocation10 + $0x10] sm:$0xff]   ;;  %v1111_v5 = vstv %s1110_s27  ;;  %v4090_v6 = vshrl.u32 %v1310_v3, 7 }
 0x287   : > { %3241 = vmatprep.mubr.bf16.mxu1 %v3558_v56  ;;  %v3554_v58 = vld [vmem:[#allocation2 + $0x10] sm:$0xff]   ;;  %v3560_v62 = vld [vmem:[#allocation10 + $0x28] sm:$0xff]   ;;  %v3562_v0 = vld [vmem:[#allocation10 + $0x30] sm:$0xff]   ;;  %vm1112_vm0 = vcmp.eq.s32.totalorder %v1111_v5, 1 }
 0x288   : > { %v3563_v1 = vld [vmem:[#allocation10 + $0x18] sm:$0xff]   ;;  %v4087_v4 = vld [vmem:[%s6172_s10] sm:$0xff]  ;;  %v1312_v8 = vsub.s32 0, %v4090_v6  ;;  %v1103_v11 = vld [vmem:[#allocation3 + $0x10] sm:$0xff] }
 0x289   : > { %v3549_v51 = vld [vmem:[#allocation2 + $0x38] sm:$0xff]   ;;  %v3564_v2 = vld [vmem:[#allocation10 + $0x38] sm:$0xff]   ;;  %v1114_v7 = vrot.slane %v4087_v4, 1  ;;  %v1093_v15 = vld [vmem:[#allocation3 + $0x30] sm:$0xff] }
 0x28a   : > { %3217 = vmatprep.subr.bf16.mxu0 %v3549_v51  ;;  %3418 = vmatprep.subr.bf16.mxu1 %v3549_v51  ;;  %v3553_v57 = vld [vmem:[#allocation2 + $0x18] sm:$0xff]   ;;  %v1101_v16 = vld [vmem:[#allocation3 + $0x40] sm:$0xff]  ;;  %v1099_v37 = vld [vmem:[#allocation3 + $0x8] sm:$0xff] }
 0x28b   : > { %3218 = vmatpush3.bf16.msra.mxu0 %v3549_v51  ;;  %3426 = vmatpush3.bf16.msra.mxu1 %v3549_v51  ;;  %v1116_v9 = vsel %vm1112_vm0, %v4087_v4, %v1114_v7  ;;  %v1095_v10 = vld [vmem:[#allocation3 + $0x58] sm:$0xff]  ;;  %v1094_v29 = vld [vmem:[#allocation3] sm:$0xff]  ;;  %v1097_v45 = vld [vmem:[#allocation3 + $0x50] sm:$0xff] }
 0x28c   : > { %3219 = vmatprep.subr.bf16.mxu0 %v3550_v52  ;;  %3419 = vmatprep.subr.bf16.mxu1 %v3550_v52  ;;  %v1313_v12 = vrot.slane %v1116_v9, %v1312_v8  ;;  %v1096_v21 = vld [vmem:[#allocation3 + $0x18] sm:$0xff]  ;;  %v1102_v30 = vld [vmem:[#allocation3 + $0x20] sm:$0xff] }
 0x28d   : > { %v1104_v22 = vld [vmem:[#allocation3 + $0x38] sm:$0xff]  ;;  %v1105_v46 = vld [vmem:[#allocation3 + $0x60] sm:$0xff] }
 0x28e   : > { %v1107_v38 = vld [vmem:[#allocation3 + $0x78] sm:$0xff] }
 0x28f   : > { %3220 = vmatpush3.bf16.msra.mxu0 %v3550_v52  ;;  %3427 = vmatpush3.bf16.msra.mxu1 %v3550_v52 }
 0x290   : > { %3221 = vmatprep.subr.bf16.mxu0 %v3551_v53  ;;  %3420 = vmatprep.subr.bf16.mxu1 %v3551_v53 }
 0x293   : > { %3222 = vmatpush3.bf16.msra.mxu0 %v3551_v53  ;;  %3428 = vmatpush3.bf16.msra.mxu1 %v3551_v53  ;;  %v1100_v53 = vld [vmem:[#allocation3 + $0x48] sm:$0xff] }
 0x294   : > { %3223 = vmatprep.subr.bf16.mxu0 %v3552_v54  ;;  %3421 = vmatprep.subr.bf16.mxu1 %v3552_v54 }
 0x297   : > { %3224 = vmatpush3.bf16.msra.mxu0 %v3552_v54  ;;  %3429 = vmatpush3.bf16.msra.mxu1 %v3552_v54  ;;  %v1108_v54 = vld [vmem:[#allocation3 + $0x28] sm:$0xff] }
 0x298   : > { %3225 = vmatprep.subr.bf16.mxu0 %v3553_v57  ;;  %3422 = vmatprep.subr.bf16.mxu1 %v3553_v57 }
 0x29b   : > { %3226 = vmatpush3.bf16.msra.mxu0 %v3553_v57  ;;  %3430 = vmatpush3.bf16.msra.mxu1 %v3553_v57 }
 0x29c   : > { %3227 = vmatprep.subr.bf16.mxu0 %v3554_v58  ;;  %3423 = vmatprep.subr.bf16.mxu1 %v3554_v58 }
 0x29f   : > { %3228 = vmatpush3.bf16.msra.mxu0 %v3554_v58  ;;  %3431 = vmatpush3.bf16.msra.mxu1 %v3554_v58 }
 0x2a0   : > { %3229 = vmatprep.subr.bf16.mxu0 %v3555_v59  ;;  %3424 = vmatprep.subr.bf16.mxu1 %v3555_v59 }
 0x2a3   : > { %3230 = vmatpush3.bf16.msra.mxu0 %v3555_v59  ;;  %3432 = vmatpush3.bf16.msra.mxu1 %v3555_v59 }
 0x2a4   : > { %3231 = vmatprep.subr.bf16.mxu0 %v3556_v60  ;;  %3425 = vmatprep.subr.bf16.mxu1 %v3556_v60 }
 0x2a7   : > { %3232 = vmatpush3.bf16.msra.mxu0 %v3556_v60  ;;  %3433 = vmatpush3.bf16.msra.mxu1 %v3556_v60 }
 0x2aa   : > { %3234 = vmatmul.mubr.bf16.vlgmr.msra.gmra.mxu0 %v3559_v61  ;;  %3242 = vmatmul.mubr.bf16.vlgmr.msra.gmra.mxu1 %v3560_v62  ;;  %v1098_v61 = vld [vmem:[#allocation3 + $0x68] sm:$0xff]  ;;  %v1106_v62 = vld [vmem:[#allocation3 + $0x70] sm:$0xff] }
 0x2ab   : > { %3237 = vmatprep.mubr.bf16.mxu0 %v3561_v63  ;;  %3245 = vmatprep.mubr.bf16.mxu1 %v3562_v0 }
 0x2b2   : > { %3238 = vmatmul.mubr.bf16.gmra.mxu0 %v3563_v1  ;;  %3246 = vmatmul.mubr.bf16.gmra.mxu1 %v3564_v2 }
 0x36a   : > { %v3235_v13 = vpop.f32.mrf.mxu0  ;;  %v3243_v14 = vpop.f32.mrf.mxu1 }
 0x36b   : > { %v1256_v17 = vadd.f32 %v3235_v13, %v1095_v10  ;;  %v1288_v18 = vadd.f32 %v3243_v14, %v1103_v11 }
 0x36c   : > { %v1247_v19 = vpop.f32.mrf.mxu0  ;;  %v1279_v20 = vpop.f32.mrf.mxu1 }
 0x36d   : > { %v4095_v23 = vadd.f32 %v1313_v12, %v1256_v17  ;;  %v4097_v24 = vadd.f32 %v1313_v12, %v1288_v18  ;;  %v1248_v25 = vadd.f32 %v1247_v19, %v1093_v15  ;;  %v1280_v26 = vadd.f32 %v1279_v20, %v1101_v16 }
 0x36e   : > { %v3236_v27 = vpop.f32.mrf.mxu0  ;;  %v3244_v28 = vpop.f32.mrf.mxu1 }
 0x36f   : > { %v4099_v31 = vadd.f32 %v1313_v12, %v1248_v25  ;;  %v4101_v32 = vadd.f32 %v1313_v12, %v1280_v26  ;;  %v1259_v33 = vadd.f32 %v3236_v27, %v1096_v21  ;;  %v1291_v34 = vadd.f32 %v3244_v28, %v1104_v22 }
 0x370   : > { %v1250_v35 = vpop.f32.mrf.mxu0  ;;  %v1282_v36 = vpop.f32.mrf.mxu1 }
 0x371   : > { %v4103_v39 = vadd.f32 %v1313_v12, %v1259_v33  ;;  %v4105_v40 = vadd.f32 %v1313_v12, %v1291_v34  ;;  %v1251_v41 = vadd.f32 %v1250_v35, %v1094_v29  ;;  %v1283_v42 = vadd.f32 %v1282_v36, %v1102_v30 }
 0x372   : > { %v3239_v43 = vpop.f32.mrf.mxu0  ;;  %v3247_v44 = vpop.f32.mrf.mxu1 }
 0x373   : > { %v4107_v47 = vadd.f32 %v1313_v12, %v1251_v41  ;;  %v4109_v48 = vadd.f32 %v1313_v12, %v1283_v42  ;;  %v1272_v49 = vadd.f32 %v3239_v43, %v1099_v37  ;;  %v1304_v50 = vadd.f32 %v3247_v44, %v1107_v38 }
 0x374   : > { %v1263_v51 = vpop.f32.mrf.mxu0  ;;  %v1295_v52 = vpop.f32.mrf.mxu1 }
 0x375   : > { %v4111_v55 = vadd.f32 %v1313_v12, %v1272_v49  ;;  %v4113_v56 = vadd.f32 %v1313_v12, %v1304_v50  ;;  %v1264_v57 = vadd.f32 %v1263_v51, %v1097_v45  ;;  %v1296_v58 = vadd.f32 %v1295_v52, %v1105_v46 }
 0x376   : > { %v3240_v59 = vpop.f32.mrf.mxu0  ;;  %v3248_v60 = vpop.f32.mrf.mxu1 }
 0x377   : > { %v4115_v63 = vadd.f32 %v1313_v12, %v1264_v57  ;;  %v4117_v0 = vadd.f32 %v1313_v12, %v1296_v58  ;;  %v1275_v1 = vadd.f32 %v3240_v59, %v1100_v53  ;;  %v1307_v2 = vadd.f32 %v3248_v60, %v1108_v54  ;;  %1332 = sbr.rel (%p2966_p1) target bundleno = 902 (0x386), region = 96 }
 0x378   : > { %v1266_v5 = vpop.f32.mrf.mxu0  ;;  %v1298_v7 = vpop.f32.mrf.mxu1 }
 0x379   : > { %v4119_v8 = vadd.f32 %v1313_v12, %v1275_v1  ;;  %v4121_v9 = vadd.f32 %v1313_v12, %v1307_v2  ;;  %v1267_v10 = vadd.f32 %v1266_v5, %v1098_v61  ;;  %v1299_v11 = vadd.f32 %v1298_v7, %v1106_v62 }
 0x37b   : > { %v4123_v13 = vadd.f32 %v1313_v12, %v1267_v10  ;;  %v4125_v14 = vadd.f32 %v1313_v12, %v1299_v11 }
 0x37c   : > { %v1333_v15 = vmax.f32 %v4099_v31, 0.0  ;;  %v1334_v16 = vmax.f32 %v4107_v47, 0.0  ;;  %v1335_v17 = vmax.f32 %v4095_v23, 0.0  ;;  %v1336_v18 = vmax.f32 %v4103_v39, 0.0 }
 0x37d   : > { %v1337_v19 = vmax.f32 %v4115_v63, 0.0  ;;  %v1338_v20 = vmax.f32 %v4123_v13, 0.0  ;;  %v1339_v21 = vmax.f32 %v4111_v55, 0.0  ;;  %v1340_v12 = vmax.f32 %v4119_v8, 0.0 }
 0x37e   : > { %1350 = vst [vmem:[#allocation4 + $0x28] sm:$0xff] %v1333_v15  ;;  %1351 = vst [vmem:[#allocation4 + $0x68] sm:$0xff] %v1334_v16  ;;  %v1341_v22 = vmax.f32 %v4101_v32, 0.0  ;;  %v1342_v25 = vmax.f32 %v4109_v48, 0.0  ;;  %v1343_v26 = vmax.f32 %v4097_v24, 0.0  ;;  %v1344_v27 = vmax.f32 %v4105_v40, 0.0 }
 0x37f   : > { %1352 = vst [vmem:[#allocation4 + $0x10] sm:$0xff] %v1335_v17  ;;  %1353 = vst [vmem:[#allocation4 + $0x40] sm:$0xff] %v1336_v18  ;;  %v1345_v28 = vmax.f32 %v4117_v0, 0.0  ;;  %v1346_v29 = vmax.f32 %v4125_v14, 0.0  ;;  %v1347_v30 = vmax.f32 %v4113_v56, 0.0  ;;  %v1348_v33 = vmax.f32 %v4121_v9, 0.0 }
 0x380   : > { %1354 = vst [vmem:[#allocation4 + $0x48] sm:$0xff] %v1337_v19  ;;  %1355 = vst [vmem:[#allocation4 + $0x30] sm:$0xff] %v1338_v20 }
 0x381   : > { %1356 = vst [vmem:[#allocation4 + $0x70] sm:$0xff] %v1339_v21  ;;  %1357 = vst [vmem:[#allocation4 + $0x38] sm:$0xff] %v1340_v12 }
 0x382   : > { %1358 = vst [vmem:[#allocation4 + $0x20] sm:$0xff] %v1341_v22  ;;  %1359 = vst [vmem:[#allocation4 + $0x78] sm:$0xff] %v1342_v25 }
 0x383   : > { %1360 = vst [vmem:[#allocation4 + $0x18] sm:$0xff] %v1343_v26  ;;  %1361 = vst [vmem:[#allocation4 + $0x58] sm:$0xff] %v1344_v27 }
 0x384   : > { %1362 = vst [vmem:[#allocation4] sm:$0xff] %v1345_v28  ;;  %1363 = vst [vmem:[#allocation4 + $0x8] sm:$0xff] %v1346_v29 }
 0x385   : > { %1364 = vst [vmem:[#allocation4 + $0x60] sm:$0xff] %v1347_v30  ;;  %1365 = vst [vmem:[#allocation4 + $0x50] sm:$0xff] %v1348_v33 }
 0x386 PF: > { %p2967_p4 = scmp.ne.s32.totalorder %s3827_s23, 1 }
 0x387   : > { %s1477_s23 = sld [smem:[#allocation8]] (!%p2967_p4) }
 0x388   : > { %1368 = sbr.rel (%p2967_p4) target bundleno = 1853 (0x73d), region = 100  ;;  %s1478_s15 = sld [smem:[#allocation9]] (!%p2967_p4) }
 0x389   : > { %s4197_s22 = sld [smem:[#allocation8 + $0x1]] (!%p2967_p4) }
 0x38a   : > { %s4202_s13 = sld [smem:[#allocation9 + $0x1]] (!%p2967_p4) }
 0x38b   : > { %s4440_s26 = sld [smem:[#allocation8 + $0x2]] (!%p2967_p4) }
 0x38c   : > { %s4528_s18 = sld [smem:[#allocation9 + $0x2]] (!%p2967_p4) }
 0x38d   : > { %v2510_v34 = vld [vmem:[#allocation19 + $0xf8] sm:$0xff]  ;;  %v3855_v35 = vmov 0.0   ;;  %vm6181_vm1 = vmmov 0   ;;  %v2509_v37 = vld [vmem:[#allocation19 + $0xf0] sm:$0xff]  ;;  %v2508_v41 = vld [vmem:[#allocation19 + $0xe8] sm:$0xff]  ;;  %v4193_v17 = vadd.s32 8, %v4090_v6  ;;  %v4195_v18 = vstv %s1477_s23 }
 0x38e   : > { %3249 = vmatprep.subr.mxu0 %v3855_v35  ;;  %3281 = vmatprep.mubr.msk.f32.mxu0 %vm6181_vm1, %v3855_v35  ;;  %v2494_v36 = vld [vmem:[#allocation19 + $0x78] sm:$0xff]  ;;  %v2493_v38 = vld [vmem:[#allocation19 + $0x70] sm:$0xff]  ;;  %v2492_v42 = vld [vmem:[#allocation19 + $0x68] sm:$0xff]  ;;  %v4200_v19 = vadd.s32 16, %v4090_v6  ;;  %s1479_s0 = sadd.s32 %s1478_s15, %s1477_s23  ;;  %v4205_v20 = vadd.s32 24, %v4090_v6  ;;  %v4208_v21 = vadd.s32 32, %v4090_v6  ;;  %vm1481_vm2 = vcmp.ge.s32.totalorder %v4090_v6, %v4195_v18 }
 0x38f   : > { %3250 = vmatpush3.msra.mxu0 %v4121_v9  ;;  %3148 = vmatprep.subr.mxu1 %v2510_v34  ;;  %v2507_v43 = vld [vmem:[#allocation19 + $0xe0] sm:$0xff]  ;;  %v2506_v45 = vld [vmem:[#allocation19 + $0xd8] sm:$0xff]  ;;  %v2505_v49 = vld [vmem:[#allocation19 + $0xd0] sm:$0xff]  ;;  %v4211_v12 = vadd.s32 40, %v4090_v6  ;;  %v4214_v22 = vadd.s32 48, %v4090_v6  ;;  %v4217_v25 = vadd.s32 56, %v4090_v6  ;;  %vm1482_vm3 = vcmp.ge.s32.totalorder %v4193_v17, %v4195_v18 }
 0x390   : > { %3251 = vmatprep.subr.mxu0 %v3855_v35  ;;  %3149 = vmatpush3.msra.mxu1 %v2494_v36  ;;  %v2491_v44 = vld [vmem:[#allocation19 + $0x60] sm:$0xff]  ;;  %v2490_v46 = vld [vmem:[#allocation19 + $0x58] sm:$0xff]  ;;  %v2489_v50 = vld [vmem:[#allocation19 + $0x50] sm:$0xff]  ;;  %v4220_v26 = vadd.s32 64, %v4090_v6  ;;  %v4223_v27 = vadd.s32 72, %v4090_v6  ;;  %v4228_v28 = vadd.s32 80, %v4090_v6  ;;  %v4235_v30 = vstv %s1479_s0  ;;  %s1601_s21 = sadd.s32 %s4202_s13, %s4197_s22 }
 0x391   : > { %3252 = vmatpush3.msra.mxu0 %v4113_v56  ;;  %3150 = vmatprep.subr.mxu1 %v2509_v37  ;;  %v2504_v51 = vld [vmem:[#allocation19 + $0xc8] sm:$0xff]  ;;  %v2503_v53 = vld [vmem:[#allocation19 + $0xc0] sm:$0xff]  ;;  %v2502_v57 = vld [vmem:[#allocation19 + $0xb8] sm:$0xff]  ;;  %v4231_v29 = vadd.s32 88, %v4090_v6  ;;  %vm1483_vm4 = vcmp.ge.s32.totalorder %v4200_v19, %v4195_v18  ;;  %vm1498_vm5 = vcmp.lt.s32.totalorder %v4090_v6, %v4235_v30  ;;  %vm1499_vm6 = vcmp.lt.s32.totalorder %v4193_v17, %v4235_v30  ;;  %s4866_s14 = sld [smem:[#allocation8 + $0x3]] }
 0x392   : > { %3253 = vmatprep.subr.mxu0 %v3855_v35  ;;  %3151 = vmatpush3.msra.mxu1 %v2493_v38  ;;  %v2488_v52 = vld [vmem:[#allocation19 + $0x48] sm:$0xff]  ;;  %v2487_v54 = vld [vmem:[#allocation19 + $0x40] sm:$0xff]  ;;  %v2486_v58 = vld [vmem:[#allocation19 + $0x38] sm:$0xff]  ;;  %vm1500_vm7 = vcmp.lt.s32.totalorder %v4200_v19, %v4235_v30  ;;  %v4246_v33 = vadd.s32 96, %v4090_v6  ;;  %v4249_v34 = vadd.s32 104, %v4090_v6  ;;  %vm1484_vm8 = vcmp.ge.s32.totalorder %v4205_v20, %v4195_v18  ;;  %s1723_s29 = sadd.s32 %s4528_s18, %s4440_s26  ;;  %s4900_s16 = sld [smem:[#allocation9 + $0x3]] }
 0x393   : > { %3254 = vmatpush3.msra.mxu0 %v4125_v14  ;;  %3152 = vmatprep.subr.mxu1 %v2508_v41  ;;  %v2501_v59 = vld [vmem:[#allocation19 + $0xb0] sm:$0xff]  ;;  %v1370_v60 = vld [vmem:[#allocation15] sm:$0xff]  ;;  %v2524_v1 = vld [vmem:[#allocation19 + $0x168] sm:$0xff]  ;;  %vm1501_vm9 = vcmp.lt.s32.totalorder %v4205_v20, %v4235_v30  ;;  %v4260_v37 = vadd.s32 112, %v4090_v6  ;;  %v4263_v38 = vadd.s32 120, %v4090_v6  ;;  %vm1485_vm11 = vcmp.ge.s32.totalorder %v4208_v21, %v4195_v18  ;;  %s5067_s20 = sld [smem:[#allocation8 + $0x4]] }
 0x394   : > { %3255 = vmatprep.subr.mxu0 %v3855_v35  ;;  %3153 = vmatpush3.msra.mxu1 %v2492_v42  ;;  %v2526_v61 = vld [vmem:[#allocation19 + $0x178] sm:$0xff]  ;;  %v2525_v62 = vld [vmem:[#allocation19 + $0x170] sm:$0xff]  ;;  %v2523_v2 = vld [vmem:[#allocation19 + $0x160] sm:$0xff]  ;;  %vm1502_vm12 = vcmp.lt.s32.totalorder %v4208_v21, %v4235_v30  ;;  %vm1486_vm14 = vcmp.ge.s32.totalorder %v4211_v12, %v4195_v18  ;;  %vm1487_vm15 = vcmp.ge.s32.totalorder %v4214_v22, %v4195_v18  ;;  %s5088_s1 = sld [smem:[#allocation9 + $0x4]] }
 0x395   : > { %3256 = vmatpush3.msra.mxu0 %v4117_v0  ;;  %3154 = vmatprep.subr.mxu1 %v2507_v43  ;;  %v2522_v5 = vld [vmem:[#allocation19 + $0x158] sm:$0xff]  ;;  %v2521_v7 = vld [vmem:[#allocation19 + $0x150] sm:$0xff]  ;;  %v2520_v10 = vld [vmem:[#allocation19 + $0x148] sm:$0xff]  ;;  %vm1503_vm0 = vcmp.lt.s32.totalorder %v4211_v12, %v4235_v30  ;;  %s5288_s27 = sld [smem:[#allocation8 + $0x5]] }
 0x396   : > { %3257 = vmatprep.subr.mxu0 %v3855_v35  ;;  %3155 = vmatpush3.msra.mxu1 %v2491_v44  ;;  %v2519_v11 = vld [vmem:[#allocation19 + $0x140] sm:$0xff]  ;;  %v2518_v15 = vld [vmem:[#allocation19 + $0x138] sm:$0xff]  ;;  %v2517_v16 = vld [vmem:[#allocation19 + $0x130] sm:$0xff]  ;;  %s5328_s28 = sld [smem:[#allocation9 + $0x5]] }
 0x397   : > { %3258 = vmatpush3.msra.mxu0 %v4105_v40  ;;  %3156 = vmatprep.subr.mxu1 %v2506_v45  ;;  %vm4255_vm10 = vmand %vm1481_vm2, %vm1498_vm5  ;;  %v2485_v36 = vld [vmem:[#allocation19 + $0x30] sm:$0xff]  ;;  %v2516_v41 = vld [vmem:[#allocation19 + $0x128] sm:$0xff]  ;;  %s5529_s23 = sld [smem:[#allocation8 + $0x6]] }
 0x398   : > { %3259 = vmatprep.subr.mxu0 %v3855_v35  ;;  %3157 = vmatpush3.msra.mxu1 %v2490_v46  ;;  %vm4272_vm13 = vmand %vm1482_vm3, %vm1499_vm6  ;;  %vm1505_vm3 = vcmp.lt.s32.totalorder %v4217_v25, %v4235_v30  ;;  %vm1508_vm6 = vcmp.lt.s32.totalorder %v4228_v28, %v4235_v30  ;;  %v2500_v44 = vld [vmem:[#allocation19 + $0xa8] sm:$0xff]  ;;  %v2479_v45 = vld [vmem:[#allocation19] sm:$0xff]  ;;  %s1845_s19 = sadd.s32 %s4900_s16, %s4866_s14  ;;  %s5584_s15 = sld [smem:[#allocation9 + $0x6]] }
 0x399   : > { %3260 = vmatpush3.msra.mxu0 %v4097_v24  ;;  %3158 = vmatprep.subr.mxu1 %v2505_v49  ;;  %vm4285_vm2 = vmand %vm1483_vm4, %vm1500_vm7  ;;  %vm1506_vm7 = vcmp.lt.s32.totalorder %v4220_v26, %v4235_v30  ;;  %v4360_v49 = vstv %s4197_s22  ;;  %s5722_s0 = sld [smem:[#allocation8 + $0x7]] }
 0x39a   : > { %3261 = vmatprep.subr.mxu0 %v3855_v35  ;;  %3159 = vmatpush3.msra.mxu1 %v2489_v50  ;;  %vm4303_vm4 = vmand %vm1484_vm8, %vm1501_vm9  ;;  %v4362_v50 = vstv %s1601_s21  ;;  %vm6207_vm9 = vcmp.ge.s32.totalorder %v4220_v26, %v4195_v18  ;;  %s1967_s17 = sadd.s32 %s5088_s1, %s5067_s20  ;;  %s5786_s13 = sld [smem:[#allocation9 + $0x7]] }
 0x39b   : > { %3262 = vmatpush3.msra.mxu0 %v4109_v48  ;;  %3160 = vmatprep.subr.mxu1 %v2504_v51  ;;  %vm4323_vm8 = vmand %vm1485_vm11, %vm1502_vm12  ;;  %vm1507_vm12 = vcmp.lt.s32.totalorder %v4223_v27, %v4235_v30 }
 0x39c   : > { %3263 = vmatprep.subr.mxu0 %v3855_v35  ;;  %3161 = vmatpush3.msra.mxu1 %v2488_v52  ;;  %vm4341_vm11 = vmand %vm1486_vm14, %vm1503_vm0  ;;  %v1562_v52 = vsel %vm4255_vm10, %v4099_v31, -3e+38  ;;  %vm1512_vm0 = vcmp.lt.s32.totalorder %v4260_v37, %v4235_v30  ;;  %vm1513_vm10 = vcmp.lt.s32.totalorder %v4263_v38, %v4235_v30  ;;  %s2089_s12 = sadd.s32 %s5328_s28, %s5288_s27 }
 0x39d   : > { %3264 = vmatpush3.msra.mxu0 %v4101_v32  ;;  %3162 = vmatprep.subr.mxu1 %v2503_v53  ;;  %vm4388_vm14 = vmand %vm6207_vm9, %vm1506_vm7  ;;  %v2515_v53 = vld [vmem:[#allocation19 + $0x120] sm:$0xff] }
 0x39e   : > { %3265 = vmatprep.subr.mxu0 %v3855_v35  ;;  %3163 = vmatpush3.msra.mxu1 %v2487_v54  ;;  %v1563_v54 = vsel %vm4272_vm13, %v4107_v47, -3e+38  ;;  %vm1603_vm13 = vcmp.ge.s32.totalorder %v4090_v6, %v4360_v49  ;;  %s2211_s22 = sadd.s32 %s5584_s15, %s5529_s23 }
 0x39f   : > { %3266 = vmatpush3.msra.mxu0 %v4119_v8  ;;  %3164 = vmatprep.subr.mxu1 %v2502_v57  ;;  %v1566_v57 = vsel %vm4323_vm8, %v4115_v63, -3e+38  ;;  %vm6213_vm8 = vcmp.ge.s32.totalorder %v4228_v28, %v4195_v18 }
 0x3a0   : > { %3267 = vmatprep.subr.mxu0 %v3855_v35  ;;  %3165 = vmatpush3.msra.mxu1 %v2486_v58  ;;  %v1567_v58 = vsel %vm4341_vm11, %v4123_v13, -3e+38  ;;  %vm4427_vm9 = vmand %vm6213_vm8, %vm1508_vm6  ;;  %vm6216_vm6 = vcmp.lt.s32.totalorder %v4231_v29, %v4235_v30  ;;  %vm6221_vm8 = vcmp.ge.s32.totalorder %v4246_v33, %v4195_v18  ;;  %s2333_s21 = sadd.s32 %s5786_s13, %s5722_s0 }
 0x3a1   : > { %3268 = vmatpush3.msra.mxu0 %v4111_v55  ;;  %3166 = vmatprep.subr.mxu1 %v2501_v59  ;;  %v1572_v46 = vsel %vm4427_vm9, %v4097_v24, -3e+38  ;;  %vm1613_vm9 = vcmp.ge.s32.totalorder %v4228_v28, %v4360_v49 }
 0x3a2   : > { %3269 = vmatprep.subr.mxu0 %v3855_v35  ;;  %3167 = vmatpush3.msra.mxu1 %v2485_v36  ;;  %v2513_v36 = vld [vmem:[#allocation19 + $0x110] sm:$0xff] }
 0x3a3   : > { %3270 = vmatpush3.msra.mxu0 %v4123_v13  ;;  %3168 = vmatprep.subr.mxu1 %v2500_v44 }
 0x3a4   : > { %3271 = vmatprep.subr.mxu0 %v3855_v35 }
 0x3a5   : > { %3272 = vmatpush3.msra.mxu0 %v4115_v63 }
 0x3a6   : > { %3273 = vmatprep.subr.mxu0 %v3855_v35 }
 0x3a7   : > { %3274 = vmatpush3.msra.mxu0 %v4103_v39 }
 0x3a8   : > { %3275 = vmatprep.subr.mxu0 %v3855_v35 }
 0x3a9   : > { %3276 = vmatpush3.msra.mxu0 %v4095_v23 }
 0x3aa   : > { %3277 = vmatprep.subr.mxu0 %v3855_v35 }
 0x3ab   : > { %3278 = vmatpush3.msra.mxu0 %v4107_v47 }
 0x3ac   : > { %3279 = vmatprep.subr.mxu0 %v3855_v35 }
 0x3ad   : > { %3280 = vmatpush3.msra.mxu0 %v4099_v31 }
 0x3ae   : > { %3282 = vmatmul.mubr.f32.vlgmr.msra.gmra.mxu0 %v1370_v60  ;;  %3284 = vmatprep.subr.mxu0 %v3855_v35  ;;  %v1564_v60 = vsel %vm4285_vm2, %v4095_v23, -3e+38  ;;  %vm1604_vm2 = vcmp.ge.s32.totalorder %v4193_v17, %v4360_v49 }
 0x3af   : > { %3285 = vmatpush3.msra.mxu0 %v2526_v61  ;;  %3316 = vmatprep.mubr.msk.f32.mxu0 %vm6181_vm1, %v3855_v35  ;;  %vm1504_vm1 = vcmp.lt.s32.totalorder %v4214_v22, %v4235_v30  ;;  %v1565_v61 = vsel %vm4303_vm4, %v4103_v39, -3e+38  ;;  %vm1605_vm4 = vcmp.ge.s32.totalorder %v4200_v19, %v4360_v49 }
 0x3b0   : > { %3286 = vmatprep.subr.mxu0 %v3855_v35  ;;  %vm4355_vm5 = vmand %vm1487_vm15, %vm1504_vm1  ;;  %vm6204_vm1 = vcmp.ge.s32.totalorder %v4217_v25, %v4195_v18 }
 0x3b1   : > { %3287 = vmatpush3.msra.mxu0 %v2525_v62  ;;  %vm4376_vm15 = vmand %vm6204_vm1, %vm1505_vm3  ;;  %vm6210_vm3 = vcmp.ge.s32.totalorder %v4223_v27, %v4195_v18  ;;  %v2483_v62 = vld [vmem:[#allocation19 + $0x20] sm:$0xff] }
 0x3b2   : > { %3288 = vmatprep.subr.mxu0 %v3855_v35  ;;  %vm4409_vm7 = vmand %vm6210_vm3, %vm1507_vm12  ;;  %vm6217_vm12 = vcmp.ge.s32.totalorder %v4231_v29, %v4195_v18  ;;  %vm6220_vm3 = vcmp.lt.s32.totalorder %v4246_v33, %v4235_v30 }
 0x3b3   : > { %3289 = vmatpush3.msra.mxu0 %v2524_v1  ;;  %v1568_v1 = vsel %vm4355_vm5, %v4111_v55, -3e+38  ;;  %vm4448_vm1 = vmand %vm6217_vm12, %vm6216_vm6  ;;  %vm1607_vm5 = vcmp.ge.s32.totalorder %v4208_v21, %v4360_v49  ;;  %vm6224_vm12 = vcmp.lt.s32.totalorder %v4249_v34, %v4235_v30  ;;  %vm1620_vm6 = vcmp.lt.s32.totalorder %v4090_v6, %v4362_v50 }
 0x3b4   : > { %3290 = vmatprep.subr.mxu0 %v3855_v35  ;;  %vm4463_vm11 = vmand %vm6221_vm8, %vm6220_vm3  ;;  %vm6225_vm3 = vcmp.ge.s32.totalorder %v4249_v34, %v4195_v18  ;;  %v1580_v43 = vmax.f32 %v1564_v60, %v1568_v1  ;;  %v2514_v1 = vld [vmem:[#allocation19 + $0x118] sm:$0xff] }
 0x3b5   : > { %3291 = vmatpush3.msra.mxu0 %v2523_v2  ;;  %vm4483_vm8 = vmand %vm6225_vm3, %vm6224_vm12  ;;  %vm6228_vm12 = vcmp.ge.s32.totalorder %v4260_v37, %v4195_v18  ;;  %v1574_v30 = vsel %vm4463_vm11, %v4117_v0, -3e+38  ;;  %vm1625_vm11 = vcmp.lt.s32.totalorder %v4211_v12, %v4362_v50 }
 0x3b6   : > { %3292 = vmatprep.subr.mxu0 %v3855_v35  ;;  %vm4499_vm3 = vmand %vm6228_vm12, %vm1512_vm0  ;;  %vm6231_vm0 = vcmp.ge.s32.totalorder %v4263_v38, %v4195_v18  ;;  %v2499_v18 = vld [vmem:[#allocation19 + $0xa0] sm:$0xff]  ;;  %v1575_v60 = vsel %vm4483_vm8, %v4125_v14, -3e+38  ;;  %v1584_v2 = vmax.f32 %v1580_v43, %v1572_v46  ;;  %vm1624_vm8 = vcmp.lt.s32.totalorder %v4208_v21, %v4362_v50  ;;  %v2497_v46 = vld [vmem:[#allocation19 + $0x90] sm:$0xff] }
 0x3b7   : > { %3293 = vmatpush3.msra.mxu0 %v2522_v5  ;;  %v1569_v5 = vsel %vm4376_vm15, %v4119_v8, -3e+38  ;;  %vm1608_vm15 = vcmp.ge.s32.totalorder %v4211_v12, %v4360_v49  ;;  %vm4517_vm12 = vmand %vm6231_vm0, %vm1513_vm10  ;;  %vm1626_vm10 = vcmp.lt.s32.totalorder %v4214_v22, %v4362_v50 }
 0x3b8   : > { %3294 = vmatprep.subr.mxu0 %v3855_v35  ;;  %v1581_v51 = vmax.f32 %v1565_v61, %v1569_v5  ;;  %vm4546_vm0 = vmand %vm1603_vm13, %vm1620_vm6  ;;  %vm1616_vm6 = vcmp.ge.s32.totalorder %v4249_v34, %v4360_v49  ;;  %v1577_v42 = vsel %vm4517_vm12, %v4121_v9, -3e+38  ;;  %vm1627_vm12 = vcmp.lt.s32.totalorder %v4217_v25, %v4362_v50 }
 0x3b9   : > { %3295 = vmatpush3.msra.mxu0 %v2521_v7  ;;  %v1578_v7 = vmax.f32 %v1562_v52, %v1566_v57  ;;  %v2484_v52 = vld [vmem:[#allocation19 + $0x28] sm:$0xff]  ;;  %v1573_v57 = vsel %vm4448_vm1, %v4105_v40, -3e+38  ;;  %vm1623_vm1 = vcmp.lt.s32.totalorder %v4205_v20, %v4362_v50 }
 0x3ba   : > { %3296 = vmatprep.subr.mxu0 %v3855_v35  ;;  %3169 = vmatpush3.msra.mxu1 %v2484_v52  ;;  %v1684_v52 = vsel %vm4546_vm0, %v4099_v31, -3e+38  ;;  %vm4640_vm0 = vmand %vm1608_vm15, %vm1625_vm11  ;;  %vm6247_vm15 = vcmp.ge.s32.totalorder %v4214_v22, %v4360_v49 }
 0x3bb   : > { %3297 = vmatpush3.msra.mxu0 %v2520_v10  ;;  %v1579_v10 = vmax.f32 %v1563_v54, %v1567_v58  ;;  %3170 = vmatprep.subr.mxu1 %v2499_v18  ;;  %v2481_v54 = vld [vmem:[#allocation19 + $0x10] sm:$0xff]  ;;  %vm4656_vm11 = vmand %vm6247_vm15, %vm1626_vm10  ;;  %v1689_v5 = vsel %vm4640_vm0, %v4123_v13, -3e+38  ;;  %vm1631_vm10 = vcmp.lt.s32.totalorder %v4231_v29, %v4362_v50  ;;  %vm1634_vm0 = vcmp.lt.s32.totalorder %v4260_v37, %v4362_v50 }
 0x3bc   : > { %3298 = vmatprep.subr.mxu0 %v3855_v35  ;;  %3171 = vmatpush3.msra.mxu1 %v2483_v62 }
 0x3bd   : > { %3299 = vmatpush3.msra.mxu0 %v2519_v11 }
 0x3be   : > { %3300 = vmatprep.subr.mxu0 %v3855_v35 }
 0x3bf   : > { %3301 = vmatpush3.msra.mxu0 %v2518_v15  ;;  %v1570_v15 = vsel %vm4388_vm14, %v4101_v32, -3e+38  ;;  %vm1621_vm14 = vcmp.lt.s32.totalorder %v4193_v17, %v4362_v50 }
 0x3c0   : > { %3302 = vmatprep.subr.mxu0 %v3855_v35  ;;  %v1582_v58 = vmax.f32 %v1578_v7, %v1570_v15  ;;  %vm4561_vm13 = vmand %vm1604_vm2, %vm1621_vm14  ;;  %v2498_v7 = vld [vmem:[#allocation19 + $0x98] sm:$0xff]  ;;  %v4582_v15 = vstv %s4440_s26  ;;  %vm6240_vm14 = vcmp.ge.s32.totalorder %v4205_v20, %v4360_v49 }
 0x3c1   : > { %3303 = vmatpush3.msra.mxu0 %v2517_v16  ;;  %v1571_v16 = vsel %vm4409_vm7, %v4109_v48, -3e+38  ;;  %vm1622_vm7 = vcmp.lt.s32.totalorder %v4200_v19, %v4362_v50  ;;  %3172 = vmatprep.subr.mxu1 %v2498_v7  ;;  %v2511_v7 = vld [vmem:[#allocation19 + $0x100] sm:$0xff] }
 0x3c2   : > { %3304 = vmatprep.subr.mxu0 %v3855_v35  ;;  %v1583_v59 = vmax.f32 %v1579_v10, %v1571_v16  ;;  %v1585_v10 = vmax.f32 %v1581_v51, %v1573_v57  ;;  %vm4577_vm2 = vmand %vm1605_vm4, %vm1622_vm7  ;;  %v2482_v16 = vld [vmem:[#allocation19 + $0x18] sm:$0xff]  ;;  %v4591_v43 = vmax.f32 %v1582_v58, %v1574_v30  ;;  %vm1628_vm4 = vcmp.lt.s32.totalorder %v4220_v26, %v4362_v50  ;;  %v2512_v57 = vld [vmem:[#allocation19 + $0x108] sm:$0xff] }
 0x3c3   : > { %3305 = vmatpush3.msra.mxu0 %v2516_v41  ;;  %v1576_v41 = vsel %vm4499_vm3, %v4113_v56, -3e+38  ;;  %vm4603_vm7 = vmand %vm6240_vm14, %vm1623_vm1  ;;  %3173 = vmatpush3.msra.mxu1 %v2482_v16  ;;  %vm1618_vm3 = vcmp.ge.s32.totalorder %v4263_v38, %v4360_v49  ;;  %vm1629_vm14 = vcmp.lt.s32.totalorder %v4223_v27, %v4362_v50  ;;  %v2496_v30 = vld [vmem:[#allocation19 + $0x88] sm:$0xff]  ;;  %v1690_v16 = vsel %vm4656_vm11, %v4111_v55, -3e+38 }
 0x3c4   : > { %3306 = vmatprep.subr.mxu0 %v3855_v35  ;;  %v4593_v44 = vmax.f32 %v1583_v59, %v1575_v60  ;;  %vm4619_vm1 = vmand %vm1607_vm5, %vm1624_vm8  ;;  %3174 = vmatprep.subr.mxu1 %v2497_v46  ;;  %vm1630_vm5 = vcmp.lt.s32.totalorder %v4228_v28, %v4362_v50  ;;  %v1686_v59 = vsel %vm4577_vm2, %v4095_v23, -3e+38  ;;  %v1588_v60 = vmax.f32 %v1584_v2, %v1576_v41  ;;  %v2480_v2 = vld [vmem:[#allocation19 + $0x8] sm:$0xff] }
 0x3c5   : > { %3307 = vmatpush3.msra.mxu0 %v2515_v53  ;;  %v1685_v53 = vsel %vm4561_vm13, %v4107_v47, -3e+38  ;;  %v1688_v18 = vsel %vm4619_vm1, %v4115_v63, -3e+38  ;;  %3175 = vmatpush3.msra.mxu1 %v2481_v54  ;;  %v1589_v61 = vmax.f32 %v1585_v10, %v1577_v42  ;;  %vm1632_vm8 = vcmp.lt.s32.totalorder %v4246_v33, %v4362_v50 }
 0x3c6   : > { %3308 = vmatprep.subr.mxu0 %v3855_v35  ;;  %3176 = vmatprep.subr.mxu1 %v2496_v30  ;;  %v1590_v10 = vmax.f32 %v4591_v43, %v4593_v44  ;;  %vm6250_vm13 = vcmp.ge.s32.totalorder %v4217_v25, %v4360_v49  ;;  %vm6253_vm1 = vcmp.ge.s32.totalorder %v4220_v26, %v4360_v49 }
 0x3c7   : > { %3309 = vmatpush3.msra.mxu0 %v2514_v1  ;;  %v1687_v1 = vsel %vm4603_vm7, %v4103_v39, -3e+38  ;;  %vm4679_vm2 = vmand %vm6250_vm13, %vm1627_vm12  ;;  %3177 = vmatpush3.msra.mxu1 %v2480_v2  ;;  %vm1633_vm7 = vcmp.lt.s32.totalorder %v4249_v34, %v4362_v50  ;;  %v1700_v43 = vmax.f32 %v1684_v52, %v1688_v18  ;;  %v1701_v44 = vmax.f32 %v1685_v53, %v1689_v5 }
 0x3c8   : > { %3310 = vmatprep.subr.mxu0 %v3855_v35  ;;  %vm4694_vm12 = vmand %vm6253_vm1, %vm1628_vm4  ;;  %v1691_v42 = vsel %vm4679_vm2, %v4119_v8, -3e+38  ;;  %vm6256_vm4 = vcmp.ge.s32.totalorder %v4223_v27, %v4360_v49  ;;  %v1702_v52 = vmax.f32 %v1686_v59, %v1690_v16  ;;  %v1591_v54 = vmax.f32 %v1588_v60, %v1589_v61 }
 0x3c9   : > { %3311 = vmatpush3.msra.mxu0 %v2513_v36  ;;  %v2495_v36 = vld [vmem:[#allocation19 + $0x80] sm:$0xff]  ;;  %vm4711_vm15 = vmand %vm6256_vm4, %vm1629_vm14  ;;  %v1692_v51 = vsel %vm4694_vm12, %v4101_v32, -3e+38  ;;  %v1703_v53 = vmax.f32 %v1687_v1, %v1691_v42  ;;  %vm1635_vm11 = vcmp.lt.s32.totalorder %v4263_v38, %v4362_v50  ;;  %vm1725_vm13 = vcmp.ge.s32.totalorder %v4090_v6, %v4582_v15 }
 0x3ca   : > { %3312 = vmatprep.subr.mxu0 %v3855_v35  ;;  %3178 = vmatprep.subr.mxu1 %v2495_v36  ;;  %vm4726_vm14 = vmand %vm1613_vm9, %vm1630_vm5  ;;  %v1693_v58 = vsel %vm4711_vm15, %v4109_v48, -3e+38  ;;  %vm6261_vm2 = vcmp.ge.s32.totalorder %v4231_v29, %v4360_v49  ;;  %vm1726_vm9 = vcmp.ge.s32.totalorder %v4193_v17, %v4582_v15  ;;  %vm1727_vm5 = vcmp.ge.s32.totalorder %v4200_v19, %v4582_v15 }
 0x3cb   : > { %3313 = vmatpush3.msra.mxu0 %v2512_v57  ;;  %3179 = vmatpush3.msra.mxu1 %v2479_v45  ;;  %vm1647_vm1 = vmand %vm6261_vm2, %vm1631_vm10  ;;  %v1694_v59 = vsel %vm4726_vm14, %v4097_v24, -3e+38  ;;  %v4748_v18 = vstv %s1723_s29  ;;  %vm6262_vm10 = vcmp.ge.s32.totalorder %v4246_v33, %v4360_v49  ;;  %v1704_v61 = vmax.f32 %v1700_v43, %v1692_v51 }
 0x3cc   : > { %3314 = vmatprep.subr.mxu0 %v3855_v35  ;;  %3319 = vmatprep.subr.mxu1 %v3855_v35  ;;  %vm4757_vm12 = vmand %vm6262_vm10, %vm1632_vm8  ;;  %v1695_v60 = vsel %vm1647_vm1, %v4105_v40, -3e+38  ;;  %v1705_v62 = vmax.f32 %v1701_v44, %v1693_v58  ;;  %vm1728_vm4 = vcmp.ge.s32.totalorder %v4205_v20, %v4582_v15  ;;  %v1706_v2 = vmax.f32 %v1702_v52, %v1694_v59 }
 0x3cd   : > { %3315 = vmatpush3.msra.mxu0 %v2511_v7  ;;  %vm4770_vm15 = vmand %vm1616_vm6, %vm1633_vm7  ;;  %v1696_v5 = vsel %vm4757_vm12, %v4117_v0, -3e+38  ;;  %v1707_v7 = vmax.f32 %v1703_v53, %v1695_v60  ;;  %vm1742_vm8 = vcmp.lt.s32.totalorder %v4090_v6, %v4748_v18  ;;  %v1592_v11 = vmax.f32 %v1590_v10, %v1591_v54 }
 0x3ce   : > { %vm6267_vm14 = vcmp.ge.s32.totalorder %v4260_v37, %v4360_v49  ;;  %v1697_v16 = vsel %vm4770_vm15, %v4125_v14, -3e+38  ;;  %vm1729_vm7 = vcmp.ge.s32.totalorder %v4208_v21, %v4582_v15  ;;  %vm1743_vm2 = vcmp.lt.s32.totalorder %v4193_v17, %v4748_v18  ;;  %vm1651_vm1 = vmand %vm1618_vm3, %vm1635_vm11 }
 0x3cf   : > { %vm1650_vm6 = vmand %vm6267_vm14, %vm1634_vm0  ;;  %vm1730_vm0 = vcmp.ge.s32.totalorder %v4211_v12, %v4582_v15  ;;  %vm1731_vm10 = vcmp.ge.s32.totalorder %v4214_v22, %v4582_v15  ;;  %vm1744_vm12 = vcmp.lt.s32.totalorder %v4200_v19, %v4748_v18  ;;  %v1699_v36 = vsel %vm1651_vm1, %v4121_v9, -3e+38 }
 0x3d0   : > { %v1698_v10 = vsel %vm1650_vm6, %v4113_v56, -3e+38  ;;  %v1708_v41 = vmax.f32 %v1704_v61, %v1696_v5  ;;  %v1709_v42 = vmax.f32 %v1705_v62, %v1697_v16  ;;  %vm1745_vm15 = vcmp.lt.s32.totalorder %v4205_v20, %v4748_v18  ;;  %vm4814_vm3 = vmand %vm1725_vm13, %vm1742_vm8 }
 0x3d1   : > { %v1710_v50 = vmax.f32 %v1706_v2, %v1698_v10  ;;  %v1711_v43 = vmax.f32 %v1707_v7, %v1699_v36  ;;  %vm1746_vm14 = vcmp.lt.s32.totalorder %v4208_v21, %v4748_v18  ;;  %vm4828_vm6 = vmand %vm1726_vm9, %vm1743_vm2  ;;  %v1593_v45 = vrot.slane %v1592_v11, 4 }
 0x3d2   : > { %vm1747_vm1 = vcmp.lt.s32.totalorder %v4211_v12, %v4748_v18  ;;  %vm4844_vm9 = vmand %vm1727_vm5, %vm1744_vm12  ;;  %vm1735_vm2 = vcmp.ge.s32.totalorder %v4228_v28, %v4582_v15  ;;  %vm1736_vm13 = vcmp.ge.s32.totalorder %v4231_v29, %v4582_v15  ;;  %vm1748_vm11 = vcmp.lt.s32.totalorder %v4214_v22, %v4748_v18 }
 0x3d3   : > { %vm4862_vm5 = vmand %vm1728_vm4, %vm1745_vm15  ;;  %v1712_v52 = vmax.f32 %v1708_v41, %v1709_v42  ;;  %vm1749_vm12 = vcmp.lt.s32.totalorder %v4217_v25, %v4748_v18  ;;  %v1806_v54 = vsel %vm4814_vm3, %v4099_v31, -3e+38  ;;  %v1807_v57 = vsel %vm4828_vm6, %v4107_v47, -3e+38 }
 0x3d4   : > { %vm4876_vm8 = vmand %vm1729_vm7, %vm1746_vm14  ;;  %v1713_v58 = vmax.f32 %v1710_v50, %v1711_v43  ;;  %vm1750_vm4 = vcmp.lt.s32.totalorder %v4220_v26, %v4748_v18  ;;  %v1808_v59 = vsel %vm4844_vm9, %v4095_v23, -3e+38  ;;  %v4902_v60 = vmax.f32 %v1592_v11, %v1593_v45 }
 0x3d5   : > { %vm1763_vm7 = vmand %vm1730_vm0, %vm1747_vm1  ;;  %v1810_v30 = vsel %vm4876_vm8, %v4115_v63, -3e+38  ;;  %vm1751_vm15 = vcmp.lt.s32.totalorder %v4223_v27, %v4748_v18  ;;  %v1809_v61 = vsel %vm4862_vm5, %v4103_v39, -3e+38  ;;  %vm1752_vm3 = vcmp.lt.s32.totalorder %v4228_v28, %v4748_v18 }
 0x3d6   : > { %vm1764_vm0 = vmand %vm1731_vm10, %vm1748_vm11  ;;  %v1811_v62 = vsel %vm1763_vm7, %v4123_v13, -3e+38  ;;  %vm6278_vm14 = vcmp.ge.s32.totalorder %v4217_v25, %v4582_v15  ;;  %v1822_v5 = vmax.f32 %v1806_v54, %v1810_v30  ;;  %vm1738_vm10 = vcmp.ge.s32.totalorder %v4249_v34, %v4582_v15 }
 0x3d7   : > { %vm1765_vm6 = vmand %vm6278_vm14, %vm1749_vm12  ;;  %v1812_v1 = vsel %vm1764_vm0, %v4111_v55, -3e+38  ;;  %v1823_v2 = vmax.f32 %v1807_v57, %v1811_v62  ;;  %vm1753_vm11 = vcmp.lt.s32.totalorder %v4231_v29, %v4748_v18  ;;  %vm6279_vm8 = vcmp.ge.s32.totalorder %v4220_v26, %v4582_v15 }
 0x3d8   : > { %vm1766_vm1 = vmand %vm6279_vm8, %vm1750_vm4  ;;  %v1813_v7 = vsel %vm1765_vm6, %v4119_v8, -3e+38  ;;  %v1824_v11 = vmax.f32 %v1808_v59, %v1812_v1  ;;  %v1714_v16 = vmax.f32 %v1712_v52, %v1713_v58  ;;  %vm1754_vm9 = vcmp.lt.s32.totalorder %v4246_v33, %v4748_v18 }
 0x3d9   : > { %vm6280_vm5 = vcmp.ge.s32.totalorder %v4223_v27, %v4582_v15  ;;  %v1814_v10 = vsel %vm1766_vm1, %v4101_v32, -3e+38  ;;  %v1825_v36 = vmax.f32 %v1809_v61, %v1813_v7  ;;  %vm1739_vm4 = vcmp.ge.s32.totalorder %v4260_v37, %v4582_v15  ;;  %vm1768_vm14 = vmand %vm1735_vm2, %vm1752_vm3 }
 0x3da   : > { %vm1767_vm12 = vmand %vm6280_vm5, %vm1751_vm15  ;;  %vm1755_vm7 = vcmp.lt.s32.totalorder %v4249_v34, %v4748_v18  ;;  %vm1756_vm0 = vcmp.lt.s32.totalorder %v4260_v37, %v4748_v18  ;;  %v1816_v42 = vsel %vm1768_vm14, %v4097_v24, -3e+38  ;;  %v1826_v49 = vmax.f32 %v1822_v5, %v1814_v10 }
 0x3db   : > { %v1815_v41 = vsel %vm1767_vm12, %v4109_v48, -3e+38  ;;  %vm1769_vm15 = vmand %vm1736_vm13, %vm1753_vm11  ;;  %v4963_v43 = vstv %s4866_s14  ;;  %vm1740_vm6 = vcmp.ge.s32.totalorder %v4263_v38, %v4582_v15  ;;  %vm1757_vm2 = vcmp.lt.s32.totalorder %v4263_v38, %v4748_v18 }
 0x3dc   : > { %v1827_v50 = vmax.f32 %v1823_v2, %v1815_v41  ;;  %vm6281_vm3 = vcmp.ge.s32.totalorder %v4246_v33, %v4582_v15  ;;  %v1817_v44 = vsel %vm1769_vm15, %v4105_v40, -3e+38  ;;  %v1828_v45 = vmax.f32 %v1824_v11, %v1816_v42  ;;  %vm1771_vm13 = vmand %vm1738_vm10, %vm1755_vm7 }
 0x3dd   : > { %vm1770_vm8 = vmand %vm6281_vm3, %vm1754_vm9  ;;  %v1715_v46 = vrot.slane %v1714_v16, 4  ;;  %v1829_v52 = vmax.f32 %v1825_v36, %v1817_v44  ;;  %v1595_v53 = vrot.slane %v4902_v60, 2  ;;  %v1819_v54 = vsel %vm1771_vm13, %v4125_v14, -3e+38 }
 0x3de   : > { %v1818_v51 = vsel %vm1770_vm8, %v4117_v0, -3e+38  ;;  %vm1772_vm11 = vmand %vm1739_vm4, %vm1756_vm0  ;;  %vm1847_vm1 = vcmp.ge.s32.totalorder %v4090_v6, %v4963_v43  ;;  %v1831_v59 = vmax.f32 %v1827_v50, %v1819_v54  ;;  %vm1848_vm10 = vcmp.ge.s32.totalorder %v4193_v17, %v4963_v43 }
 0x3df   : > { %vm1773_vm9 = vmand %vm1740_vm6, %vm1757_vm2  ;;  %v1820_v57 = vsel %vm1772_vm11, %v4113_v56, -3e+38  ;;  %v1830_v58 = vmax.f32 %v1826_v49, %v1818_v51  ;;  %vm1849_vm5 = vcmp.ge.s32.totalorder %v4200_v19, %v4963_v43  ;;  %v5001_v15 = vstv %s1845_s19 }
 0x3e0   : > { %v1821_v30 = vsel %vm1773_vm9, %v4121_v9, -3e+38  ;;  %v1832_v18 = vmax.f32 %v1828_v45, %v1820_v57  ;;  %v5003_v61 = vmax.f32 %v1714_v16, %v1715_v46  ;;  %vm1850_vm12 = vcmp.ge.s32.totalorder %v4205_v20, %v4963_v43 }
 0x3e1   : > { %v1833_v62 = vmax.f32 %v1829_v52, %v1821_v30  ;;  %vm1864_vm4 = vcmp.lt.s32.totalorder %v4090_v6, %v5001_v15  ;;  %vm1851_vm7 = vcmp.ge.s32.totalorder %v4208_v21, %v4963_v43  ;;  %vm1865_vm0 = vcmp.lt.s32.totalorder %v4193_v17, %v5001_v15 }
 0x3e2   : > { %vm1866_vm14 = vcmp.lt.s32.totalorder %v4200_v19, %v5001_v15  ;;  %vm1867_vm15 = vcmp.lt.s32.totalorder %v4205_v20, %v5001_v15  ;;  %vm5020_vm6 = vmand %vm1847_vm1, %vm1864_vm4  ;;  %v1834_v5 = vmax.f32 %v1830_v58, %v1831_v59  ;;  %vm1852_vm2 = vcmp.ge.s32.totalorder %v4211_v12, %v4963_v43 }
 0x3e3   : > { %v1835_v2 = vmax.f32 %v1832_v18, %v1833_v62  ;;  %vm1868_vm3 = vcmp.lt.s32.totalorder %v4208_v21, %v5001_v15  ;;  %vm5031_vm8 = vmand %vm1848_vm10, %vm1865_vm0  ;;  %vm1853_vm13 = vcmp.ge.s32.totalorder %v4214_v22, %v4963_v43  ;;  %vm1854_vm11 = vcmp.ge.s32.totalorder %v4217_v25, %v4963_v43 }
 0x3e4   : > { %vm1869_vm9 = vcmp.lt.s32.totalorder %v4211_v12, %v5001_v15  ;;  %vm5046_vm4 = vmand %vm1849_vm5, %vm1866_vm14  ;;  %v1717_v16 = vrot.slane %v5003_v61, 2  ;;  %vm1870_vm1 = vcmp.lt.s32.totalorder %v4214_v22, %v5001_v15  ;;  %vm1858_vm14 = vcmp.ge.s32.totalorder %v4231_v29, %v4963_v43 }
 0x3e5   : > { %vm5063_vm5 = vmand %vm1850_vm12, %vm1867_vm15  ;;  %vm1871_vm0 = vcmp.lt.s32.totalorder %v4217_v25, %v5001_v15  ;;  %vm1872_vm10 = vcmp.lt.s32.totalorder %v4220_v26, %v5001_v15  ;;  %v1928_v41 = vsel %vm5020_vm6, %v4099_v31, -3e+38  ;;  %v1836_v42 = vmax.f32 %v1834_v5, %v1835_v2 }
 0x3e6   : > { %vm5081_vm12 = vmand %vm1851_vm7, %vm1868_vm3  ;;  %v1929_v50 = vsel %vm5031_vm8, %v4107_v47, -3e+38  ;;  %v1930_v44 = vsel %vm5046_vm4, %v4095_v23, -3e+38  ;;  %vm1859_vm7 = vcmp.ge.s32.totalorder %v4246_v33, %v4963_v43  ;;  %vm1873_vm6 = vcmp.lt.s32.totalorder %v4223_v27, %v5001_v15 }
 0x3e7   : > { %vm5096_vm15 = vmand %vm1852_vm2, %vm1869_vm9  ;;  %v1932_v45 = vsel %vm5081_vm12, %v4115_v63, -3e+38  ;;  %v1931_v46 = vsel %vm5063_vm5, %v4103_v39, -3e+38  ;;  %vm1860_vm3 = vcmp.ge.s32.totalorder %v4249_v34, %v4963_v43  ;;  %vm1874_vm8 = vcmp.lt.s32.totalorder %v4228_v28, %v5001_v15 }
 0x3e8   : > { %vm1886_vm2 = vmand %vm1853_vm13, %vm1870_vm1  ;;  %v1933_v51 = vsel %vm5096_vm15, %v4123_v13, -3e+38  ;;  %v1944_v54 = vmax.f32 %v1928_v41, %v1932_v45  ;;  %vm1875_vm1 = vcmp.lt.s32.totalorder %v4231_v29, %v5001_v15  ;;  %vm6294_vm9 = vcmp.ge.s32.totalorder %v4220_v26, %v4963_v43 }
 0x3e9   : > { %vm1887_vm13 = vmand %vm1854_vm11, %vm1871_vm0  ;;  %v1934_v52 = vsel %vm1886_vm2, %v4111_v55, -3e+38  ;;  %v1945_v59 = vmax.f32 %v1929_v50, %v1933_v51  ;;  %v1837_v18 = vrot.slane %v1836_v42, 4  ;;  %vm1876_vm11 = vcmp.lt.s32.totalorder %v4246_v33, %v5001_v15 }
 0x3ea   : > { %vm5144_vm4 = vmand %vm6294_vm9, %vm1872_vm10  ;;  %v1935_v58 = vsel %vm1887_vm13, %v4119_v8, -3e+38  ;;  %v1946_v30 = vmax.f32 %v1930_v44, %v1934_v52  ;;  %vm6297_vm0 = vcmp.ge.s32.totalorder %v4223_v27, %v4963_v43  ;;  %vm1861_vm10 = vcmp.ge.s32.totalorder %v4260_v37, %v4963_v43 }
 0x3eb   : > { %vm5157_vm5 = vmand %vm6297_vm0, %vm1873_vm6  ;;  %v1936_v1 = vsel %vm5144_vm4, %v4101_v32, -3e+38  ;;  %v1947_v5 = vmax.f32 %v1931_v46, %v1935_v58  ;;  %vm1862_vm12 = vcmp.ge.s32.totalorder %v4263_v38, %v4963_v43  ;;  %vm1877_vm15 = vcmp.lt.s32.totalorder %v4249_v34, %v5001_v15 }
 0x3ec   : > { %vm6300_vm6 = vcmp.ge.s32.totalorder %v4228_v28, %v4963_v43  ;;  %v1937_v2 = vsel %vm5157_vm5, %v4109_v48, -3e+38  ;;  %vm1878_vm13 = vcmp.lt.s32.totalorder %v4260_v37, %v5001_v15  ;;  %vm1891_vm9 = vmand %vm1858_vm14, %vm1875_vm1  ;;  %v1948_v11 = vmax.f32 %v1944_v54, %v1936_v1 }
 0x3ed   : > { %vm1890_vm2 = vmand %vm6300_vm6, %vm1874_vm8  ;;  %v5189_v10 = vstv %s5067_s20  ;;  %vm1879_vm8 = vcmp.lt.s32.totalorder %v4263_v38, %v5001_v15  ;;  %v1939_v41 = vsel %vm1891_vm9, %v4105_v40, -3e+38  ;;  %v1949_v49 = vmax.f32 %v1945_v59, %v1937_v2 }
 0x3ee   : > { %v1938_v7 = vsel %vm1890_vm2, %v4097_v24, -3e+38  ;;  %vm5199_vm4 = vmand %vm1859_vm7, %vm1876_vm11  ;;  %v1838_v44 = vmax.f32 %v1836_v42, %v1837_v18  ;;  %v1951_v46 = vmax.f32 %v1947_v5, %v1939_v41  ;;  %v5215_v51 = vmax.f32 %v4902_v60, %v1595_v53 }
 0x3ef   : > { %v1950_v50 = vmax.f32 %v1946_v30, %v1938_v7  ;;  %vm1893_vm14 = vmand %vm1860_vm3, %vm1877_vm15  ;;  %v1940_v45 = vsel %vm5199_vm4, %v4117_v0, -3e+38  ;;  %v5218_v52 = vmax.f32 %v5003_v61, %v1717_v16  ;;  %vm1969_vm3 = vcmp.ge.s32.totalorder %v4090_v6, %v5189_v10 }
 0x3f0   : > { %vm1894_vm7 = vmand %vm1861_vm10, %vm1878_vm13  ;;  %v1941_v42 = vsel %vm1893_vm14, %v4125_v14, -3e+38  ;;  %v1952_v53 = vmax.f32 %v1948_v11, %v1940_v45  ;;  %vm1970_vm11 = vcmp.ge.s32.totalorder %v4193_v17, %v5189_v10  ;;  %vm1971_vm0 = vcmp.ge.s32.totalorder %v4200_v19, %v5189_v10 }
 0x3f1   : > { %vm1895_vm1 = vmand %vm1862_vm12, %vm1879_vm8  ;;  %v1942_v60 = vsel %vm1894_vm7, %v4113_v56, -3e+38  ;;  %v1953_v16 = vmax.f32 %v1949_v49, %v1941_v42  ;;  %v5241_v57 = vstv %s1967_s17  ;;  %v1839_v15 = vrot.slane %v1838_v44, 2 }
 0x3f2   : > { %v1943_v61 = vsel %vm1895_vm1, %v4121_v9, -3e+38  ;;  %v1954_v54 = vmax.f32 %v1950_v50, %v1942_v60  ;;  %vm1986_vm5 = vcmp.lt.s32.totalorder %v4090_v6, %v5241_v57  ;;  %vm1987_vm10 = vcmp.lt.s32.totalorder %v4193_v17, %v5241_v57 }
 0x3f3   : > { %v1955_v58 = vmax.f32 %v1951_v46, %v1943_v61  ;;  %vm1972_vm12 = vcmp.ge.s32.totalorder %v4205_v20, %v5189_v10  ;;  %vm1973_vm15 = vcmp.ge.s32.totalorder %v4208_v21, %v5189_v10  ;;  %vm1988_vm6 = vcmp.lt.s32.totalorder %v4200_v19, %v5241_v57  ;;  %vm5258_vm13 = vmand %vm1969_vm3, %vm1986_vm5 }
 0x3f4   : > { %vm1989_vm2 = vcmp.lt.s32.totalorder %v4205_v20, %v5241_v57  ;;  %vm1974_vm9 = vcmp.ge.s32.totalorder %v4211_v12, %v5189_v10  ;;  %vm1975_vm8 = vcmp.ge.s32.totalorder %v4214_v22, %v5189_v10  ;;  %vm1976_vm4 = vcmp.ge.s32.totalorder %v4217_v25, %v5189_v10  ;;  %vm5273_vm7 = vmand %vm1970_vm11, %vm1987_vm10 }
 0x3f5   : > { %vm1990_vm14 = vcmp.lt.s32.totalorder %v4208_v21, %v5241_v57  ;;  %v1956_v30 = vmax.f32 %v1952_v53, %v1953_v16  ;;  %v1957_v18 = vmax.f32 %v1954_v54, %v1955_v58  ;;  %vm1991_vm1 = vcmp.lt.s32.totalorder %v4211_v12, %v5241_v57  ;;  %vm5284_vm5 = vmand %vm1971_vm0, %vm1988_vm6 }
 0x3f6   : > { %v5290_v1 = vmax.f32 %v1838_v44, %v1839_v15  ;;  %vm1992_vm3 = vcmp.lt.s32.totalorder %v4214_v22, %v5241_v57  ;;  %vm5304_vm0 = vmand %vm1972_vm12, %vm1989_vm2  ;;  %vm1980_vm6 = vcmp.ge.s32.totalorder %v4231_v29, %v5189_v10  ;;  %vm1993_vm11 = vcmp.lt.s32.totalorder %v4217_v25, %v5241_v57 }
 0x3f7   : > { %vm5318_vm10 = vmand %vm1973_vm15, %vm1990_vm14  ;;  %v2050_v7 = vsel %vm5258_vm13, %v4099_v31, -3e+38  ;;  %v2051_v11 = vsel %vm5273_vm7, %v4107_v47, -3e+38  ;;  %vm1981_vm12 = vcmp.ge.s32.totalorder %v4246_v33, %v5189_v10  ;;  %vm1994_vm2 = vcmp.lt.s32.totalorder %v4220_v26, %v5241_v57 }
 0x3f8   : > { %vm2007_vm15 = vmand %vm1974_vm9, %vm1991_vm1  ;;  %v2052_v36 = vsel %vm5284_vm5, %v4095_v23, -3e+38  ;;  %v2054_v41 = vsel %vm5318_vm10, %v4115_v63, -3e+38  ;;  %v1958_v49 = vmax.f32 %v1956_v30, %v1957_v18  ;;  %vm1995_vm13 = vcmp.lt.s32.totalorder %v4223_v27, %v5241_v57 }
 0x3f9   : > { %vm2008_vm14 = vmand %vm1975_vm8, %vm1992_vm3  ;;  %v2053_v50 = vsel %vm5304_vm0, %v4103_v39, -3e+38  ;;  %v2055_v44 = vsel %vm2007_vm15, %v4123_v13, -3e+38  ;;  %vm1996_vm9 = vcmp.lt.s32.totalorder %v4228_v28, %v5241_v57  ;;  %v2066_v46 = vmax.f32 %v2050_v7, %v2054_v41 }
 0x3fa   : > { %vm2009_vm7 = vmand %vm1976_vm4, %vm1993_vm11  ;;  %v2056_v45 = vsel %vm2008_vm14, %v4111_v55, -3e+38  ;;  %v2067_v42 = vmax.f32 %v2051_v11, %v2055_v44  ;;  %vm1982_vm8 = vcmp.ge.s32.totalorder %v4249_v34, %v5189_v10  ;;  %vm1997_vm3 = vcmp.lt.s32.totalorder %v4231_v29, %v5241_v57 }
 0x3fb   : > { %vm6313_vm1 = vcmp.ge.s32.totalorder %v4220_v26, %v5189_v10  ;;  %v2057_v53 = vsel %vm2009_vm7, %v4119_v8, -3e+38  ;;  %v2068_v61 = vmax.f32 %v2052_v36, %v2056_v45  ;;  %vm1983_vm4 = vcmp.ge.s32.totalorder %v4260_v37, %v5189_v10  ;;  %vm2013_vm7 = vmand %vm1980_vm6, %vm1997_vm3 }
 0x3fc   : > { %vm5377_vm5 = vmand %vm6313_vm1, %vm1994_vm2  ;;  %vm1998_vm11 = vcmp.lt.s32.totalorder %v4246_v33, %v5241_v57  ;;  %vm6316_vm10 = vcmp.ge.s32.totalorder %v4223_v27, %v5189_v10  ;;  %v2069_v54 = vmax.f32 %v2053_v50, %v2057_v53  ;;  %v1959_v15 = vrot.slane %v1958_v49, 4 }
 0x3fd   : > { %vm2011_vm0 = vmand %vm6316_vm10, %vm1995_vm13  ;;  %v2058_v16 = vsel %vm5377_vm5, %v4101_v32, -3e+38  ;;  %vm1999_vm2 = vcmp.lt.s32.totalorder %v4249_v34, %v5241_v57  ;;  %vm6317_vm15 = vcmp.ge.s32.totalorder %v4228_v28, %v5189_v10  ;;  %v5405_v43 = vstv %s5288_s27 }
 0x3fe   : > { %vm2012_vm14 = vmand %vm6317_vm15, %vm1996_vm9  ;;  %v2059_v58 = vsel %vm2011_vm0, %v4109_v48, -3e+38  ;;  %vm2000_vm13 = vcmp.lt.s32.totalorder %v4260_v37, %v5241_v57  ;;  %v2070_v30 = vmax.f32 %v2066_v46, %v2058_v16  ;;  %vm1984_vm9 = vcmp.ge.s32.totalorder %v4263_v38, %v5189_v10 }
 0x3ff   : > { %v2060_v59 = vsel %vm2012_vm14, %v4097_v24, -3e+38  ;;  %v2071_v18 = vmax.f32 %v2067_v42, %v2059_v58  ;;  %vm2001_vm1 = vcmp.lt.s32.totalorder %v4263_v38, %v5241_v57  ;;  %vm5426_vm5 = vmand %vm1981_vm12, %vm1998_vm11  ;;  %v2061_v5 = vsel %vm2013_vm7, %v4105_v40, -3e+38 }
 0x400   : > { %v2072_v2 = vmax.f32 %v2068_v61, %v2060_v59  ;;  %vm2015_vm6 = vmand %vm1982_vm8, %vm1999_vm2  ;;  %v2062_v7 = vsel %vm5426_vm5, %v4117_v0, -3e+38  ;;  %v2073_v11 = vmax.f32 %v2069_v54, %v2061_v5  ;;  %vm2091_vm12 = vcmp.ge.s32.totalorder %v4090_v6, %v5405_v43 }
 0x401   : > { %vm2092_vm3 = vcmp.ge.s32.totalorder %v4193_v17, %v5405_v43  ;;  %v5446_v36 = vmax.f32 %v1958_v49, %v1959_v15  ;;  %vm2016_vm8 = vmand %vm1983_vm4, %vm2000_vm13  ;;  %v2063_v41 = vsel %vm2015_vm6, %v4125_v14, -3e+38  ;;  %vm2093_vm11 = vcmp.ge.s32.totalorder %v4200_v19, %v5405_v43 }
 0x402   : > { %vm2094_vm10 = vcmp.ge.s32.totalorder %v4205_v20, %v5405_v43  ;;  %vm2017_vm0 = vmand %vm1984_vm9, %vm2001_vm1  ;;  %v2064_v49 = vsel %vm2016_vm8, %v4113_v56, -3e+38  ;;  %v2074_v50 = vmax.f32 %v2070_v30, %v2062_v7  ;;  %v2075_v44 = vmax.f32 %v2071_v18, %v2063_v41 }
 0x403   : > { %v5466_v45 = vstv %s2089_s12  ;;  %v2065_v46 = vsel %vm2017_vm0, %v4121_v9, -3e+38  ;;  %v2076_v42 = vmax.f32 %v2072_v2, %v2064_v49  ;;  %vm2095_vm15 = vcmp.ge.s32.totalorder %v4208_v21, %v5405_v43 }
 0x404   : > { %vm2108_vm4 = vcmp.lt.s32.totalorder %v4090_v6, %v5466_v45  ;;  %vm2109_vm2 = vcmp.lt.s32.totalorder %v4193_v17, %v5466_v45  ;;  %v2077_v57 = vmax.f32 %v2073_v11, %v2065_v46  ;;  %vm2110_vm14 = vcmp.lt.s32.totalorder %v4200_v19, %v5466_v45 }
 0x405   : > { %vm2111_vm13 = vcmp.lt.s32.totalorder %v4205_v20, %v5466_v45  ;;  %vm5482_vm7 = vmand %vm2091_vm12, %vm2108_vm4  ;;  %v1961_v60 = vrot.slane %v5446_v36, 2  ;;  %vm2096_vm9 = vcmp.ge.s32.totalorder %v4211_v12, %v5405_v43  ;;  %vm2112_vm5 = vcmp.lt.s32.totalorder %v4208_v21, %v5466_v45 }
 0x406   : > { %vm5496_vm6 = vmand %vm2092_vm3, %vm2109_vm2  ;;  %vm2098_vm12 = vcmp.ge.s32.totalorder %v4217_v25, %v5405_v43  ;;  %vm2099_vm8 = vcmp.ge.s32.totalorder %v4220_v26, %v5405_v43  ;;  %vm2113_vm4 = vcmp.lt.s32.totalorder %v4211_v12, %v5466_v45  ;;  %v2078_v16 = vmax.f32 %v2074_v50, %v2075_v44 }
 0x407   : > { %vm5511_vm1 = vmand %vm2093_vm11, %vm2110_vm14  ;;  %v2079_v54 = vmax.f32 %v2076_v42, %v2077_v57  ;;  %vm2114_vm2 = vcmp.lt.s32.totalorder %v4214_v22, %v5466_v45  ;;  %vm2102_vm11 = vcmp.ge.s32.totalorder %v4231_v29, %v5405_v43  ;;  %vm2115_vm3 = vcmp.lt.s32.totalorder %v4217_v25, %v5466_v45 }
 0x408   : > { %vm5525_vm0 = vmand %vm2094_vm10, %vm2111_vm13  ;;  %v2172_v59 = vsel %vm5482_vm7, %v4099_v31, -3e+38  ;;  %vm2116_vm13 = vcmp.lt.s32.totalorder %v4220_v26, %v5466_v45  ;;  %v2173_v18 = vsel %vm5496_vm6, %v4107_v47, -3e+38  ;;  %v2174_v62 = vsel %vm5511_vm1, %v4095_v23, -3e+38 }
 0x409   : > { %vm5543_vm10 = vmand %vm2095_vm15, %vm2112_vm5  ;;  %vm2104_vm15 = vcmp.ge.s32.totalorder %v4249_v34, %v5405_v43  ;;  %vm2117_vm7 = vcmp.lt.s32.totalorder %v4223_v27, %v5466_v45  ;;  %v2175_v2 = vsel %vm5525_vm0, %v4103_v39, -3e+38  ;;  %v2080_v11 = vmax.f32 %v2078_v16, %v2079_v54 }
 0x40a   : > { %vm5555_vm14 = vmand %vm2096_vm9, %vm2113_vm4  ;;  %v2176_v5 = vsel %vm5543_vm10, %v4115_v63, -3e+38  ;;  %vm6332_vm9 = vcmp.ge.s32.totalorder %v4214_v22, %v5405_v43  ;;  %vm2118_vm1 = vcmp.lt.s32.totalorder %v4228_v28, %v5466_v45  ;;  %vm2119_vm6 = vcmp.lt.s32.totalorder %v4231_v29, %v5466_v45 }
 0x40b   : > { %vm2130_vm5 = vmand %vm6332_vm9, %vm2114_vm2  ;;  %v2177_v7 = vsel %vm5555_vm14, %v4123_v13, -3e+38  ;;  %v2188_v44 = vmax.f32 %v2172_v59, %v2176_v5  ;;  %vm2106_vm14 = vcmp.ge.s32.totalorder %v4263_v38, %v5405_v43  ;;  %vm2121_vm10 = vcmp.lt.s32.totalorder %v4249_v34, %v5466_v45 }
 0x40c   : > { %vm2131_vm0 = vmand %vm2098_vm12, %vm2115_vm3  ;;  %v2178_v41 = vsel %vm2130_vm5, %v4111_v55, -3e+38  ;;  %v2189_v46 = vmax.f32 %v2173_v18, %v2177_v7  ;;  %vm2105_vm12 = vcmp.ge.s32.totalorder %v4260_v37, %v5405_v43  ;;  %vm2120_vm3 = vcmp.lt.s32.totalorder %v4246_v33, %v5466_v45 }
 0x40d   : > { %vm5603_vm4 = vmand %vm2099_vm8, %vm2116_vm13  ;;  %v2179_v50 = vsel %vm2131_vm0, %v4119_v8, -3e+38  ;;  %v2190_v42 = vmax.f32 %v2174_v62, %v2178_v41  ;;  %vm6335_vm8 = vcmp.ge.s32.totalorder %v4223_v27, %v5405_v43  ;;  %vm2122_vm13 = vcmp.lt.s32.totalorder %v4260_v37, %v5466_v45 }
 0x40e   : > { %vm5618_vm2 = vmand %vm6335_vm8, %vm2117_vm7  ;;  %v2180_v10 = vsel %vm5603_vm4, %v4101_v32, -3e+38  ;;  %v2191_v53 = vmax.f32 %v2175_v2, %v2179_v50  ;;  %vm6338_vm7 = vcmp.ge.s32.totalorder %v4228_v28, %v5405_v43  ;;  %v2081_v16 = vrot.slane %v2080_v11, 4 }
 0x40f   : > { %vm2134_vm9 = vmand %vm6338_vm7, %vm2118_vm1  ;;  %v2181_v61 = vsel %vm5618_vm2, %v4109_v48, -3e+38  ;;  %vm2123_vm5 = vcmp.lt.s32.totalorder %v4263_v38, %v5466_v45  ;;  %v5650_v15 = vstv %s5529_s23  ;;  %vm6339_vm1 = vcmp.ge.s32.totalorder %v4246_v33, %v5405_v43 }
 0x410   : > { %vm2135_vm0 = vmand %vm2102_vm11, %vm2119_vm6  ;;  %v2182_v54 = vsel %vm2134_vm9, %v4097_v24, -3e+38  ;;  %v2192_v30 = vmax.f32 %v2188_v44, %v2180_v10  ;;  %v2193_v18 = vmax.f32 %v2189_v46, %v2181_v61  ;;  %v1597_v5 = vrot.slane %v5215_v51, 1 }
 0x411   : > { %vm5655_vm4 = vmand %vm6339_vm1, %vm2120_vm3  ;;  %v2183_v59 = vsel %vm2135_vm0, %v4105_v40, -3e+38  ;;  %v2194_v62 = vmax.f32 %v2190_v42, %v2182_v54  ;;  %v1719_v2 = vrot.slane %v5218_v52, 1  ;;  %v1841_v50 = vrot.slane %v5290_v1, 1 }
 0x412   : > { %vm5668_vm11 = vmand %vm2104_vm15, %vm2121_vm10  ;;  %v2184_v41 = vsel %vm5655_vm4, %v4117_v0, -3e+38  ;;  %v2195_v49 = vmax.f32 %v2191_v53, %v2183_v59  ;;  %v5679_v44 = vmax.f32 %v5446_v36, %v1961_v60  ;;  %vm2213_vm6 = vcmp.ge.s32.totalorder %v4090_v6, %v5650_v15 }
 0x413   : > { %vm2138_vm15 = vmand %vm2105_vm12, %vm2122_vm13  ;;  %v2185_v46 = vsel %vm5668_vm11, %v4125_v14, -3e+38  ;;  %v5694_v42 = vmax.f32 %v2080_v11, %v2081_v16  ;;  %vm2214_vm12 = vcmp.ge.s32.totalorder %v4193_v17, %v5650_v15  ;;  %vm2215_vm8 = vcmp.ge.s32.totalorder %v4200_v19, %v5650_v15 }
 0x414   : > { %vm2139_vm3 = vmand %vm2106_vm14, %vm2123_vm5  ;;  %v2186_v36 = vsel %vm2138_vm15, %v4113_v56, -3e+38  ;;  %v2196_v57 = vmax.f32 %v2192_v30, %v2184_v41  ;;  %v2197_v11 = vmax.f32 %v2193_v18, %v2185_v46  ;;  %vm2216_vm2 = vcmp.ge.s32.totalorder %v4205_v20, %v5650_v15 }
 0x415   : > { %v2187_v60 = vsel %vm2139_vm3, %v4121_v9, -3e+38  ;;  %v2198_v10 = vmax.f32 %v2194_v62, %v2186_v36  ;;  %vm2217_vm14 = vcmp.ge.s32.totalorder %v4208_v21, %v5650_v15  ;;  %v5712_v43 = vstv %s2211_s22 }
 0x416   : > { %v2199_v53 = vmax.f32 %v2195_v49, %v2187_v60  ;;  %vm2218_vm10 = vcmp.ge.s32.totalorder %v4211_v12, %v5650_v15  ;;  %vm2230_vm13 = vcmp.lt.s32.totalorder %v4090_v6, %v5712_v43  ;;  %vm2231_vm7 = vcmp.lt.s32.totalorder %v4193_v17, %v5712_v43 }
 0x417   : > { %vm2232_vm9 = vcmp.lt.s32.totalorder %v4200_v19, %v5712_v43  ;;  %v2083_v45 = vrot.slane %v5694_v42, 2  ;;  %vm2219_vm5 = vcmp.ge.s32.totalorder %v4214_v22, %v5650_v15  ;;  %vm2233_vm1 = vcmp.lt.s32.totalorder %v4205_v20, %v5712_v43  ;;  %vm5734_vm4 = vmand %vm2213_vm6, %vm2230_vm13 }
 0x418   : > { %v2200_v16 = vmax.f32 %v2196_v57, %v2197_v11  ;;  %v2201_v54 = vmax.f32 %v2198_v10, %v2199_v53  ;;  %vm2234_vm15 = vcmp.lt.s32.totalorder %v4208_v21, %v5712_v43  ;;  %vm5745_vm3 = vmand %vm2214_vm12, %vm2231_vm7  ;;  %vm2235_vm11 = vcmp.lt.s32.totalorder %v4211_v12, %v5712_v43 }
 0x419   : > { %vm5763_vm12 = vmand %vm2215_vm8, %vm2232_vm9  ;;  %vm2225_vm7 = vcmp.ge.s32.totalorder %v4246_v33, %v5650_v15  ;;  %vm2236_vm0 = vcmp.lt.s32.totalorder %v4214_v22, %v5712_v43  ;;  %v2294_v18 = vsel %vm5734_vm4, %v4099_v31, -3e+38  ;;  %vm2227_vm8 = vcmp.ge.s32.totalorder %v4260_v37, %v5650_v15 }
 0x41a   : > { %vm5779_vm6 = vmand %vm2216_vm2, %vm2233_vm1  ;;  %vm2228_vm9 = vcmp.ge.s32.totalorder %v4263_v38, %v5650_v15  ;;  %vm2237_vm13 = vcmp.lt.s32.totalorder %v4217_v25, %v5712_v43  ;;  %v2295_v62 = vsel %vm5745_vm3, %v4107_v47, -3e+38  ;;  %v2202_v7 = vmax.f32 %v2200_v16, %v2201_v54 }
 0x41b   : > { %vm2250_vm2 = vmand %vm2217_vm14, %vm2234_vm15  ;;  %vm2238_vm1 = vcmp.lt.s32.totalorder %v4220_v26, %v5712_v43  ;;  %v2296_v41 = vsel %vm5763_vm12, %v4095_v23, -3e+38  ;;  %vm2239_vm14 = vcmp.lt.s32.totalorder %v4223_v27, %v5712_v43  ;;  %v2297_v46 = vsel %vm5779_vm6, %v4103_v39, -3e+38 }
 0x41c   : > { %vm2251_vm4 = vmand %vm2218_vm10, %vm2235_vm11  ;;  %v2298_v49 = vsel %vm2250_vm2, %v4115_v63, -3e+38  ;;  %vm2240_vm10 = vcmp.lt.s32.totalorder %v4228_v28, %v5712_v43  ;;  %vm6352_vm11 = vcmp.ge.s32.totalorder %v4217_v25, %v5650_v15  ;;  %v5834_v10 = vstv %s5722_s0 }
 0x41d   : > { %vm2252_vm15 = vmand %vm2219_vm5, %vm2236_vm0  ;;  %v2299_v36 = vsel %vm2251_vm4, %v4123_v13, -3e+38  ;;  %v2310_v60 = vmax.f32 %v2294_v18, %v2298_v49  ;;  %vm2241_vm5 = vcmp.lt.s32.totalorder %v4231_v29, %v5712_v43  ;;  %vm2242_vm0 = vcmp.lt.s32.totalorder %v4246_v33, %v5712_v43 }
 0x41e   : > { %vm2253_vm3 = vmand %vm6352_vm11, %vm2237_vm13  ;;  %v2300_v57 = vsel %vm2252_vm15, %v4111_v55, -3e+38  ;;  %v2311_v11 = vmax.f32 %v2295_v62, %v2299_v36  ;;  %vm6353_vm6 = vcmp.ge.s32.totalorder %v4220_v26, %v5650_v15  ;;  %v2203_v16 = vrot.slane %v2202_v7, 4 }
 0x41f   : > { %vm2254_vm12 = vmand %vm6353_vm6, %vm2238_vm1  ;;  %v2301_v53 = vsel %vm2253_vm3, %v4119_v8, -3e+38  ;;  %v2312_v61 = vmax.f32 %v2296_v41, %v2300_v57  ;;  %vm2243_vm13 = vcmp.lt.s32.totalorder %v4249_v34, %v5712_v43  ;;  %vm6354_vm2 = vcmp.ge.s32.totalorder %v4223_v27, %v5650_v15 }
 0x420   : > { %vm2255_vm4 = vmand %vm6354_vm2, %vm2239_vm14  ;;  %v2302_v54 = vsel %vm2254_vm12, %v4101_v32, -3e+38  ;;  %v2313_v58 = vmax.f32 %v2297_v46, %v2301_v53  ;;  %vm2244_vm1 = vcmp.lt.s32.totalorder %v4260_v37, %v5712_v43  ;;  %vm2245_vm15 = vcmp.lt.s32.totalorder %v4263_v38, %v5712_v43 }
 0x421   : > { %vm6355_vm11 = vcmp.ge.s32.totalorder %v4228_v28, %v5650_v15  ;;  %v2303_v59 = vsel %vm2255_vm4, %v4109_v48, -3e+38  ;;  %v2314_v30 = vmax.f32 %v2310_v60, %v2302_v54  ;;  %vm6356_vm14 = vcmp.ge.s32.totalorder %v4231_v29, %v5650_v15  ;;  %vm2258_vm2 = vmand %vm2225_vm7, %vm2242_vm0 }
 0x422   : > { %vm2256_vm3 = vmand %vm6355_vm11, %vm2240_vm10  ;;  %v2315_v62 = vmax.f32 %v2311_v11, %v2303_v59  ;;  %vm2335_vm12 = vcmp.ge.s32.totalorder %v4090_v6, %v5834_v10  ;;  %vm2336_vm10 = vcmp.ge.s32.totalorder %v4193_v17, %v5834_v10  ;;  %vm2338_vm4 = vcmp.ge.s32.totalorder %v4205_v20, %v5834_v10 }
 0x423   : > { %vm2257_vm6 = vmand %vm6356_vm14, %vm2241_vm5  ;;  %v2304_v18 = vsel %vm2256_vm3, %v4097_v24, -3e+38  ;;  %vm2337_vm5 = vcmp.ge.s32.totalorder %v4200_v19, %v5834_v10  ;;  %v5891_v46 = vmax.f32 %v2202_v7, %v2203_v16  ;;  %vm6357_vm11 = vcmp.ge.s32.totalorder %v4249_v34, %v5650_v15 }
 0x424   : > { %v2305_v41 = vsel %vm2257_vm6, %v4105_v40, -3e+38  ;;  %v2316_v49 = vmax.f32 %v2312_v61, %v2304_v18  ;;  %vm2259_vm3 = vmand %vm6357_vm11, %vm2243_vm13  ;;  %v2306_v36 = vsel %vm2258_vm2, %v4117_v0, -3e+38  ;;  %vm2339_vm7 = vcmp.ge.s32.totalorder %v4208_v21, %v5834_v10 }
 0x425   : > { %v2317_v60 = vmax.f32 %v2313_v58, %v2305_v41  ;;  %vm2260_vm0 = vmand %vm2227_vm8, %vm2244_vm1  ;;  %v2307_v7 = vsel %vm2259_vm3, %v4125_v14, -3e+38  ;;  %v2318_v57 = vmax.f32 %v2314_v30, %v2306_v36  ;;  %vm2340_vm14 = vcmp.ge.s32.totalorder %v4211_v12, %v5834_v10 }
 0x426   : > { %v5911_v11 = vstv %s2333_s21  ;;  %vm2261_vm13 = vmand %vm2228_vm9, %vm2245_vm15  ;;  %v2308_v53 = vsel %vm2260_vm0, %v4113_v56, -3e+38  ;;  %v2319_v61 = vmax.f32 %v2315_v62, %v2307_v7  ;;  %vm2341_vm15 = vcmp.ge.s32.totalorder %v4214_v22, %v5834_v10 }
 0x427   : > { %vm2352_vm8 = vcmp.lt.s32.totalorder %v4090_v6, %v5911_v11  ;;  %vm2353_vm1 = vcmp.lt.s32.totalorder %v4193_v17, %v5911_v11  ;;  %v2309_v16 = vsel %vm2261_vm13, %v4121_v9, -3e+38  ;;  %v2320_v54 = vmax.f32 %v2316_v49, %v2308_v53 }
 0x428   : > { %vm2354_vm6 = vcmp.lt.s32.totalorder %v4200_v19, %v5911_v11  ;;  %vm2355_vm2 = vcmp.lt.s32.totalorder %v4205_v20, %v5911_v11  ;;  %vm5932_vm9 = vmand %vm2335_vm12, %vm2352_vm8  ;;  %v2321_v43 = vmax.f32 %v2317_v60, %v2309_v16  ;;  %v2322_v58 = vmax.f32 %v2318_v57, %v2319_v61 }
 0x429   : > { %vm2356_vm11 = vcmp.lt.s32.totalorder %v4208_v21, %v5911_v11  ;;  %vm5943_vm3 = vmand %vm2336_vm10, %vm2353_vm1  ;;  %v2205_v30 = vrot.slane %v5891_v46, 2  ;;  %vm2357_vm13 = vcmp.lt.s32.totalorder %v4211_v12, %v5911_v11  ;;  %vm2358_vm0 = vcmp.lt.s32.totalorder %v4214_v22, %v5911_v11 }
 0x42a   : > { %vm5957_vm8 = vmand %vm2337_vm5, %vm2354_vm6  ;;  %v2323_v18 = vmax.f32 %v2320_v54, %v2321_v43  ;;  %vm2346_vm6 = vcmp.ge.s32.totalorder %v4231_v29, %v5834_v10  ;;  %vm2347_vm10 = vcmp.ge.s32.totalorder %v4246_v33, %v5834_v10  ;;  %vm2359_vm1 = vcmp.lt.s32.totalorder %v4217_v25, %v5911_v11 }
 0x42b   : > { %vm5973_vm5 = vmand %vm2338_vm4, %vm2355_vm2  ;;  %v2416_v20 = vsel %vm5932_vm9, %v4099_v31, -3e+38  ;;  %vm2360_vm4 = vcmp.lt.s32.totalorder %v4220_v26, %v5911_v11  ;;  %v2417_v41 = vsel %vm5943_vm3, %v4107_v47, -3e+38  ;;  %v2418_v21 = vsel %vm5957_vm8, %v4095_v23, -3e+38 }
 0x42c   : > { %vm2372_vm12 = vmand %vm2339_vm7, %vm2356_vm11  ;;  %v2324_v62 = vmax.f32 %v2322_v58, %v2323_v18  ;;  %vm2361_vm7 = vcmp.lt.s32.totalorder %v4223_v27, %v5911_v11  ;;  %v2419_v31 = vsel %vm5973_vm5, %v4103_v39, -3e+38  ;;  %vm6366_vm11 = vcmp.ge.s32.totalorder %v4217_v25, %v5834_v10 }
 0x42d   : > { %vm2373_vm2 = vmand %vm2340_vm14, %vm2357_vm13  ;;  %v2420_v12 = vsel %vm2372_vm12, %v4115_v63, -3e+38  ;;  %vm2362_vm14 = vcmp.lt.s32.totalorder %v4228_v28, %v5911_v11  ;;  %vm6367_vm12 = vcmp.ge.s32.totalorder %v4220_v26, %v5834_v10  ;;  %vm2348_vm13 = vcmp.ge.s32.totalorder %v4249_v34, %v5834_v10 }
 0x42e   : > { %vm2374_vm9 = vmand %vm2341_vm15, %vm2358_vm0  ;;  %v2421_v49 = vsel %vm2373_vm2, %v4123_v13, -3e+38  ;;  %v2432_v47 = vmax.f32 %v2416_v20, %v2420_v12  ;;  %v2325_v36 = vrot.slane %v2324_v62, 4  ;;  %vm2363_vm15 = vcmp.lt.s32.totalorder %v4231_v29, %v5911_v11 }
 0x42f   : > { %vm2375_vm3 = vmand %vm6366_vm11, %vm2359_vm1  ;;  %v2422_v23 = vsel %vm2374_vm9, %v4111_v55, -3e+38  ;;  %v2433_v22 = vmax.f32 %v2417_v41, %v2421_v49  ;;  %vm2364_vm8 = vcmp.lt.s32.totalorder %v4246_v33, %v5911_v11  ;;  %vm6368_vm1 = vcmp.ge.s32.totalorder %v4223_v27, %v5834_v10  ;;  %v2453_v49 = vld [vmem:[#allocation6] sm:$0xff] }
 0x430   : > { %vm2376_vm0 = vmand %vm6367_vm12, %vm2360_vm4  ;;  %v2423_v39 = vsel %vm2375_vm3, %v4119_v8, -3e+38  ;;  %v2434_v63 = vmax.f32 %v2418_v21, %v2422_v23  ;;  %vm2349_vm4 = vcmp.ge.s32.totalorder %v4260_v37, %v5834_v10  ;;  %vm2365_vm2 = vcmp.lt.s32.totalorder %v4249_v34, %v5911_v11 }
 0x431   : > { %vm2377_vm5 = vmand %vm6368_vm1, %vm2361_vm7  ;;  %v2424_v55 = vsel %vm2376_vm0, %v4101_v32, -3e+38  ;;  %v2435_v13 = vmax.f32 %v2419_v31, %v2423_v39  ;;  %vm6369_vm9 = vcmp.ge.s32.totalorder %v4228_v28, %v5834_v10  ;;  %vm2350_vm7 = vcmp.ge.s32.totalorder %v4263_v38, %v5834_v10  ;;  %v2473_v31 = vld [vmem:[%s6167_s5] sm:$0xff]  ;;  %v2686_v39 = vld [vmem:[#allocation21 + $0x70] sm:$0xff] }
 0x432   : > { %vm2378_vm11 = vmand %vm6369_vm9, %vm2362_vm14  ;;  %v2425_v8 = vsel %vm2377_vm5, %v4109_v48, -3e+38  ;;  %v2436_v25 = vmax.f32 %v2432_v47, %v2424_v55  ;;  %vm2366_vm3 = vcmp.lt.s32.totalorder %v4260_v37, %v5911_v11  ;;  %v2326_v27 = vmax.f32 %v2324_v62, %v2325_v36  ;;  %v2687_v36 = vld [vmem:[#allocation21 + $0x78] sm:$0xff]  ;;  %v2684_v55 = vld [vmem:[#allocation21 + $0x60] sm:$0xff] }
 0x433   : > { %vm2379_vm12 = vmand %vm2346_vm6, %vm2363_vm15  ;;  %v2426_v32 = vsel %vm2378_vm11, %v4097_v24, -3e+38  ;;  %v2437_v26 = vmax.f32 %v2433_v22, %v2425_v8  ;;  %vm2367_vm14 = vcmp.lt.s32.totalorder %v4263_v38, %v5911_v11  ;;  %v1598_v29 = vmax.f32 %v5215_v51, %v1597_v5  ;;  %v2682_v8 = vld [vmem:[#allocation21 + $0x50] sm:$0xff] }
 0x434   : > { %vm2380_vm0 = vmand %vm2347_vm10, %vm2364_vm8  ;;  %v2427_v48 = vsel %vm2379_vm12, %v4105_v40, -3e+38  ;;  %v2438_v28 = vmax.f32 %v2434_v63, %v2426_v32  ;;  %v1720_v24 = vmax.f32 %v5218_v52, %v1719_v2  ;;  %v2084_v40 = vmax.f32 %v5694_v42, %v2083_v45  ;;  %v2685_v63 = vld [vmem:[#allocation21 + $0x68] sm:$0xff]  ;;  %v2680_v32 = vld [vmem:[#allocation21 + $0x40] sm:$0xff] }
 0x435   : > { %vm2381_vm6 = vmand %vm2348_vm13, %vm2365_vm2  ;;  %v2428_v33 = vsel %vm2380_vm0, %v4117_v0, -3e+38  ;;  %v2439_v60 = vmax.f32 %v2435_v13, %v2427_v48  ;;  %vm2454_vm15 = vcmask 1040384   ;;  %v1842_v0 = vmax.f32 %v5290_v1, %v1841_v50  ;;  %v2683_v13 = vld [vmem:[#allocation21 + $0x58] sm:$0xff]  ;;  %v2677_v48 = vld [vmem:[#allocation21 + $0x28] sm:$0xff] }
 0x436   : > { %vm2382_vm10 = vmand %vm2349_vm4, %vm2366_vm3  ;;  %v2429_v51 = vsel %vm2381_vm6, %v4125_v14, -3e+38  ;;  %v2440_v52 = vmax.f32 %v2436_v25, %v2428_v33  ;;  %v1963_v34 = vrot.slane %v5679_v44, 1  ;;  %v2206_v14 = vmax.f32 %v5891_v46, %v2205_v30  ;;  %v1369_v30 = vld [vmem:[#allocation5] sm:$0xff] }
 0x437   : > { %vm2383_vm13 = vmand %vm2350_vm7, %vm2367_vm14  ;;  %v2430_v37 = vsel %vm2382_vm10, %v4113_v56, -3e+38  ;;  %v2441_v5 = vmax.f32 %v2437_v26, %v2429_v51  ;;  %v2327_v2 = vrot.slane %v2326_v27, 2  ;;  %v2455_v7 = vsel %vm2454_vm15, %v1598_v29, %v1720_v24  ;;  %v2681_v25 = vld [vmem:[#allocation21 + $0x48] sm:$0xff]  ;;  %v2679_v26 = vld [vmem:[#allocation21 + $0x38] sm:$0xff] }
 0x438   : > { %v2431_v42 = vsel %vm2383_vm13, %v4121_v9, -3e+38  ;;  %v2442_v1 = vmax.f32 %v2438_v28, %v2430_v37  ;;  %vm2456_vm8 = vcmask 1041408   ;;  %v2085_v57 = vrot.slane %v2084_v40, 1  ;;  %v2676_v28 = vld [vmem:[#allocation21 + $0x20] sm:$0xff]  ;;  %v2675_v29 = vld [vmem:[#allocation21 + $0x18] sm:$0xff] }
 0x439   : > { %v2443_v50 = vmax.f32 %v2439_v60, %v2431_v42  ;;  %v2444_v45 = vmax.f32 %v2440_v52, %v2441_v5  ;;  %v1964_v11 = vmax.f32 %v5679_v44, %v1963_v34  ;;  %v2328_v10 = vmax.f32 %v2326_v27, %v2327_v2  ;;  %v2678_v27 = vld [vmem:[#allocation21 + $0x30] sm:$0xff]  ;;  %v2673_v33 = vld [vmem:[#allocation21 + $0x8] sm:$0xff]  ;;  %v2672_v60 = vld [vmem:[#allocation21] sm:$0xff] }
 0x43a   : > { %v2457_v53 = vsel %vm2456_vm8, %v2455_v7, %v1842_v0  ;;  %vm2458_vm1 = vcmask 1042432   ;;  %v2207_v56 = vrot.slane %v2206_v14, 1  ;;  %v2086_v16 = vmax.f32 %v2084_v40, %v2085_v57  ;;  %v2674_v24 = vld [vmem:[#allocation21 + $0x10] sm:$0xff] }
 0x43b   : > { %v2445_v38 = vmax.f32 %v2442_v1, %v2443_v50  ;;  %v2459_v46 = vsel %vm2458_vm1, %v2457_v53, %v1964_v11  ;;  %vm2460_vm5 = vcmask 1043456   ;;  %v2329_v15 = vrot.slane %v2328_v10, 1 }
 0x43c   : > { %v2208_v9 = vmax.f32 %v2206_v14, %v2207_v56  ;;  %v2461_v58 = vsel %vm2460_vm5, %v2459_v46, %v2086_v16  ;;  %vm2462_vm4 = vcmask 1044480   ;;  %vm2464_vm2 = vcmask 1045504  }
 0x43d   : > { %v2446_v61 = vmax.f32 %v2444_v45, %v2445_v38  ;;  %v2330_v17 = vmax.f32 %v2328_v10, %v2329_v15  ;;  %vm2466_vm9 = vcmask 1046528   ;;  %vm2476_vm11 = vcmp.gt.f32.partialorder %v2473_v31, 0.0 }
 0x43e   : > { %v2463_v44 = vsel %vm2462_vm4, %v2461_v58, %v2208_v9  ;;  %vm6370_vm7 = vmmov 0   ;;  %v2529_v52 = vsub.s32 2, %v4090_v6  ;;  %v2690_v1 = vsub.s32 3, %v4090_v6 }
 0x43f   : > { %v2447_v54 = vrot.slane %v2446_v61, 4  ;;  %v2465_v21 = vsel %vm2464_vm2, %v2463_v44, %v2330_v17  ;;  %v2763_v50 = vand.u32 127, %v1310_v3 }
 0x440   : > { %v2530_v34 = vrot.slane %v4087_v4, %v2529_v52 }
 0x441   : > { %v2448_v43 = vmax.f32 %v2446_v61, %v2447_v54  ;;  %vm2764_vm3 = vcmp.lt.s32.totalorder %v2763_v50, 4 }
 0x443   : > { %v2449_v59 = vrot.slane %v2448_v43, 2 }
 0x445   : > { %v2450_v18 = vmax.f32 %v2448_v43, %v2449_v59 }
 0x447   : > { %v2451_v62 = vrot.slane %v2450_v18, 1 }
 0x449   : > { %v2452_v12 = vmax.f32 %v2450_v18, %v2451_v62 }
 0x44b   : > { %v2467_v23 = vsel %vm2466_vm9, %v2465_v21, %v2452_v12 }
 0x44c   : > { %v2468_v22 = vmax.f32 %v2453_v49, %v2467_v23 }
 0x44e   : > { %2469 = vst [vmem:[#allocation6] sm:$0xff] %v2468_v22  ;;  %2982 = vmatprep.mubr.msk.f32.mxu1 %vm2476_vm11, %v2468_v22 }
 0x46e   : > { %v1437_v19 = vpop.f32.mrf.mxu0 }
 0x46f   : > { %v1441_v20 = vadd.f32 %v1437_v19, %v1369_v30 }
 0x470   : > { %v3283_v41 = vpop.f32.mrf.mxu0 }
 0x471   : > { %1442 = vst [vmem:[#allocation5] sm:$0xff] %v1441_v20  ;;  %3317 = vmatmul.mubr.f32.vlgmr.msra.gmra.mxu0 %v1441_v20  ;;  %v2475_v47 = vmul.f32 %v2473_v31, %v1441_v20 }
 0x473   : > { %2596 = vmatmul.mubr.f32.vlgmr.msra.gmra.mxu1 %v2475_v47 }
 0x474   : > { %3320 = vmatpush3.msra.mxu1 %v2687_v36  ;;  %3351 = vmatprep.mubr.msk.f32.mxu1 %vm6370_vm7, %v3855_v35 }
 0x475   : > { %3321 = vmatprep.subr.mxu1 %v3855_v35 }
 0x476   : > { %3322 = vmatpush3.msra.mxu1 %v2686_v39 }
 0x477   : > { %3323 = vmatprep.subr.mxu1 %v3855_v35 }
 0x478   : > { %3324 = vmatpush3.msra.mxu1 %v2685_v63 }
 0x479   : > { %3325 = vmatprep.subr.mxu1 %v3855_v35 }
 0x47a   : > { %3326 = vmatpush3.msra.mxu1 %v2684_v55 }
 0x47b   : > { %3327 = vmatprep.subr.mxu1 %v3855_v35 }
 0x47c   : > { %3328 = vmatpush3.msra.mxu1 %v2683_v13 }
 0x47d   : > { %3329 = vmatprep.subr.mxu1 %v3855_v35 }
 0x47e   : > { %3330 = vmatpush3.msra.mxu1 %v2682_v8 }
 0x47f   : > { %3331 = vmatprep.subr.mxu1 %v3855_v35 }
 0x480   : > { %3332 = vmatpush3.msra.mxu1 %v2681_v25 }
 0x481   : > { %3333 = vmatprep.subr.mxu1 %v3855_v35 }
 0x482   : > { %3334 = vmatpush3.msra.mxu1 %v2680_v32 }
 0x483   : > { %3335 = vmatprep.subr.mxu1 %v3855_v35 }
 0x484   : > { %3336 = vmatpush3.msra.mxu1 %v2679_v26 }
 0x485   : > { %3337 = vmatprep.subr.mxu1 %v3855_v35 }
 0x486   : > { %3338 = vmatpush3.msra.mxu1 %v2678_v27 }
 0x487   : > { %3339 = vmatprep.subr.mxu1 %v3855_v35 }
 0x488   : > { %3340 = vmatpush3.msra.mxu1 %v2677_v48 }
 0x489   : > { %3341 = vmatprep.subr.mxu1 %v3855_v35 }
 0x48a   : > { %3342 = vmatpush3.msra.mxu1 %v2676_v28 }
 0x48b   : > { %3343 = vmatprep.subr.mxu1 %v3855_v35 }
 0x48c   : > { %3344 = vmatpush3.msra.mxu1 %v2675_v29 }
 0x48d   : > { %3345 = vmatprep.subr.mxu1 %v3855_v35 }
 0x48e   : > { %3346 = vmatpush3.msra.mxu1 %v2674_v24 }
 0x48f   : > { %3347 = vmatprep.subr.mxu1 %v3855_v35 }
 0x490   : > { %3348 = vmatpush3.msra.mxu1 %v2673_v33 }
 0x491   : > { %3349 = vmatprep.subr.mxu1 %v3855_v35  ;;  %v2691_v35 = vrot.slane %v4087_v4, %v2690_v1 }
 0x492   : > { %3350 = vmatpush3.msra.mxu1 %v2672_v60 }
 0x531   : > { %v2667_v40 = vpop.f32.mrf.mxu0 }
 0x533   : > { %v3318_v51 = vpop.f32.mrf.mxu0  ;;  %v3180_v0 = vpop.f32.mrf.mxu1 }
 0x535   : > { %v3181_v37 = vpop.f32.mrf.mxu1 }
 0x536   : > { %v3182_v5 = vadd.f32 %v3181_v37, %v3180_v0 }
 0x538   : > { %v2598_v14 = vadd.f32 %v3182_v5, %v2530_v34 }
 0x53a   : > { %v2668_v2 = vadd.f32 %v2667_v40, %v2598_v14 }
 0x53c   : > { %v2671_v42 = vmax.f32 %v2668_v2, 0.0 }
 0x53e   : > { %3352 = vmatmul.mubr.f32.vlgmr.msra.gmra.mxu1 %v2671_v42 }
 0x5fe   : > { %v2758_v45 = vpop.f32.mrf.mxu1 }
 0x5ff   : > { %v2759_v7 = vadd.f32 %v2758_v45, %v2691_v35 }
 0x600   : > { %v3353_v57 = vpop.f32.mrf.mxu1 }
 0x601   : > { %v2765_v11 = vsel %vm2764_vm3, %v2759_v7, -3e+38 }
 0x602   : > { %2766 = vmax.xlane.f32.xlu0 %v2765_v11 }
 0x68b   : > { %v2767_v38 = vpop.xlane.xlu0 %2766 }
 0x68c   : > { %v2768_v10 = vsub.f32 %v2765_v11, %v2767_v38 }
 0x68e   : > { %v2769_v53 = vmul.f32 1.442695, %v2768_v10 }
 0x690   : > { %3565 = vpow2.f32 %v2769_v53 }
 0x69d   : > { %v3566_v56 = vpop.eup %3565 }
 0x69e   : > { %v2771_v61 = vsel %vm2764_vm3, %v3566_v56, 0.0 }
 0x69f   : > { %2772 = vadd.xlane.f32.xlu0 %v2771_v61 }
 0x728   : > { %v2773_v6 = vpop.xlane.xlu0 %2772 }
 0x729   : > { %3567 = vlog2.f32 %v2773_v6 }
 0x736   : > { %v3568_v3 = vpop.eup %3567 }
 0x737   : > { %v2775_v16 = vmul.f32 0.6931472, %v3568_v3 }
 0x739   : > { %v2776_v4 = vsub.f32 %v2768_v10, %v2775_v16 }
 0x73b   : > { %v2777_v54 = vsel %vm2764_vm3, %v2776_v4, 0.0 }
 0x73c   : > { %2778 = vst [vmem:[#allocation22] sm:$0xff] %v2777_v54 }
 0x73d PF: > { %s6371_s29 = sadd.s32 4294967295, %s3835_s25   ;;  %s3857_s16 = smov [#allocation22]  }
 0x73e   : > { %p6139_p7 = scmp.eq.s32.totalorder %s6371_s29, 1  ;;  %s2786_s19 = sshll.u32 %s3857_s16, 4  ;;  %s2787_s19 = int_to_ptr.vmem [resolvable:$true] %s2786_s19 }
 0x73f   : > { %s3767_s20 = scalar_lea.vmem %s2787_s19, 128  ;;  %p3774_p2 = scmp.lt.s32.totalorder %s2787_s19, %s2787_s19 }
 0x740   : > { %p3768_p8 = scmp.ne.s32.totalorder %s2787_s19, %s3767_s20  ;;  %p3775_p3 = scmp.lt.s32.totalorder %s3767_s20, %s3767_s20 }
 0x742   : > { %p3769_p9 = pnand %p3768_p8, %p6139_p7  ;;  %p3776_p11 = por %p3775_p3, %p3774_p2 }
 0x744   : > { %p3770_p10 = pneg %p3769_p9 }
 0x746   : > { %p3777_p12 = pnand %p3776_p11, %p3770_p10 }
 0x748   : > { %3780 = shalt.err (!%p3777_p12)
}
 0x749   : > { %3463 = dma.vmem_to_hbm [thread:$0]  (%p6139_p7), %s2787_s19, 128, %s6173_s11, [#allocation12]  }
 0x74a   : > { %3822 = dma.done.wait (%p6139_p7), [#allocation12], 128  }
 0x74b   : > { %3824 = vsyncadd (%p6139_p7), [#allocation12], 4294967168 }
 0x74c PF: > { %s32_s25 = sadd.s32 1, %s3835_s25   ;;  %s6373_s23 = smov %s3831_s24 }
 0x74d   : > { %p29_p13 = scmp.ge.s32.totalorder %s32_s25, 4   ;;  %s6374_s24 = smov %s6376_s30 }
 0x74f   :  { %31 = sbr.rel (!%p29_p13) target bundleno = 12 (0xc), region = 133 }
 0x754   :  { %2799 = vsyncpa [#allocation11], 1 }
 0x755   :  { %2801 = vsyncpa [#allocation11 + $0x1], 1 }
 0x756   :  { %2802 = vsyncpa [#allocation14], 1 }
 0x757   :  { %2803 = vsyncpa [#allocation17], 1 }
 0x758   :  { %2804 = vsyncpa [#allocation20], 1 }
 0x759   :  { %2805 = vsyncpa [#allocation12], 1 }
 0x75a   :  { %2807 = vsyncpa [#allocation12 + $0x1], 1 }

</bundles_post_ra>
